<compile_context>
chip_gen: v5e
topology: v5e:2x2
jax: 0.10.0
libtpu: 0.0.40
codegen_flags: <defaults>
</compile_context>

<pallas_src>
import math
from functools import partial

import jax
import jax.numpy as jnp
from jax.experimental import pallas as pl
from jax.experimental.pallas import tpu as pltpu  # noqa: F401  (imported per convention)

# ---------------------------------------------------------------------------
# Small-shape configuration (consistent with the module's forward semantics)
# ---------------------------------------------------------------------------
B = 2           # batch
S_LAT = 6       # latent sequence length
C = 4           # latent channels
H = W = 8       # latent patch height / width
HW = H * W
D_MODEL = 64
N_HEADS = 4
N_LAYERS = 2
MAX_SEQ = 16
WINDOW = 2

T_TEXT = 8      # composer sequence length (>= S_LAT so block_mem[:, :S] works)
VOCAB_TEXT = 32
D_TEXT = 32
P_PHON = 4      # phonemes per step
V_PHON = 16     # phoneme vocab
N_ROLES = 3

# fused composer-head width: 64 (block_mem) + 64 (phoneme) + 1 (blank) + 3 (role) = 132 -> 256
COMPOSER_HEAD_N = 256


# ---------------------------------------------------------------------------
# In-kernel helpers
# ---------------------------------------------------------------------------
def _gelu(v):
    # TODO(synk): PyTorch nn.GELU() uses exact erf; the tanh approximation is used here so
    # the activation stays inside the fused Pallas kernel (guaranteed Mosaic lowering).
    c = 0.7978845608028654  # sqrt(2/pi)
    return 0.5 * v * (1.0 + jnp.tanh(c * (v + 0.044715 * v * v * v)))


def _layernorm(v, g, b):
    mu = jnp.mean(v, axis=-1, keepdims=True)
    var = jnp.mean((v - mu) ** 2, axis=-1, keepdims=True)
    return (v - mu) * jax.lax.rsqrt(var + 1e-5) * g + b


# ---------------------------------------------------------------------------
# Pallas kernels
# ---------------------------------------------------------------------------
def _mlp2_kernel(x_ref, w1_ref, b1_ref, w2_ref, b2_ref, o_ref):
    """o = gelu(x @ w1 + b1) @ w2 + b2  (hidden never leaves VMEM)."""
    hid = jnp.dot(x_ref[...], w1_ref[...], preferred_element_type=jnp.float32) + b1_ref[...]
    hid = _gelu(hid)
    o_ref[...] = jnp.dot(hid, w2_ref[...], preferred_element_type=jnp.float32) + b2_ref[...]


def _decoder_layer_kernel(
    x_ref, mem_ref, sm_ref, cm_ref,
    # self-attn (per-head stacked weights: w* (nH, d, dh) / (nH, dh, d), b* (nH, 1, dh))
    sa_wq, sa_bq, sa_wk, sa_bk, sa_wv, sa_bv, sa_wo, sa_bo,
    # cross-attn
    ca_wq, ca_bq, ca_wk, ca_bk, ca_wv, ca_bv, ca_wo, ca_bo,
    # FFN
    w1_ref, b1_ref, w2_ref, b2_ref,
    # LayerNorms (1, d)
    ln1g, ln1b, ln2g, ln2b, ln3g, ln3b,
    o_ref, *, n_heads, scale,
):
    """Fused _DecoderLayer forward (eval mode).  x: (R, d) padded rows; mem: (Rm, d).
    sm/cm: additive masks (R, R)/(R, Rm) that encode causal/local windows, padded-key
    removal and batch block-diagonality (so one score matrix covers the whole batch)."""
    x = x_ref[...]
    mem = mem_ref[...]
    sm = sm_ref[...]
    cm = cm_ref[...]

    def mha(y, kv, mask, wq, bq, wk, bk, wv, bv, wo, bo):
        out = None
        for h in range(n_heads):                      # static unroll, everything VMEM-resident
            qh = jnp.dot(y, wq[h], preferred_element_type=jnp.float32) + bq[h]
            kh = jnp.dot(kv, wk[h], preferred_element_type=jnp.float32) + bk[h]
            vh = jnp.dot(kv, wv[h], preferred_element_type=jnp.float32) + bv[h]
            s = jax.lax.dot_general(
                qh, kh, (((1,), (1,)), ((), ())), preferred_element_type=jnp.float32
            ) * scale + mask
            s = s - jnp.max(s, axis=-1, keepdims=True)
            p = jnp.exp(s)
            p = p * pl.reciprocal(jnp.sum(p, axis=-1, keepdims=True), approx=True)
            oh = jnp.dot(p, vh, preferred_element_type=jnp.float32)
            contrib = jnp.dot(oh, wo[h], preferred_element_type=jnp.float32)
            out = contrib if out is None else out + contrib
        return out + bo[...]

    # --- self-attention ---
    y = _layernorm(x, ln1g[...], ln1b[...])
    x = x + mha(y, y, sm, sa_wq, sa_bq, sa_wk, sa_bk, sa_wv, sa_bv, sa_wo, sa_bo)
    # --- cross-attention ---
    y = _layernorm(x, ln2g[...], ln2b[...])
    x = x + mha(y, mem, cm, ca_wq, ca_bq, ca_wk, ca_bk, ca_wv, ca_bv, ca_wo, ca_bo)
    # --- FFN (w1 -> GELU -> w2, hidden stays in VMEM) ---
    y = _layernorm(x, ln3g[...], ln3b[...])
    hid = jnp.dot(y, w1_ref[...], preferred_element_type=jnp.float32) + b1_ref[...]
    hid = _gelu(hid)
    x = x + jnp.dot(hid, w2_ref[...], preferred_element_type=jnp.float32) + b2_ref[...]
    o_ref[...] = x


# ---------------------------------------------------------------------------
# pallas_call wrappers (no grid: whole arrays live in VMEM; everything is tiny)
# ---------------------------------------------------------------------------
def mlp2(x, w1, b1, w2, b2):
    M = x.shape[0]
    N = w2.shape[1]
    return pl.pallas_call(
        _mlp2_kernel,
        out_shape=jax.ShapeDtypeStruct((M, N), jnp.float32),
    )(x, w1, b1, w2, b2)


def decoder_layer(x, mem, self_mask, cross_mask, p, n_heads):
    d = x.shape[-1]
    dh = d // n_heads
    kern = partial(_decoder_layer_kernel, n_heads=n_heads, scale=1.0 / math.sqrt(dh))
    return pl.pallas_call(
        kern,
        out_shape=jax.ShapeDtypeStruct(x.shape, jnp.float32),
    )(
        x, mem, self_mask, cross_mask,
        p["sa"]["wq"], p["sa"]["bq"], p["sa"]["wk"], p["sa"]["bk"],
        p["sa"]["wv"], p["sa"]["bv"], p["sa"]["wo"], p["sa"]["bo"],
        p["ca"]["wq"], p["ca"]["bq"], p["ca"]["wk"], p["ca"]["bk"],
        p["ca"]["wv"], p["ca"]["bv"], p["ca"]["wo"], p["ca"]["bo"],
        p["w1"], p["b1"], p["w2"], p["b2"],
        p["ln1g"], p["ln1b"], p["ln2g"], p["ln2b"], p["ln3g"], p["ln3b"],
    )


# ---------------------------------------------------------------------------
# Mask construction (glue; computed once per forward, tiny)
# ---------------------------------------------------------------------------
def build_masks(Bq, S_real, Sp, window):
    """Additive masks over padded, batch-flattened rows (Bq*Sp).
    Encodes: same-batch block diagonal, padded-key removal (pos >= S_real), causal /
    local-causal windows.  Padded *query* rows still see real keys, so no NaN rows."""
    idx = jnp.arange(Bq * Sp)
    b = idx // Sp
    pos = idx % Sp
    same = b[:, None] == b[None, :]
    key_real = pos[None, :] < S_real
    causal = pos[None, :] <= pos[:, None]
    local = causal & (pos[None, :] >= pos[:, None] - window)
    neg = jnp.float32(-jnp.inf)
    mg = jnp.where(same & key_real & causal, 0.0, neg).astype(jnp.float32)
    ml = jnp.where(same & key_real & local, 0.0, neg).astype(jnp.float32)
    mc = jnp.where(same & key_real, 0.0, neg).astype(jnp.float32)
    return mg, ml, mc


# ---------------------------------------------------------------------------
# Autoregressor / Composer forward (glue around the fused kernels)
# ---------------------------------------------------------------------------
def autoregressor_forward(p, latents, block_mem):
    Bq, S, Cc, Hh, Ww = latents.shape
    hw = Hh * Ww
    d = D_MODEL
    Sp = ((S + 7) // 8) * 8        # pad rows so B*Sp is a multiple of 8 sublanes

    x = latents.reshape(Bq, S, Cc, hw)
    x = x + p["chan_emb"].reshape(1, 1, Cc, hw)
    x = x + p["time_pos"][:, :S].reshape(1, S, 1, hw)
    x = x.reshape(Bq, S, Cc * hw)
    x = jnp.pad(x, ((0, 0), (0, Sp - S), (0, 0)))
    x = x.reshape(Bq * Sp, Cc * hw)                                   # (16, 256)

    tok = mlp2(x, p["tp1"], p["tb1"], p["tp2"], p["tb2"])             # (16, 64)

    Sm = block_mem.shape[1]
    mem = jnp.pad(block_mem, ((0, 0), (0, Sp - Sm), (0, 0))).reshape(Bq * Sp, d)

    mg, ml, mc = build_masks(Bq, S, Sp, WINDOW)

    tg, tl = tok, tok
    for blk in p["blocks_global"]:
        tg = decoder_layer(tg, mem, mg, mc, blk, N_HEADS)
    for blk in p["blocks_local"]:
        tl = decoder_layer(tl, mem, ml, mc, blk, N_HEADS)
    fused = tl + decoder_layer(tl, tg, mg, mc, p["fuse"], N_HEADS)

    out = mlp2(fused, p["rp1"], p["rb1"], p["rp2"], p["rb2"])         # (16, C*HW)
    out = out.reshape(Bq, Sp, Cc, Hh, Ww)[:, :S]
    return latents + jnp.maximum(p["delta_scale"], 0.0).reshape(1, 1, Cc, 1, 1) * out


def composer_forward(p, text_ids):
    # TODO(synk): `Composer` class is not defined in the reference source; this is a
    # deterministic synthetic stand-in matching the output contract
    # (ph_logits (B,T,P,V), bl_logits (B,T), role_weights (B,T,R), block_mem (B,T,d_model)).
    Bq, T = text_ids.shape
    emb = p["emb"][text_ids].reshape(Bq * T, D_TEXT)                  # gather in glue, (16, 32)
    out = mlp2(emb, p["w_h"], p["b_h"], p["w_heads"], p["b_heads"])   # (16, 256) fused heads
    o0 = D_MODEL
    o1 = o0 + P_PHON * V_PHON
    block_mem = out[:, :o0].reshape(Bq, T, D_MODEL)
    ph_logits = out[:, o0:o1].reshape(Bq, T, P_PHON, V_PHON)
    bl_logits = out[:, o1].reshape(Bq, T)
    role_w = jax.nn.softmax(out[:, o1 + 1:o1 + 1 + N_ROLES].reshape(Bq, T, N_ROLES), axis=-1)
    return ph_logits, bl_logits, role_w, block_mem


# ---------------------------------------------------------------------------
# Losses (plain-JAX glue, matching torch semantics)
# ---------------------------------------------------------------------------
def cross_entropy_ignore0(logits, targets):
    logz = jax.scipy.special.logsumexp(logits, axis=-1)
    gold = jnp.take_along_axis(logits, targets[:, None], axis=-1)[:, 0]
    nll = logz - gold
    m = (targets != 0).astype(jnp.float32)
    denom = jnp.maximum(jnp.sum(m), 1.0)   # guard: all-ignored batch would otherwise NaN
    return jnp.sum(nll * m) / denom


def bce_with_logits(x, z):
    return jnp.mean(jnp.maximum(x, 0.0) - x * z + jnp.log1p(jnp.exp(-jnp.abs(x))))


def end_to_end_forward(params, text_ids, phoneme_tgt, silence_mask, latents,
                       loss_weights=(1.0, 0.5, 1.0)):
    ph_logits, bl_logits, role_w, block_mem = composer_forward(params["composer"], text_ids)
    block_mem = block_mem[:, : latents.shape[1]]
    recon = autoregressor_forward(params["decoder"], latents, block_mem)

    Bq, S, P, V = ph_logits.shape
    ph_pred = jnp.transpose(ph_logits, (0, 1, 3, 2)).reshape(-1, V)
    ph_true = phoneme_tgt.reshape(-1)
    loss_ph = cross_entropy_ignore0(ph_pred, ph_true)
    loss_bl = bce_with_logits(bl_logits, silence_mask)

    res_pred = recon[:, 1:] - latents[:, :-1]
    res_true = latents[:, 1:] - latents[:, :-1]
    loss_lat = jnp.mean(jnp.abs(res_pred - res_true))

    w_ph, w_bl, w_lat = loss_weights
    total = w_ph * loss_ph + w_bl * loss_bl + w_lat * loss_lat
    return {
        "total_loss": total,
        "loss_phoneme": loss_ph,
        "loss_blank": loss_bl,
        "loss_latent": loss_lat,
        "phoneme_logits": ph_logits,
        "blank_logits": bl_logits,
        "role_weights": role_w,
        "recon_latents": recon,
    }


# ---------------------------------------------------------------------------
# Deterministic parameter initialization
# ---------------------------------------------------------------------------
def _w(key, shape, scale=0.02):
    return jax.random.normal(key, shape, jnp.float32) * scale


def init_mha(key, d, n_heads):
    dh = d // n_heads
    kq, kk, kv, ko = jax.random.split(key, 4)
    zb = lambda: jnp.zeros((n_heads, 1, dh), jnp.float32)
    return {
        "wq": _w(kq, (n_heads, d, dh)), "bq": zb(),
        "wk": _w(kk, (n_heads, d, dh)), "bk": zb(),
        "wv": _w(kv, (n_heads, d, dh)), "bv": zb(),
        "wo": _w(ko, (n_heads, dh, d)), "bo": jnp.zeros((1, d), jnp.float32),
    }


def init_decoder_layer(key, d, n_heads):
    ksa, kca, k1, k2 = jax.random.split(key, 4)
    ln_g = jnp.ones((1, d), jnp.float32)
    ln_b = jnp.zeros((1, d), jnp.float32)
    return {
        "sa": init_mha(ksa, d, n_heads),
        "ca": init_mha(kca, d, n_heads),
        "w1": _w(k1, (d, 2 * d)), "b1": jnp.zeros((1, 2 * d), jnp.float32),
        "w2": _w(k2, (2 * d, d)), "b2": jnp.zeros((1, d), jnp.float32),
        "ln1g": ln_g, "ln1b": ln_b,
        "ln2g": ln_g, "ln2b": ln_b,
        "ln3g": ln_g, "ln3b": ln_b,
    }


def init_autoregressor(key):
    keys = jax.random.split(key, 7 + 2 * N_LAYERS)
    it = iter(keys)
    p = {}
    p["chan_emb"] = jax.random.normal(next(it), (C, HW), jnp.float32)
    p["time_pos"] = jax.random.normal(next(it), (1, MAX_SEQ, HW), jnp.float32) / math.sqrt(HW)
    p["tp1"] = _w(next(it), (C * HW, 4 * D_MODEL)); p["tb1"] = jnp.zeros((1, 4 * D_MODEL), jnp.float32)
    p["tp2"] = _w(next(it), (4 * D_MODEL, D_MODEL)); p["tb2"] = jnp.zeros((1, D_MODEL), jnp.float32)
    p["blocks_global"] = [init_decoder_layer(next(it), D_MODEL, N_HEADS) for _ in range(N_LAYERS)]
    p["blocks_local"] = [init_decoder_layer(next(it), D_MODEL, N_HEADS) for _ in range(N_LAYERS)]
    p["fuse"] = init_decoder_layer(next(it), D_MODEL, N_HEADS)
    p["rp1"] = _w(next(it), (D_MODEL, 4 * C * HW)); p["rb1"] = jnp.zeros((1, 4 * C * HW), jnp.float32)
    p["rp2"] = _w(next(it), (4 * C * HW, C * HW)); p["rb2"] = jnp.zeros((1, C * HW), jnp.float32)
    p["delta_scale"] = jnp.full((C,), 0.1, jnp.float32)
    return p


def init_composer(key):
    keys = jax.random.split(key, 6)
    w_mem = _w(keys[2], (D_MODEL, D_MODEL))
    w_ph = _w(keys[3], (D_MODEL, P_PHON * V_PHON))
    w_bl = _w(keys[4], (D_MODEL, 1))
    w_role = _w(keys[5], (D_MODEL, N_ROLES))
    pad_n = COMPOSER_HEAD_N - (D_MODEL + P_PHON * V_PHON + 1 + N_ROLES)
    w_heads = jnp.concatenate(
        [w_mem, w_ph, w_bl, w_role, jnp.zeros((D_MODEL, pad_n), jnp.float32)], axis=1)
    return {
        "emb": jax.random.normal(keys[0], (VOCAB_TEXT, D_TEXT), jnp.float32) * 0.02,
        "w_h": _w(keys[1], (D_TEXT, D_MODEL)),
        "b_h": jnp.zeros((1, D_MODEL), jnp.float32),
        "w_heads": w_heads,
        "b_heads": jnp.zeros((1, COMPOSER_HEAD_N), jnp.float32),
    }


def init_params(key):
    kc, kd = jax.random.split(key)
    return {"composer": init_composer(kc), "decoder": init_autoregressor(kd)}


# ---------------------------------------------------------------------------
if __name__ == "__main__":
    key = jax.random.PRNGKey(0)
    k_par, k_in = jax.random.split(key)
    params = init_params(k_par)

    ks = jax.random.split(k_in, 4)
    text_ids = jax.random.randint(ks[0], (B, T_TEXT), 0, VOCAB_TEXT)
    phoneme_tgt = jax.random.randint(ks[1], (B, T_TEXT, P_PHON), 0, V_PHON)
    silence_mask = (jax.random.uniform(ks[2], (B, T_TEXT)) > 0.5).astype(jnp.float32)
    latents = jax.random.normal(ks[3], (B, S_LAT, C, H, W), jnp.float32)

    out = jax.jit(end_to_end_forward)(params, text_ids, phoneme_tgt, silence_mask, latents)
    jax.block_until_ready(out)
    assert out["recon_latents"].shape == (B, S_LAT, C, H, W)
    assert jnp.isfinite(out["total_loss"])
    print("KERNEL_OK")
</pallas_src>

<mosaic_0001>
module attributes {stable_mosaic.version = 11 : i64} {
  func.func @_mlp2_kernel(%arg0: memref<16x32xf32, #tpu.memory_space<vmem>>, %arg1: memref<32x64xf32, #tpu.memory_space<vmem>>, %arg2: memref<1x64xf32, #tpu.memory_space<vmem>>, %arg3: memref<64x256xf32, #tpu.memory_space<vmem>>, %arg4: memref<1x256xf32, #tpu.memory_space<vmem>>, %arg5: memref<16x256xf32, #tpu.memory_space<vmem>>) attributes {dimension_semantics = [], scalar_prefetch = 0 : i64, scratch_operands = 0 : i64, tpu.core_type = #tpu.core_type<tc>} {
    %c0 = arith.constant 0 : index
    %c0_0 = arith.constant 0 : index
    %0 = vector.load %arg0[%c0, %c0_0] : memref<16x32xf32, #tpu.memory_space<vmem>>, vector<16x32xf32>
    %c0_1 = arith.constant 0 : index
    %c0_2 = arith.constant 0 : index
    %1 = vector.load %arg1[%c0_1, %c0_2] : memref<32x64xf32, #tpu.memory_space<vmem>>, vector<32x64xf32>
    %cst = arith.constant dense<0.000000e+00> : vector<16x64xf32>
    %2 = tpu.matmul %0, %1, %cst {dimension_numbers = #tpu.dot_dimension_numbers<[1], [0], [0], [1], [0, 0, 1, 1], [], []>} : vector<16x32xf32>, vector<32x64xf32>, vector<16x64xf32> -> vector<16x64xf32>
    %c0_3 = arith.constant 0 : index
    %c0_4 = arith.constant 0 : index
    %3 = vector.load %arg2[%c0_3, %c0_4] : memref<1x64xf32, #tpu.memory_space<vmem>>, vector<1x64xf32>
    %4 = vector.broadcast %3 : vector<1x64xf32> to vector<16x64xf32>
    %5 = arith.addf %2, %4 : vector<16x64xf32>
    %cst_5 = arith.constant 5.000000e-01 : f32
    %6 = vector.broadcast %cst_5 : f32 to vector<16x64xf32>
    %7 = arith.mulf %6, %5 : vector<16x64xf32>
    %cst_6 = arith.constant 4.471500e-02 : f32
    %8 = vector.broadcast %cst_6 : f32 to vector<16x64xf32>
    %9 = arith.mulf %8, %5 : vector<16x64xf32>
    %10 = arith.mulf %9, %5 : vector<16x64xf32>
    %11 = arith.mulf %10, %5 : vector<16x64xf32>
    %12 = arith.addf %5, %11 : vector<16x64xf32>
    %cst_7 = arith.constant 0.797884583 : f32
    %13 = vector.broadcast %cst_7 : f32 to vector<16x64xf32>
    %14 = arith.mulf %13, %12 : vector<16x64xf32>
    %15 = math.tanh %14 : vector<16x64xf32>
    %cst_8 = arith.constant 1.000000e+00 : f32
    %16 = vector.broadcast %cst_8 : f32 to vector<16x64xf32>
    %17 = arith.addf %16, %15 : vector<16x64xf32>
    %18 = arith.mulf %7, %17 : vector<16x64xf32>
    %c0_9 = arith.constant 0 : index
    %c0_10 = arith.constant 0 : index
    %19 = vector.load %arg3[%c0_9, %c0_10] : memref<64x256xf32, #tpu.memory_space<vmem>>, vector<64x256xf32>
    %cst_11 = arith.constant dense<0.000000e+00> : vector<16x256xf32>
    %20 = tpu.matmul %18, %19, %cst_11 {dimension_numbers = #tpu.dot_dimension_numbers<[1], [0], [0], [1], [0, 0, 1, 1], [], []>} : vector<16x64xf32>, vector<64x256xf32>, vector<16x256xf32> -> vector<16x256xf32>
    %c0_12 = arith.constant 0 : index
    %c0_13 = arith.constant 0 : index
    %21 = vector.load %arg4[%c0_12, %c0_13] : memref<1x256xf32, #tpu.memory_space<vmem>>, vector<1x256xf32>
    %22 = vector.broadcast %21 : vector<1x256xf32> to vector<16x256xf32>
    %23 = arith.addf %20, %22 : vector<16x256xf32>
    %c0_14 = arith.constant 0 : index
    %c0_15 = arith.constant 0 : index
    %24 = vector.load %arg5[%c0_14, %c0_15] : memref<16x256xf32, #tpu.memory_space<vmem>>, vector<16x256xf32>
    tpu.vector_store %arg5[%c0_14, %c0_15], %23 {strides = array<i32>} : memref<16x256xf32, #tpu.memory_space<vmem>>, vector<16x256xf32>,
    return
  }
}

module attributes {stable_mosaic.version = 11 : i64} {
  func.func @_mlp2_kernel(%arg0: memref<16x256xf32, #tpu.memory_space<vmem>>, %arg1: memref<256x256xf32, #tpu.memory_space<vmem>>, %arg2: memref<1x256xf32, #tpu.memory_space<vmem>>, %arg3: memref<256x64xf32, #tpu.memory_space<vmem>>, %arg4: memref<1x64xf32, #tpu.memory_space<vmem>>, %arg5: memref<16x64xf32, #tpu.memory_space<vmem>>) attributes {dimension_semantics = [], scalar_prefetch = 0 : i64, scratch_operands = 0 : i64, tpu.core_type = #tpu.core_type<tc>} {
    %c0 = arith.constant 0 : index
    %c0_0 = arith.constant 0 : index
    %0 = vector.load %arg0[%c0, %c0_0] : memref<16x256xf32, #tpu.memory_space<vmem>>, vector<16x256xf32>
    %c0_1 = arith.constant 0 : index
    %c0_2 = arith.constant 0 : index
    %1 = vector.load %arg1[%c0_1, %c0_2] : memref<256x256xf32, #tpu.memory_space<vmem>>, vector<256x256xf32>
    %cst = arith.constant dense<0.000000e+00> : vector<16x256xf32>
    %2 = tpu.matmul %0, %1, %cst {dimension_numbers = #tpu.dot_dimension_numbers<[1], [0], [0], [1], [0, 0, 1, 1], [], []>} : vector<16x256xf32>, vector<256x256xf32>, vector<16x256xf32> -> vector<16x256xf32>
    %c0_3 = arith.constant 0 : index
    %c0_4 = arith.constant 0 : index
    %3 = vector.load %arg2[%c0_3, %c0_4] : memref<1x256xf32, #tpu.memory_space<vmem>>, vector<1x256xf32>
    %4 = vector.broadcast %3 : vector<1x256xf32> to vector<16x256xf32>
    %5 = arith.addf %2, %4 : vector<16x256xf32>
    %cst_5 = arith.constant 5.000000e-01 : f32
    %6 = vector.broadcast %cst_5 : f32 to vector<16x256xf32>
    %7 = arith.mulf %6, %5 : vector<16x256xf32>
    %cst_6 = arith.constant 4.471500e-02 : f32
    %8 = vector.broadcast %cst_6 : f32 to vector<16x256xf32>
    %9 = arith.mulf %8, %5 : vector<16x256xf32>
    %10 = arith.mulf %9, %5 : vector<16x256xf32>
    %11 = arith.mulf %10, %5 : vector<16x256xf32>
    %12 = arith.addf %5, %11 : vector<16x256xf32>
    %cst_7 = arith.constant 0.797884583 : f32
    %13 = vector.broadcast %cst_7 : f32 to vector<16x256xf32>
    %14 = arith.mulf %13, %12 : vector<16x256xf32>
    %15 = math.tanh %14 : vector<16x256xf32>
    %cst_8 = arith.constant 1.000000e+00 : f32
    %16 = vector.broadcast %cst_8 : f32 to vector<16x256xf32>
    %17 = arith.addf %16, %15 : vector<16x256xf32>
    %18 = arith.mulf %7, %17 : vector<16x256xf32>
    %c0_9 = arith.constant 0 : index
    %c0_10 = arith.constant 0 : index
    %19 = vector.load %arg3[%c0_9, %c0_10] : memref<256x64xf32, #tpu.memory_space<vmem>>, vector<256x64xf32>
    %cst_11 = arith.constant dense<0.000000e+00> : vector<16x64xf32>
    %20 = tpu.matmul %18, %19, %cst_11 {dimension_numbers = #tpu.dot_dimension_numbers<[1], [0], [0], [1], [0, 0, 1, 1], [], []>} : vector<16x256xf32>, vector<256x64xf32>, vector<16x64xf32> -> vector<16x64xf32>
    %c0_12 = arith.constant 0 : index
    %c0_13 = arith.constant 0 : index
    %21 = vector.load %arg4[%c0_12, %c0_13] : memref<1x64xf32, #tpu.memory_space<vmem>>, vector<1x64xf32>
    %22 = vector.broadcast %21 : vector<1x64xf32> to vector<16x64xf32>
    %23 = arith.addf %20, %22 : vector<16x64xf32>
    %c0_14 = arith.constant 0 : index
    %c0_15 = arith.constant 0 : index
    %24 = vector.load %arg5[%c0_14, %c0_15] : memref<16x64xf32, #tpu.memory_space<vmem>>, vector<16x64xf32>
    tpu.vector_store %arg5[%c0_14, %c0_15], %23 {strides = array<i32>} : memref<16x64xf32, #tpu.memory_space<vmem>>, vector<16x64xf32>,
    return
  }
}

module attributes {stable_mosaic.version = 11 : i64} {
  func.func @_mlp2_kernel(%arg0: memref<16x64xf32, #tpu.memory_space<vmem>>, %arg1: memref<64x1024xf32, #tpu.memory_space<vmem>>, %arg2: memref<1x1024xf32, #tpu.memory_space<vmem>>, %arg3: memref<1024x256xf32, #tpu.memory_space<vmem>>, %arg4: memref<1x256xf32, #tpu.memory_space<vmem>>, %arg5: memref<16x256xf32, #tpu.memory_space<vmem>>) attributes {dimension_semantics = [], scalar_prefetch = 0 : i64, scratch_operands = 0 : i64, tpu.core_type = #tpu.core_type<tc>} {
    %c0 = arith.constant 0 : index
    %c0_0 = arith.constant 0 : index
    %0 = vector.load %arg0[%c0, %c0_0] : memref<16x64xf32, #tpu.memory_space<vmem>>, vector<16x64xf32>
    %c0_1 = arith.constant 0 : index
    %c0_2 = arith.constant 0 : index
    %1 = vector.load %arg1[%c0_1, %c0_2] : memref<64x1024xf32, #tpu.memory_space<vmem>>, vector<64x1024xf32>
    %cst = arith.constant dense<0.000000e+00> : vector<16x1024xf32>
    %2 = tpu.matmul %0, %1, %cst {dimension_numbers = #tpu.dot_dimension_numbers<[1], [0], [0], [1], [0, 0, 1, 1], [], []>} : vector<16x64xf32>, vector<64x1024xf32>, vector<16x1024xf32> -> vector<16x1024xf32>
    %c0_3 = arith.constant 0 : index
    %c0_4 = arith.constant 0 : index
    %3 = vector.load %arg2[%c0_3, %c0_4] : memref<1x1024xf32, #tpu.memory_space<vmem>>, vector<1x1024xf32>
    %4 = vector.broadcast %3 : vector<1x1024xf32> to vector<16x1024xf32>
    %5 = arith.addf %2, %4 : vector<16x1024xf32>
    %cst_5 = arith.constant 5.000000e-01 : f32
    %6 = vector.broadcast %cst_5 : f32 to vector<16x1024xf32>
    %7 = arith.mulf %6, %5 : vector<16x1024xf32>
    %cst_6 = arith.constant 4.471500e-02 : f32
    %8 = vector.broadcast %cst_6 : f32 to vector<16x1024xf32>
    %9 = arith.mulf %8, %5 : vector<16x1024xf32>
    %10 = arith.mulf %9, %5 : vector<16x1024xf32>
    %11 = arith.mulf %10, %5 : vector<16x1024xf32>
    %12 = arith.addf %5, %11 : vector<16x1024xf32>
    %cst_7 = arith.constant 0.797884583 : f32
    %13 = vector.broadcast %cst_7 : f32 to vector<16x1024xf32>
    %14 = arith.mulf %13, %12 : vector<16x1024xf32>
    %15 = math.tanh %14 : vector<16x1024xf32>
    %cst_8 = arith.constant 1.000000e+00 : f32
    %16 = vector.broadcast %cst_8 : f32 to vector<16x1024xf32>
    %17 = arith.addf %16, %15 : vector<16x1024xf32>
    %18 = arith.mulf %7, %17 : vector<16x1024xf32>
    %c0_9 = arith.constant 0 : index
    %c0_10 = arith.constant 0 : index
    %19 = vector.load %arg3[%c0_9, %c0_10] : memref<1024x256xf32, #tpu.memory_space<vmem>>, vector<1024x256xf32>
    %cst_11 = arith.constant dense<0.000000e+00> : vector<16x256xf32>
    %20 = tpu.matmul %18, %19, %cst_11 {dimension_numbers = #tpu.dot_dimension_numbers<[1], [0], [0], [1], [0, 0, 1, 1], [], []>} : vector<16x1024xf32>, vector<1024x256xf32>, vector<16x256xf32> -> vector<16x256xf32>
    %c0_12 = arith.constant 0 : index
    %c0_13 = arith.constant 0 : index
    %21 = vector.load %arg4[%c0_12, %c0_13] : memref<1x256xf32, #tpu.memory_space<vmem>>, vector<1x256xf32>
    %22 = vector.broadcast %21 : vector<1x256xf32> to vector<16x256xf32>
    %23 = arith.addf %20, %22 : vector<16x256xf32>
    %c0_14 = arith.constant 0 : index
    %c0_15 = arith.constant 0 : index
    %24 = vector.load %arg5[%c0_14, %c0_15] : memref<16x256xf32, #tpu.memory_space<vmem>>, vector<16x256xf32>
    tpu.vector_store %arg5[%c0_14, %c0_15], %23 {strides = array<i32>} : memref<16x256xf32, #tpu.memory_space<vmem>>, vector<16x256xf32>,
    return
  }
}

module attributes {stable_mosaic.version = 11 : i64} {
  func.func @_decoder_layer_kernel(%arg0: memref<16x64xf32, #tpu.memory_space<vmem>>, %arg1: memref<16x64xf32, #tpu.memory_space<vmem>>, %arg2: memref<16x16xf32, #tpu.memory_space<vmem>>, %arg3: memref<16x16xf32, #tpu.memory_space<vmem>>, %arg4: memref<4x64x16xf32, #tpu.memory_space<vmem>>, %arg5: memref<4x1x16xf32, #tpu.memory_space<vmem>>, %arg6: memref<4x64x16xf32, #tpu.memory_space<vmem>>, %arg7: memref<4x1x16xf32, #tpu.memory_space<vmem>>, %arg8: memref<4x64x16xf32, #tpu.memory_space<vmem>>, %arg9: memref<4x1x16xf32, #tpu.memory_space<vmem>>, %arg10: memref<4x16x64xf32, #tpu.memory_space<vmem>>, %arg11: memref<1x64xf32, #tpu.memory_space<vmem>>, %arg12: memref<4x64x16xf32, #tpu.memory_space<vmem>>, %arg13: memref<4x1x16xf32, #tpu.memory_space<vmem>>, %arg14: memref<4x64x16xf32, #tpu.memory_space<vmem>>, %arg15: memref<4x1x16xf32, #tpu.memory_space<vmem>>, %arg16: memref<4x64x16xf32, #tpu.memory_space<vmem>>, %arg17: memref<4x1x16xf32, #tpu.memory_space<vmem>>, %arg18: memref<4x16x64xf32, #tpu.memory_space<vmem>>, %arg19: memref<1x64xf32, #tpu.memory_space<vmem>>, %arg20: memref<64x128xf32, #tpu.memory_space<vmem>>, %arg21: memref<1x128xf32, #tpu.memory_space<vmem>>, %arg22: memref<128x64xf32, #tpu.memory_space<vmem>>, %arg23: memref<1x64xf32, #tpu.memory_space<vmem>>, %arg24: memref<1x64xf32, #tpu.memory_space<vmem>>, %arg25: memref<1x64xf32, #tpu.memory_space<vmem>>, %arg26: memref<1x64xf32, #tpu.memory_space<vmem>>, %arg27: memref<1x64xf32, #tpu.memory_space<vmem>>, %arg28: memref<1x64xf32, #tpu.memory_space<vmem>>, %arg29: memref<1x64xf32, #tpu.memory_space<vmem>>, %arg30: memref<16x64xf32, #tpu.memory_space<vmem>>) attributes {dimension_semantics = [], scalar_prefetch = 0 : i64, scratch_operands = 0 : i64, tpu.core_type = #tpu.core_type<tc>} {
    %c0 = arith.constant 0 : index
    %c0_0 = arith.constant 0 : index
    %0 = vector.load %arg0[%c0, %c0_0] : memref<16x64xf32, #tpu.memory_space<vmem>>, vector<16x64xf32>
    %c0_1 = arith.constant 0 : index
    %c0_2 = arith.constant 0 : index
    %1 = vector.load %arg1[%c0_1, %c0_2] : memref<16x64xf32, #tpu.memory_space<vmem>>, vector<16x64xf32>
    %c0_3 = arith.constant 0 : index
    %c0_4 = arith.constant 0 : index
    %2 = vector.load %arg2[%c0_3, %c0_4] : memref<16x16xf32, #tpu.memory_space<vmem>>, vector<16x16xf32>
    %c0_5 = arith.constant 0 : index
    %c0_6 = arith.constant 0 : index
    %3 = vector.load %arg3[%c0_5, %c0_6] : memref<16x16xf32, #tpu.memory_space<vmem>>, vector<16x16xf32>
    %c0_7 = arith.constant 0 : index
    %c0_8 = arith.constant 0 : index
    %4 = vector.load %arg24[%c0_7, %c0_8] : memref<1x64xf32, #tpu.memory_space<vmem>>, vector<1x64xf32>
    %c0_9 = arith.constant 0 : index
    %c0_10 = arith.constant 0 : index
    %5 = vector.load %arg25[%c0_9, %c0_10] : memref<1x64xf32, #tpu.memory_space<vmem>>, vector<1x64xf32>
    %cst = arith.constant dense<0.000000e+00> : vector<16xf32>
    %6 = vector.multi_reduction <add>, %0, %cst [1] : vector<16x64xf32> to vector<16xf32>
    %7 = vector.shape_cast %6 : vector<16xf32> to vector<16x1xf32>
    %cst_11 = arith.constant 6.400000e+01 : f32
    %8 = vector.broadcast %cst_11 : f32 to vector<16x1xf32>
    %9 = arith.divf %7, %8 : vector<16x1xf32>
    %10 = vector.broadcast %9 : vector<16x1xf32> to vector<16x64xf32>
    %11 = arith.subf %0, %10 : vector<16x64xf32>
    %12 = arith.mulf %11, %11 : vector<16x64xf32>
    %cst_12 = arith.constant dense<0.000000e+00> : vector<16xf32>
    %13 = vector.multi_reduction <add>, %12, %cst_12 [1] : vector<16x64xf32> to vector<16xf32>
    %14 = vector.shape_cast %13 : vector<16xf32> to vector<16x1xf32>
    %cst_13 = arith.constant 6.400000e+01 : f32
    %15 = vector.broadcast %cst_13 : f32 to vector<16x1xf32>
    %16 = arith.divf %14, %15 : vector<16x1xf32>
    %17 = vector.broadcast %9 : vector<16x1xf32> to vector<16x64xf32>
    %18 = arith.subf %0, %17 : vector<16x64xf32>
    %cst_14 = arith.constant 9.99999974E-6 : f32
    %19 = vector.broadcast %cst_14 : f32 to vector<16x1xf32>
    %20 = arith.addf %16, %19 : vector<16x1xf32>
    %21 = math.rsqrt %20 : vector<16x1xf32>
    %22 = vector.broadcast %21 : vector<16x1xf32> to vector<16x64xf32>
    %23 = arith.mulf %18, %22 : vector<16x64xf32>
    %24 = vector.broadcast %4 : vector<1x64xf32> to vector<16x64xf32>
    %25 = arith.mulf %23, %24 : vector<16x64xf32>
    %26 = vector.broadcast %5 : vector<1x64xf32> to vector<16x64xf32>
    %27 = arith.addf %25, %26 : vector<16x64xf32>
    %c0_15 = arith.constant 0 : index
    %c0_16 = arith.constant 0 : index
    %c0_17 = arith.constant 0 : index
    %28 = vector.load %arg4[%c0_15, %c0_16, %c0_17] : memref<4x64x16xf32, #tpu.memory_space<vmem>>, vector<1x64x16xf32>
    %29 = vector.shape_cast %28 : vector<1x64x16xf32> to vector<64x16xf32>
    %cst_18 = arith.constant dense<0.000000e+00> : vector<16x16xf32>
    %30 = tpu.matmul %27, %29, %cst_18 {dimension_numbers = #tpu.dot_dimension_numbers<[1], [0], [0], [1], [0, 0, 1, 1], [], []>} : vector<16x64xf32>, vector<64x16xf32>, vector<16x16xf32> -> vector<16x16xf32>
    %c0_19 = arith.constant 0 : index
    %c0_20 = arith.constant 0 : index
    %c0_21 = arith.constant 0 : index
    %31 = vector.load %arg5[%c0_19, %c0_20, %c0_21] : memref<4x1x16xf32, #tpu.memory_space<vmem>>, vector<1x1x16xf32>
    %32 = vector.shape_cast %31 : vector<1x1x16xf32> to vector<1x16xf32>
    %33 = vector.broadcast %32 : vector<1x16xf32> to vector<16x16xf32>
    %34 = arith.addf %30, %33 : vector<16x16xf32>
    %c0_22 = arith.constant 0 : index
    %c0_23 = arith.constant 0 : index
    %c0_24 = arith.constant 0 : index
    %35 = vector.load %arg6[%c0_22, %c0_23, %c0_24] : memref<4x64x16xf32, #tpu.memory_space<vmem>>, vector<1x64x16xf32>
    %36 = vector.shape_cast %35 : vector<1x64x16xf32> to vector<64x16xf32>
    %cst_25 = arith.constant dense<0.000000e+00> : vector<16x16xf32>
    %37 = tpu.matmul %27, %36, %cst_25 {dimension_numbers = #tpu.dot_dimension_numbers<[1], [0], [0], [1], [0, 0, 1, 1], [], []>} : vector<16x64xf32>, vector<64x16xf32>, vector<16x16xf32> -> vector<16x16xf32>
    %c0_26 = arith.constant 0 : index
    %c0_27 = arith.constant 0 : index
    %c0_28 = arith.constant 0 : index
    %38 = vector.load %arg7[%c0_26, %c0_27, %c0_28] : memref<4x1x16xf32, #tpu.memory_space<vmem>>, vector<1x1x16xf32>
    %39 = vector.shape_cast %38 : vector<1x1x16xf32> to vector<1x16xf32>
    %40 = vector.broadcast %39 : vector<1x16xf32> to vector<16x16xf32>
    %41 = arith.addf %37, %40 : vector<16x16xf32>
    %c0_29 = arith.constant 0 : index
    %c0_30 = arith.constant 0 : index
    %c0_31 = arith.constant 0 : index
    %42 = vector.load %arg8[%c0_29, %c0_30, %c0_31] : memref<4x64x16xf32, #tpu.memory_space<vmem>>, vector<1x64x16xf32>
    %43 = vector.shape_cast %42 : vector<1x64x16xf32> to vector<64x16xf32>
    %cst_32 = arith.constant dense<0.000000e+00> : vector<16x16xf32>
    %44 = tpu.matmul %27, %43, %cst_32 {dimension_numbers = #tpu.dot_dimension_numbers<[1], [0], [0], [1], [0, 0, 1, 1], [], []>} : vector<16x64xf32>, vector<64x16xf32>, vector<16x16xf32> -> vector<16x16xf32>
    %c0_33 = arith.constant 0 : index
    %c0_34 = arith.constant 0 : index
    %c0_35 = arith.constant 0 : index
    %45 = vector.load %arg9[%c0_33, %c0_34, %c0_35] : memref<4x1x16xf32, #tpu.memory_space<vmem>>, vector<1x1x16xf32>
    %46 = vector.shape_cast %45 : vector<1x1x16xf32> to vector<1x16xf32>
    %47 = vector.broadcast %46 : vector<1x16xf32> to vector<16x16xf32>
    %48 = arith.addf %44, %47 : vector<16x16xf32>
    %cst_36 = arith.constant dense<0.000000e+00> : vector<16x16xf32>
    %49 = tpu.matmul %34, %41, %cst_36 {dimension_numbers = #tpu.dot_dimension_numbers<[1], [1], [0], [0], [0, 0, 1, 0], [], []>} : vector<16x16xf32>, vector<16x16xf32>, vector<16x16xf32> -> vector<16x16xf32>
    %cst_37 = arith.constant 2.500000e-01 : f32
    %50 = vector.broadcast %cst_37 : f32 to vector<16x16xf32>
    %51 = arith.mulf %49, %50 : vector<16x16xf32>
    %52 = arith.addf %51, %2 : vector<16x16xf32>
    %cst_38 = arith.constant dense<0xFF800000> : vector<16xf32>
    %53 = vector.multi_reduction <maximumf>, %52, %cst_38 [1] : vector<16x16xf32> to vector<16xf32>
    %54 = vector.shape_cast %53 : vector<16xf32> to vector<16x1xf32>
    %55 = vector.broadcast %54 : vector<16x1xf32> to vector<16x16xf32>
    %56 = arith.subf %52, %55 : vector<16x16xf32>
    %57 = math.exp %56 : vector<16x16xf32>
    %cst_39 = arith.constant dense<0.000000e+00> : vector<16xf32>
    %58 = vector.multi_reduction <add>, %57, %cst_39 [1] : vector<16x16xf32> to vector<16xf32>
    %59 = vector.shape_cast %58 : vector<16xf32> to vector<16x1xf32>
    %60 = tpu.reciprocal %59 {approx = true} : vector<16x1xf32> -> vector<16x1xf32>
    %61 = vector.broadcast %60 : vector<16x1xf32> to vector<16x16xf32>
    %62 = arith.mulf %57, %61 : vector<16x16xf32>
    %cst_40 = arith.constant dense<0.000000e+00> : vector<16x16xf32>
    %63 = tpu.matmul %62, %48, %cst_40 {dimension_numbers = #tpu.dot_dimension_numbers<[1], [0], [0], [1], [0, 0, 1, 1], [], []>} : vector<16x16xf32>, vector<16x16xf32>, vector<16x16xf32> -> vector<16x16xf32>
    %c0_41 = arith.constant 0 : index
    %c0_42 = arith.constant 0 : index
    %c0_43 = arith.constant 0 : index
    %64 = vector.load %arg10[%c0_41, %c0_42, %c0_43] : memref<4x16x64xf32, #tpu.memory_space<vmem>>, vector<1x16x64xf32>
    %65 = vector.shape_cast %64 : vector<1x16x64xf32> to vector<16x64xf32>
    %cst_44 = arith.constant dense<0.000000e+00> : vector<16x64xf32>
    %66 = tpu.matmul %63, %65, %cst_44 {dimension_numbers = #tpu.dot_dimension_numbers<[1], [0], [0], [1], [0, 0, 1, 1], [], []>} : vector<16x16xf32>, vector<16x64xf32>, vector<16x64xf32> -> vector<16x64xf32>
    %c1 = arith.constant 1 : index
    %c0_45 = arith.constant 0 : index
    %c0_46 = arith.constant 0 : index
    %67 = vector.load %arg4[%c1, %c0_45, %c0_46] : memref<4x64x16xf32, #tpu.memory_space<vmem>>, vector<1x64x16xf32>
    %68 = vector.shape_cast %67 : vector<1x64x16xf32> to vector<64x16xf32>
    %cst_47 = arith.constant dense<0.000000e+00> : vector<16x16xf32>
    %69 = tpu.matmul %27, %68, %cst_47 {dimension_numbers = #tpu.dot_dimension_numbers<[1], [0], [0], [1], [0, 0, 1, 1], [], []>} : vector<16x64xf32>, vector<64x16xf32>, vector<16x16xf32> -> vector<16x16xf32>
    %c1_48 = arith.constant 1 : index
    %c0_49 = arith.constant 0 : index
    %c0_50 = arith.constant 0 : index
    %70 = vector.load %arg5[%c1_48, %c0_49, %c0_50] : memref<4x1x16xf32, #tpu.memory_space<vmem>>, vector<1x1x16xf32>
    %71 = vector.shape_cast %70 : vector<1x1x16xf32> to vector<1x16xf32>
    %72 = vector.broadcast %71 : vector<1x16xf32> to vector<16x16xf32>
    %73 = arith.addf %69, %72 : vector<16x16xf32>
    %c1_51 = arith.constant 1 : index
    %c0_52 = arith.constant 0 : index
    %c0_53 = arith.constant 0 : index
    %74 = vector.load %arg6[%c1_51, %c0_52, %c0_53] : memref<4x64x16xf32, #tpu.memory_space<vmem>>, vector<1x64x16xf32>
    %75 = vector.shape_cast %74 : vector<1x64x16xf32> to vector<64x16xf32>
    %cst_54 = arith.constant dense<0.000000e+00> : vector<16x16xf32>
    %76 = tpu.matmul %27, %75, %cst_54 {dimension_numbers = #tpu.dot_dimension_numbers<[1], [0], [0], [1], [0, 0, 1, 1], [], []>} : vector<16x64xf32>, vector<64x16xf32>, vector<16x16xf32> -> vector<16x16xf32>
    %c1_55 = arith.constant 1 : index
    %c0_56 = arith.constant 0 : index
    %c0_57 = arith.constant 0 : index
    %77 = vector.load %arg7[%c1_55, %c0_56, %c0_57] : memref<4x1x16xf32, #tpu.memory_space<vmem>>, vector<1x1x16xf32>
    %78 = vector.shape_cast %77 : vector<1x1x16xf32> to vector<1x16xf32>
    %79 = vector.broadcast %78 : vector<1x16xf32> to vector<16x16xf32>
    %80 = arith.addf %76, %79 : vector<16x16xf32>
    %c1_58 = arith.constant 1 : index
    %c0_59 = arith.constant 0 : index
    %c0_60 = arith.constant 0 : index
    %81 = vector.load %arg8[%c1_58, %c0_59, %c0_60] : memref<4x64x16xf32, #tpu.memory_space<vmem>>, vector<1x64x16xf32>
    %82 = vector.shape_cast %81 : vector<1x64x16xf32> to vector<64x16xf32>
    %cst_61 = arith.constant dense<0.000000e+00> : vector<16x16xf32>
    %83 = tpu.matmul %27, %82, %cst_61 {dimension_numbers = #tpu.dot_dimension_numbers<[1], [0], [0], [1], [0, 0, 1, 1], [], []>} : vector<16x64xf32>, vector<64x16xf32>, vector<16x16xf32> -> vector<16x16xf32>
    %c1_62 = arith.constant 1 : index
    %c0_63 = arith.constant 0 : index
    %c0_64 = arith.constant 0 : index
    %84 = vector.load %arg9[%c1_62, %c0_63, %c0_64] : memref<4x1x16xf32, #tpu.memory_space<vmem>>, vector<1x1x16xf32>
    %85 = vector.shape_cast %84 : vector<1x1x16xf32> to vector<1x16xf32>
    %86 = vector.broadcast %85 : vector<1x16xf32> to vector<16x16xf32>
    %87 = arith.addf %83, %86 : vector<16x16xf32>
    %cst_65 = arith.constant dense<0.000000e+00> : vector<16x16xf32>
    %88 = tpu.matmul %73, %80, %cst_65 {dimension_numbers = #tpu.dot_dimension_numbers<[1], [1], [0], [0], [0, 0, 1, 0], [], []>} : vector<16x16xf32>, vector<16x16xf32>, vector<16x16xf32> -> vector<16x16xf32>
    %cst_66 = arith.constant 2.500000e-01 : f32
    %89 = vector.broadcast %cst_66 : f32 to vector<16x16xf32>
    %90 = arith.mulf %88, %89 : vector<16x16xf32>
    %91 = arith.addf %90, %2 : vector<16x16xf32>
    %cst_67 = arith.constant dense<0xFF800000> : vector<16xf32>
    %92 = vector.multi_reduction <maximumf>, %91, %cst_67 [1] : vector<16x16xf32> to vector<16xf32>
    %93 = vector.shape_cast %92 : vector<16xf32> to vector<16x1xf32>
    %94 = vector.broadcast %93 : vector<16x1xf32> to vector<16x16xf32>
    %95 = arith.subf %91, %94 : vector<16x16xf32>
    %96 = math.exp %95 : vector<16x16xf32>
    %cst_68 = arith.constant dense<0.000000e+00> : vector<16xf32>
    %97 = vector.multi_reduction <add>, %96, %cst_68 [1] : vector<16x16xf32> to vector<16xf32>
    %98 = vector.shape_cast %97 : vector<16xf32> to vector<16x1xf32>
    %99 = tpu.reciprocal %98 {approx = true} : vector<16x1xf32> -> vector<16x1xf32>
    %100 = vector.broadcast %99 : vector<16x1xf32> to vector<16x16xf32>
    %101 = arith.mulf %96, %100 : vector<16x16xf32>
    %cst_69 = arith.constant dense<0.000000e+00> : vector<16x16xf32>
    %102 = tpu.matmul %101, %87, %cst_69 {dimension_numbers = #tpu.dot_dimension_numbers<[1], [0], [0], [1], [0, 0, 1, 1], [], []>} : vector<16x16xf32>, vector<16x16xf32>, vector<16x16xf32> -> vector<16x16xf32>
    %c1_70 = arith.constant 1 : index
    %c0_71 = arith.constant 0 : index
    %c0_72 = arith.constant 0 : index
    %103 = vector.load %arg10[%c1_70, %c0_71, %c0_72] : memref<4x16x64xf32, #tpu.memory_space<vmem>>, vector<1x16x64xf32>
    %104 = vector.shape_cast %103 : vector<1x16x64xf32> to vector<16x64xf32>
    %cst_73 = arith.constant dense<0.000000e+00> : vector<16x64xf32>
    %105 = tpu.matmul %102, %104, %cst_73 {dimension_numbers = #tpu.dot_dimension_numbers<[1], [0], [0], [1], [0, 0, 1, 1], [], []>} : vector<16x16xf32>, vector<16x64xf32>, vector<16x64xf32> -> vector<16x64xf32>
    %106 = arith.addf %66, %105 : vector<16x64xf32>
    %c2 = arith.constant 2 : index
    %c0_74 = arith.constant 0 : index
    %c0_75 = arith.constant 0 : index
    %107 = vector.load %arg4[%c2, %c0_74, %c0_75] : memref<4x64x16xf32, #tpu.memory_space<vmem>>, vector<1x64x16xf32>
    %108 = vector.shape_cast %107 : vector<1x64x16xf32> to vector<64x16xf32>
    %cst_76 = arith.constant dense<0.000000e+00> : vector<16x16xf32>
    %109 = tpu.matmul %27, %108, %cst_76 {dimension_numbers = #tpu.dot_dimension_numbers<[1], [0], [0], [1], [0, 0, 1, 1], [], []>} : vector<16x64xf32>, vector<64x16xf32>, vector<16x16xf32> -> vector<16x16xf32>
    %c2_77 = arith.constant 2 : index
    %c0_78 = arith.constant 0 : index
    %c0_79 = arith.constant 0 : index
    %110 = vector.load %arg5[%c2_77, %c0_78, %c0_79] : memref<4x1x16xf32, #tpu.memory_space<vmem>>, vector<1x1x16xf32>
    %111 = vector.shape_cast %110 : vector<1x1x16xf32> to vector<1x16xf32>
    %112 = vector.broadcast %111 : vector<1x16xf32> to vector<16x16xf32>
    %113 = arith.addf %109, %112 : vector<16x16xf32>
    %c2_80 = arith.constant 2 : index
    %c0_81 = arith.constant 0 : index
    %c0_82 = arith.constant 0 : index
    %114 = vector.load %arg6[%c2_80, %c0_81, %c0_82] : memref<4x64x16xf32, #tpu.memory_space<vmem>>, vector<1x64x16xf32>
    %115 = vector.shape_cast %114 : vector<1x64x16xf32> to vector<64x16xf32>
    %cst_83 = arith.constant dense<0.000000e+00> : vector<16x16xf32>
    %116 = tpu.matmul %27, %115, %cst_83 {dimension_numbers = #tpu.dot_dimension_numbers<[1], [0], [0], [1], [0, 0, 1, 1], [], []>} : vector<16x64xf32>, vector<64x16xf32>, vector<16x16xf32> -> vector<16x16xf32>
    %c2_84 = arith.constant 2 : index
    %c0_85 = arith.constant 0 : index
    %c0_86 = arith.constant 0 : index
    %117 = vector.load %arg7[%c2_84, %c0_85, %c0_86] : memref<4x1x16xf32, #tpu.memory_space<vmem>>, vector<1x1x16xf32>
    %118 = vector.shape_cast %117 : vector<1x1x16xf32> to vector<1x16xf32>
    %119 = vector.broadcast %118 : vector<1x16xf32> to vector<16x16xf32>
    %120 = arith.addf %116, %119 : vector<16x16xf32>
    %c2_87 = arith.constant 2 : index
    %c0_88 = arith.constant 0 : index
    %c0_89 = arith.constant 0 : index
    %121 = vector.load %arg8[%c2_87, %c0_88, %c0_89] : memref<4x64x16xf32, #tpu.memory_space<vmem>>, vector<1x64x16xf32>
    %122 = vector.shape_cast %121 : vector<1x64x16xf32> to vector<64x16xf32>
    %cst_90 = arith.constant dense<0.000000e+00> : vector<16x16xf32>
    %123 = tpu.matmul %27, %122, %cst_90 {dimension_numbers = #tpu.dot_dimension_numbers<[1], [0], [0], [1], [0, 0, 1, 1], [], []>} : vector<16x64xf32>, vector<64x16xf32>, vector<16x16xf32> -> vector<16x16xf32>
    %c2_91 = arith.constant 2 : index
    %c0_92 = arith.constant 0 : index
    %c0_93 = arith.constant 0 : index
    %124 = vector.load %arg9[%c2_91, %c0_92, %c0_93] : memref<4x1x16xf32, #tpu.memory_space<vmem>>, vector<1x1x16xf32>
    %125 = vector.shape_cast %124 : vector<1x1x16xf32> to vector<1x16xf32>
    %126 = vector.broadcast %125 : vector<1x16xf32> to vector<16x16xf32>
    %127 = arith.addf %123, %126 : vector<16x16xf32>
    %cst_94 = arith.constant dense<0.000000e+00> : vector<16x16xf32>
    %128 = tpu.matmul %113, %120, %cst_94 {dimension_numbers = #tpu.dot_dimension_numbers<[1], [1], [0], [0], [0, 0, 1, 0], [], []>} : vector<16x16xf32>, vector<16x16xf32>, vector<16x16xf32> -> vector<16x16xf32>
    %cst_95 = arith.constant 2.500000e-01 : f32
    %129 = vector.broadcast %cst_95 : f32 to vector<16x16xf32>
    %130 = arith.mulf %128, %129 : vector<16x16xf32>
    %131 = arith.addf %130, %2 : vector<16x16xf32>
    %cst_96 = arith.constant dense<0xFF800000> : vector<16xf32>
    %132 = vector.multi_reduction <maximumf>, %131, %cst_96 [1] : vector<16x16xf32> to vector<16xf32>
    %133 = vector.shape_cast %132 : vector<16xf32> to vector<16x1xf32>
    %134 = vector.broadcast %133 : vector<16x1xf32> to vector<16x16xf32>
    %135 = arith.subf %131, %134 : vector<16x16xf32>
    %136 = math.exp %135 : vector<16x16xf32>
    %cst_97 = arith.constant dense<0.000000e+00> : vector<16xf32>
    %137 = vector.multi_reduction <add>, %136, %cst_97 [1] : vector<16x16xf32> to vector<16xf32>
    %138 = vector.shape_cast %137 : vector<16xf32> to vector<16x1xf32>
    %139 = tpu.reciprocal %138 {approx = true} : vector<16x1xf32> -> vector<16x1xf32>
    %140 = vector.broadcast %139 : vector<16x1xf32> to vector<16x16xf32>
    %141 = arith.mulf %136, %140 : vector<16x16xf32>
    %cst_98 = arith.constant dense<0.000000e+00> : vector<16x16xf32>
    %142 = tpu.matmul %141, %127, %cst_98 {dimension_numbers = #tpu.dot_dimension_numbers<[1], [0], [0], [1], [0, 0, 1, 1], [], []>} : vector<16x16xf32>, vector<16x16xf32>, vector<16x16xf32> -> vector<16x16xf32>
    %c2_99 = arith.constant 2 : index
    %c0_100 = arith.constant 0 : index
    %c0_101 = arith.constant 0 : index
    %143 = vector.load %arg10[%c2_99, %c0_100, %c0_101] : memref<4x16x64xf32, #tpu.memory_space<vmem>>, vector<1x16x64xf32>
    %144 = vector.shape_cast %143 : vector<1x16x64xf32> to vector<16x64xf32>
    %cst_102 = arith.constant dense<0.000000e+00> : vector<16x64xf32>
    %145 = tpu.matmul %142, %144, %cst_102 {dimension_numbers = #tpu.dot_dimension_numbers<[1], [0], [0], [1], [0, 0, 1, 1], [], []>} : vector<16x16xf32>, vector<16x64xf32>, vector<16x64xf32> -> vector<16x64xf32>
    %146 = arith.addf %106, %145 : vector<16x64xf32>
    %c3 = arith.constant 3 : index
    %c0_103 = arith.constant 0 : index
    %c0_104 = arith.constant 0 : index
    %147 = vector.load %arg4[%c3, %c0_103, %c0_104] : memref<4x64x16xf32, #tpu.memory_space<vmem>>, vector<1x64x16xf32>
    %148 = vector.shape_cast %147 : vector<1x64x16xf32> to vector<64x16xf32>
    %cst_105 = arith.constant dense<0.000000e+00> : vector<16x16xf32>
    %149 = tpu.matmul %27, %148, %cst_105 {dimension_numbers = #tpu.dot_dimension_numbers<[1], [0], [0], [1], [0, 0, 1, 1], [], []>} : vector<16x64xf32>, vector<64x16xf32>, vector<16x16xf32> -> vector<16x16xf32>
    %c3_106 = arith.constant 3 : index
    %c0_107 = arith.constant 0 : index
    %c0_108 = arith.constant 0 : index
    %150 = vector.load %arg5[%c3_106, %c0_107, %c0_108] : memref<4x1x16xf32, #tpu.memory_space<vmem>>, vector<1x1x16xf32>
    %151 = vector.shape_cast %150 : vector<1x1x16xf32> to vector<1x16xf32>
    %152 = vector.broadcast %151 : vector<1x16xf32> to vector<16x16xf32>
    %153 = arith.addf %149, %152 : vector<16x16xf32>
    %c3_109 = arith.constant 3 : index
    %c0_110 = arith.constant 0 : index
    %c0_111 = arith.constant 0 : index
    %154 = vector.load %arg6[%c3_109, %c0_110, %c0_111] : memref<4x64x16xf32, #tpu.memory_space<vmem>>, vector<1x64x16xf32>
    %155 = vector.shape_cast %154 : vector<1x64x16xf32> to vector<64x16xf32>
    %cst_112 = arith.constant dense<0.000000e+00> : vector<16x16xf32>
    %156 = tpu.matmul %27, %155, %cst_112 {dimension_numbers = #tpu.dot_dimension_numbers<[1], [0], [0], [1], [0, 0, 1, 1], [], []>} : vector<16x64xf32>, vector<64x16xf32>, vector<16x16xf32> -> vector<16x16xf32>
    %c3_113 = arith.constant 3 : index
    %c0_114 = arith.constant 0 : index
    %c0_115 = arith.constant 0 : index
    %157 = vector.load %arg7[%c3_113, %c0_114, %c0_115] : memref<4x1x16xf32, #tpu.memory_space<vmem>>, vector<1x1x16xf32>
    %158 = vector.shape_cast %157 : vector<1x1x16xf32> to vector<1x16xf32>
    %159 = vector.broadcast %158 : vector<1x16xf32> to vector<16x16xf32>
    %160 = arith.addf %156, %159 : vector<16x16xf32>
    %c3_116 = arith.constant 3 : index
    %c0_117 = arith.constant 0 : index
    %c0_118 = arith.constant 0 : index
    %161 = vector.load %arg8[%c3_116, %c0_117, %c0_118] : memref<4x64x16xf32, #tpu.memory_space<vmem>>, vector<1x64x16xf32>
    %162 = vector.shape_cast %161 : vector<1x64x16xf32> to vector<64x16xf32>
    %cst_119 = arith.constant dense<0.000000e+00> : vector<16x16xf32>
    %163 = tpu.matmul %27, %162, %cst_119 {dimension_numbers = #tpu.dot_dimension_numbers<[1], [0], [0], [1], [0, 0, 1, 1], [], []>} : vector<16x64xf32>, vector<64x16xf32>, vector<16x16xf32> -> vector<16x16xf32>
    %c3_120 = arith.constant 3 : index
    %c0_121 = arith.constant 0 : index
    %c0_122 = arith.constant 0 : index
    %164 = vector.load %arg9[%c3_120, %c0_121, %c0_122] : memref<4x1x16xf32, #tpu.memory_space<vmem>>, vector<1x1x16xf32>
    %165 = vector.shape_cast %164 : vector<1x1x16xf32> to vector<1x16xf32>
    %166 = vector.broadcast %165 : vector<1x16xf32> to vector<16x16xf32>
    %167 = arith.addf %163, %166 : vector<16x16xf32>
    %cst_123 = arith.constant dense<0.000000e+00> : vector<16x16xf32>
    %168 = tpu.matmul %153, %160, %cst_123 {dimension_numbers = #tpu.dot_dimension_numbers<[1], [1], [0], [0], [0, 0, 1, 0], [], []>} : vector<16x16xf32>, vector<16x16xf32>, vector<16x16xf32> -> vector<16x16xf32>
    %cst_124 = arith.constant 2.500000e-01 : f32
    %169 = vector.broadcast %cst_124 : f32 to vector<16x16xf32>
    %170 = arith.mulf %168, %169 : vector<16x16xf32>
    %171 = arith.addf %170, %2 : vector<16x16xf32>
    %cst_125 = arith.constant dense<0xFF800000> : vector<16xf32>
    %172 = vector.multi_reduction <maximumf>, %171, %cst_125 [1] : vector<16x16xf32> to vector<16xf32>
    %173 = vector.shape_cast %172 : vector<16xf32> to vector<16x1xf32>
    %174 = vector.broadcast %173 : vector<16x1xf32> to vector<16x16xf32>
    %175 = arith.subf %171, %174 : vector<16x16xf32>
    %176 = math.exp %175 : vector<16x16xf32>
    %cst_126 = arith.constant dense<0.000000e+00> : vector<16xf32>
    %177 = vector.multi_reduction <add>, %176, %cst_126 [1] : vector<16x16xf32> to vector<16xf32>
    %178 = vector.shape_cast %177 : vector<16xf32> to vector<16x1xf32>
    %179 = tpu.reciprocal %178 {approx = true} : vector<16x1xf32> -> vector<16x1xf32>
    %180 = vector.broadcast %179 : vector<16x1xf32> to vector<16x16xf32>
    %181 = arith.mulf %176, %180 : vector<16x16xf32>
    %cst_127 = arith.constant dense<0.000000e+00> : vector<16x16xf32>
    %182 = tpu.matmul %181, %167, %cst_127 {dimension_numbers = #tpu.dot_dimension_numbers<[1], [0], [0], [1], [0, 0, 1, 1], [], []>} : vector<16x16xf32>, vector<16x16xf32>, vector<16x16xf32> -> vector<16x16xf32>
    %c3_128 = arith.constant 3 : index
    %c0_129 = arith.constant 0 : index
    %c0_130 = arith.constant 0 : index
    %183 = vector.load %arg10[%c3_128, %c0_129, %c0_130] : memref<4x16x64xf32, #tpu.memory_space<vmem>>, vector<1x16x64xf32>
    %184 = vector.shape_cast %183 : vector<1x16x64xf32> to vector<16x64xf32>
    %cst_131 = arith.constant dense<0.000000e+00> : vector<16x64xf32>
    %185 = tpu.matmul %182, %184, %cst_131 {dimension_numbers = #tpu.dot_dimension_numbers<[1], [0], [0], [1], [0, 0, 1, 1], [], []>} : vector<16x16xf32>, vector<16x64xf32>, vector<16x64xf32> -> vector<16x64xf32>
    %186 = arith.addf %146, %185 : vector<16x64xf32>
    %c0_132 = arith.constant 0 : index
    %c0_133 = arith.constant 0 : index
    %187 = vector.load %arg11[%c0_132, %c0_133] : memref<1x64xf32, #tpu.memory_space<vmem>>, vector<1x64xf32>
    %188 = vector.broadcast %187 : vector<1x64xf32> to vector<16x64xf32>
    %189 = arith.addf %186, %188 : vector<16x64xf32>
    %190 = arith.addf %0, %189 : vector<16x64xf32>
    %c0_134 = arith.constant 0 : index
    %c0_135 = arith.constant 0 : index
    %191 = vector.load %arg26[%c0_134, %c0_135] : memref<1x64xf32, #tpu.memory_space<vmem>>, vector<1x64xf32>
    %c0_136 = arith.constant 0 : index
    %c0_137 = arith.constant 0 : index
    %192 = vector.load %arg27[%c0_136, %c0_137] : memref<1x64xf32, #tpu.memory_space<vmem>>, vector<1x64xf32>
    %cst_138 = arith.constant dense<0.000000e+00> : vector<16xf32>
    %193 = vector.multi_reduction <add>, %190, %cst_138 [1] : vector<16x64xf32> to vector<16xf32>
    %194 = vector.shape_cast %193 : vector<16xf32> to vector<16x1xf32>
    %cst_139 = arith.constant 6.400000e+01 : f32
    %195 = vector.broadcast %cst_139 : f32 to vector<16x1xf32>
    %196 = arith.divf %194, %195 : vector<16x1xf32>
    %197 = vector.broadcast %196 : vector<16x1xf32> to vector<16x64xf32>
    %198 = arith.subf %190, %197 : vector<16x64xf32>
    %199 = arith.mulf %198, %198 : vector<16x64xf32>
    %cst_140 = arith.constant dense<0.000000e+00> : vector<16xf32>
    %200 = vector.multi_reduction <add>, %199, %cst_140 [1] : vector<16x64xf32> to vector<16xf32>
    %201 = vector.shape_cast %200 : vector<16xf32> to vector<16x1xf32>
    %cst_141 = arith.constant 6.400000e+01 : f32
    %202 = vector.broadcast %cst_141 : f32 to vector<16x1xf32>
    %203 = arith.divf %201, %202 : vector<16x1xf32>
    %204 = vector.broadcast %196 : vector<16x1xf32> to vector<16x64xf32>
    %205 = arith.subf %190, %204 : vector<16x64xf32>
    %cst_142 = arith.constant 9.99999974E-6 : f32
    %206 = vector.broadcast %cst_142 : f32 to vector<16x1xf32>
    %207 = arith.addf %203, %206 : vector<16x1xf32>
    %208 = math.rsqrt %207 : vector<16x1xf32>
    %209 = vector.broadcast %208 : vector<16x1xf32> to vector<16x64xf32>
    %210 = arith.mulf %205, %209 : vector<16x64xf32>
    %211 = vector.broadcast %191 : vector<1x64xf32> to vector<16x64xf32>
    %212 = arith.mulf %210, %211 : vector<16x64xf32>
    %213 = vector.broadcast %192 : vector<1x64xf32> to vector<16x64xf32>
    %214 = arith.addf %212, %213 : vector<16x64xf32>
    %c0_143 = arith.constant 0 : index
    %c0_144 = arith.constant 0 : index
    %c0_145 = arith.constant 0 : index
    %215 = vector.load %arg12[%c0_143, %c0_144, %c0_145] : memref<4x64x16xf32, #tpu.memory_space<vmem>>, vector<1x64x16xf32>
    %216 = vector.shape_cast %215 : vector<1x64x16xf32> to vector<64x16xf32>
    %cst_146 = arith.constant dense<0.000000e+00> : vector<16x16xf32>
    %217 = tpu.matmul %214, %216, %cst_146 {dimension_numbers = #tpu.dot_dimension_numbers<[1], [0], [0], [1], [0, 0, 1, 1], [], []>} : vector<16x64xf32>, vector<64x16xf32>, vector<16x16xf32> -> vector<16x16xf32>
    %c0_147 = arith.constant 0 : index
    %c0_148 = arith.constant 0 : index
    %c0_149 = arith.constant 0 : index
    %218 = vector.load %arg13[%c0_147, %c0_148, %c0_149] : memref<4x1x16xf32, #tpu.memory_space<vmem>>, vector<1x1x16xf32>
    %219 = vector.shape_cast %218 : vector<1x1x16xf32> to vector<1x16xf32>
    %220 = vector.broadcast %219 : vector<1x16xf32> to vector<16x16xf32>
    %221 = arith.addf %217, %220 : vector<16x16xf32>
    %c0_150 = arith.constant 0 : index
    %c0_151 = arith.constant 0 : index
    %c0_152 = arith.constant 0 : index
    %222 = vector.load %arg14[%c0_150, %c0_151, %c0_152] : memref<4x64x16xf32, #tpu.memory_space<vmem>>, vector<1x64x16xf32>
    %223 = vector.shape_cast %222 : vector<1x64x16xf32> to vector<64x16xf32>
    %cst_153 = arith.constant dense<0.000000e+00> : vector<16x16xf32>
    %224 = tpu.matmul %1, %223, %cst_153 {dimension_numbers = #tpu.dot_dimension_numbers<[1], [0], [0], [1], [0, 0, 1, 1], [], []>} : vector<16x64xf32>, vector<64x16xf32>, vector<16x16xf32> -> vector<16x16xf32>
    %c0_154 = arith.constant 0 : index
    %c0_155 = arith.constant 0 : index
    %c0_156 = arith.constant 0 : index
    %225 = vector.load %arg15[%c0_154, %c0_155, %c0_156] : memref<4x1x16xf32, #tpu.memory_space<vmem>>, vector<1x1x16xf32>
    %226 = vector.shape_cast %225 : vector<1x1x16xf32> to vector<1x16xf32>
    %227 = vector.broadcast %226 : vector<1x16xf32> to vector<16x16xf32>
    %228 = arith.addf %224, %227 : vector<16x16xf32>
    %c0_157 = arith.constant 0 : index
    %c0_158 = arith.constant 0 : index
    %c0_159 = arith.constant 0 : index
    %229 = vector.load %arg16[%c0_157, %c0_158, %c0_159] : memref<4x64x16xf32, #tpu.memory_space<vmem>>, vector<1x64x16xf32>
    %230 = vector.shape_cast %229 : vector<1x64x16xf32> to vector<64x16xf32>
    %cst_160 = arith.constant dense<0.000000e+00> : vector<16x16xf32>
    %231 = tpu.matmul %1, %230, %cst_160 {dimension_numbers = #tpu.dot_dimension_numbers<[1], [0], [0], [1], [0, 0, 1, 1], [], []>} : vector<16x64xf32>, vector<64x16xf32>, vector<16x16xf32> -> vector<16x16xf32>
    %c0_161 = arith.constant 0 : index
    %c0_162 = arith.constant 0 : index
    %c0_163 = arith.constant 0 : index
    %232 = vector.load %arg17[%c0_161, %c0_162, %c0_163] : memref<4x1x16xf32, #tpu.memory_space<vmem>>, vector<1x1x16xf32>
    %233 = vector.shape_cast %232 : vector<1x1x16xf32> to vector<1x16xf32>
    %234 = vector.broadcast %233 : vector<1x16xf32> to vector<16x16xf32>
    %235 = arith.addf %231, %234 : vector<16x16xf32>
    %cst_164 = arith.constant dense<0.000000e+00> : vector<16x16xf32>
    %236 = tpu.matmul %221, %228, %cst_164 {dimension_numbers = #tpu.dot_dimension_numbers<[1], [1], [0], [0], [0, 0, 1, 0], [], []>} : vector<16x16xf32>, vector<16x16xf32>, vector<16x16xf32> -> vector<16x16xf32>
    %cst_165 = arith.constant 2.500000e-01 : f32
    %237 = vector.broadcast %cst_165 : f32 to vector<16x16xf32>
    %238 = arith.mulf %236, %237 : vector<16x16xf32>
    %239 = arith.addf %238, %3 : vector<16x16xf32>
    %cst_166 = arith.constant dense<0xFF800000> : vector<16xf32>
    %240 = vector.multi_reduction <maximumf>, %239, %cst_166 [1] : vector<16x16xf32> to vector<16xf32>
    %241 = vector.shape_cast %240 : vector<16xf32> to vector<16x1xf32>
    %242 = vector.broadcast %241 : vector<16x1xf32> to vector<16x16xf32>
    %243 = arith.subf %239, %242 : vector<16x16xf32>
    %244 = math.exp %243 : vector<16x16xf32>
    %cst_167 = arith.constant dense<0.000000e+00> : vector<16xf32>
    %245 = vector.multi_reduction <add>, %244, %cst_167 [1] : vector<16x16xf32> to vector<16xf32>
    %246 = vector.shape_cast %245 : vector<16xf32> to vector<16x1xf32>
    %247 = tpu.reciprocal %246 {approx = true} : vector<16x1xf32> -> vector<16x1xf32>
    %248 = vector.broadcast %247 : vector<16x1xf32> to vector<16x16xf32>
    %249 = arith.mulf %244, %248 : vector<16x16xf32>
    %cst_168 = arith.constant dense<0.000000e+00> : vector<16x16xf32>
    %250 = tpu.matmul %249, %235, %cst_168 {dimension_numbers = #tpu.dot_dimension_numbers<[1], [0], [0], [1], [0, 0, 1, 1], [], []>} : vector<16x16xf32>, vector<16x16xf32>, vector<16x16xf32> -> vector<16x16xf32>
    %c0_169 = arith.constant 0 : index
    %c0_170 = arith.constant 0 : index
    %c0_171 = arith.constant 0 : index
    %251 = vector.load %arg18[%c0_169, %c0_170, %c0_171] : memref<4x16x64xf32, #tpu.memory_space<vmem>>, vector<1x16x64xf32>
    %252 = vector.shape_cast %251 : vector<1x16x64xf32> to vector<16x64xf32>
    %cst_172 = arith.constant dense<0.000000e+00> : vector<16x64xf32>
    %253 = tpu.matmul %250, %252, %cst_172 {dimension_numbers = #tpu.dot_dimension_numbers<[1], [0], [0], [1], [0, 0, 1, 1], [], []>} : vector<16x16xf32>, vector<16x64xf32>, vector<16x64xf32> -> vector<16x64xf32>
    %c1_173 = arith.constant 1 : index
    %c0_174 = arith.constant 0 : index
    %c0_175 = arith.constant 0 : index
    %254 = vector.load %arg12[%c1_173, %c0_174, %c0_175] : memref<4x64x16xf32, #tpu.memory_space<vmem>>, vector<1x64x16xf32>
    %255 = vector.shape_cast %254 : vector<1x64x16xf32> to vector<64x16xf32>
    %cst_176 = arith.constant dense<0.000000e+00> : vector<16x16xf32>
    %256 = tpu.matmul %214, %255, %cst_176 {dimension_numbers = #tpu.dot_dimension_numbers<[1], [0], [0], [1], [0, 0, 1, 1], [], []>} : vector<16x64xf32>, vector<64x16xf32>, vector<16x16xf32> -> vector<16x16xf32>
    %c1_177 = arith.constant 1 : index
    %c0_178 = arith.constant 0 : index
    %c0_179 = arith.constant 0 : index
    %257 = vector.load %arg13[%c1_177, %c0_178, %c0_179] : memref<4x1x16xf32, #tpu.memory_space<vmem>>, vector<1x1x16xf32>
    %258 = vector.shape_cast %257 : vector<1x1x16xf32> to vector<1x16xf32>
    %259 = vector.broadcast %258 : vector<1x16xf32> to vector<16x16xf32>
    %260 = arith.addf %256, %259 : vector<16x16xf32>
    %c1_180 = arith.constant 1 : index
    %c0_181 = arith.constant 0 : index
    %c0_182 = arith.constant 0 : index
    %261 = vector.load %arg14[%c1_180, %c0_181, %c0_182] : memref<4x64x16xf32, #tpu.memory_space<vmem>>, vector<1x64x16xf32>
    %262 = vector.shape_cast %261 : vector<1x64x16xf32> to vector<64x16xf32>
    %cst_183 = arith.constant dense<0.000000e+00> : vector<16x16xf32>
    %263 = tpu.matmul %1, %262, %cst_183 {dimension_numbers = #tpu.dot_dimension_numbers<[1], [0], [0], [1], [0, 0, 1, 1], [], []>} : vector<16x64xf32>, vector<64x16xf32>, vector<16x16xf32> -> vector<16x16xf32>
    %c1_184 = arith.constant 1 : index
    %c0_185 = arith.constant 0 : index
    %c0_186 = arith.constant 0 : index
    %264 = vector.load %arg15[%c1_184, %c0_185, %c0_186] : memref<4x1x16xf32, #tpu.memory_space<vmem>>, vector<1x1x16xf32>
    %265 = vector.shape_cast %264 : vector<1x1x16xf32> to vector<1x16xf32>
    %266 = vector.broadcast %265 : vector<1x16xf32> to vector<16x16xf32>
    %267 = arith.addf %263, %266 : vector<16x16xf32>
    %c1_187 = arith.constant 1 : index
    %c0_188 = arith.constant 0 : index
    %c0_189 = arith.constant 0 : index
    %268 = vector.load %arg16[%c1_187, %c0_188, %c0_189] : memref<4x64x16xf32, #tpu.memory_space<vmem>>, vector<1x64x16xf32>
    %269 = vector.shape_cast %268 : vector<1x64x16xf32> to vector<64x16xf32>
    %cst_190 = arith.constant dense<0.000000e+00> : vector<16x16xf32>
    %270 = tpu.matmul %1, %269, %cst_190 {dimension_numbers = #tpu.dot_dimension_numbers<[1], [0], [0], [1], [0, 0, 1, 1], [], []>} : vector<16x64xf32>, vector<64x16xf32>, vector<16x16xf32> -> vector<16x16xf32>
    %c1_191 = arith.constant 1 : index
    %c0_192 = arith.constant 0 : index
    %c0_193 = arith.constant 0 : index
    %271 = vector.load %arg17[%c1_191, %c0_192, %c0_193] : memref<4x1x16xf32, #tpu.memory_space<vmem>>, vector<1x1x16xf32>
    %272 = vector.shape_cast %271 : vector<1x1x16xf32> to vector<1x16xf32>
    %273 = vector.broadcast %272 : vector<1x16xf32> to vector<16x16xf32>
    %274 = arith.addf %270, %273 : vector<16x16xf32>
    %cst_194 = arith.constant dense<0.000000e+00> : vector<16x16xf32>
    %275 = tpu.matmul %260, %267, %cst_194 {dimension_numbers = #tpu.dot_dimension_numbers<[1], [1], [0], [0], [0, 0, 1, 0], [], []>} : vector<16x16xf32>, vector<16x16xf32>, vector<16x16xf32> -> vector<16x16xf32>
    %cst_195 = arith.constant 2.500000e-01 : f32
    %276 = vector.broadcast %cst_195 : f32 to vector<16x16xf32>
    %277 = arith.mulf %275, %276 : vector<16x16xf32>
    %278 = arith.addf %277, %3 : vector<16x16xf32>
    %cst_196 = arith.constant dense<0xFF800000> : vector<16xf32>
    %279 = vector.multi_reduction <maximumf>, %278, %cst_196 [1] : vector<16x16xf32> to vector<16xf32>
    %280 = vector.shape_cast %279 : vector<16xf32> to vector<16x1xf32>
    %281 = vector.broadcast %280 : vector<16x1xf32> to vector<16x16xf32>
    %282 = arith.subf %278, %281 : vector<16x16xf32>
    %283 = math.exp %282 : vector<16x16xf32>
    %cst_197 = arith.constant dense<0.000000e+00> : vector<16xf32>
    %284 = vector.multi_reduction <add>, %283, %cst_197 [1] : vector<16x16xf32> to vector<16xf32>
    %285 = vector.shape_cast %284 : vector<16xf32> to vector<16x1xf32>
    %286 = tpu.reciprocal %285 {approx = true} : vector<16x1xf32> -> vector<16x1xf32>
    %287 = vector.broadcast %286 : vector<16x1xf32> to vector<16x16xf32>
    %288 = arith.mulf %283, %287 : vector<16x16xf32>
    %cst_198 = arith.constant dense<0.000000e+00> : vector<16x16xf32>
    %289 = tpu.matmul %288, %274, %cst_198 {dimension_numbers = #tpu.dot_dimension_numbers<[1], [0], [0], [1], [0, 0, 1, 1], [], []>} : vector<16x16xf32>, vector<16x16xf32>, vector<16x16xf32> -> vector<16x16xf32>
    %c1_199 = arith.constant 1 : index
    %c0_200 = arith.constant 0 : index
    %c0_201 = arith.constant 0 : index
    %290 = vector.load %arg18[%c1_199, %c0_200, %c0_201] : memref<4x16x64xf32, #tpu.memory_space<vmem>>, vector<1x16x64xf32>
    %291 = vector.shape_cast %290 : vector<1x16x64xf32> to vector<16x64xf32>
    %cst_202 = arith.constant dense<0.000000e+00> : vector<16x64xf32>
    %292 = tpu.matmul %289, %291, %cst_202 {dimension_numbers = #tpu.dot_dimension_numbers<[1], [0], [0], [1], [0, 0, 1, 1], [], []>} : vector<16x16xf32>, vector<16x64xf32>, vector<16x64xf32> -> vector<16x64xf32>
    %293 = arith.addf %253, %292 : vector<16x64xf32>
    %c2_203 = arith.constant 2 : index
    %c0_204 = arith.constant 0 : index
    %c0_205 = arith.constant 0 : index
    %294 = vector.load %arg12[%c2_203, %c0_204, %c0_205] : memref<4x64x16xf32, #tpu.memory_space<vmem>>, vector<1x64x16xf32>
    %295 = vector.shape_cast %294 : vector<1x64x16xf32> to vector<64x16xf32>
    %cst_206 = arith.constant dense<0.000000e+00> : vector<16x16xf32>
    %296 = tpu.matmul %214, %295, %cst_206 {dimension_numbers = #tpu.dot_dimension_numbers<[1], [0], [0], [1], [0, 0, 1, 1], [], []>} : vector<16x64xf32>, vector<64x16xf32>, vector<16x16xf32> -> vector<16x16xf32>
    %c2_207 = arith.constant 2 : index
    %c0_208 = arith.constant 0 : index
    %c0_209 = arith.constant 0 : index
    %297 = vector.load %arg13[%c2_207, %c0_208, %c0_209] : memref<4x1x16xf32, #tpu.memory_space<vmem>>, vector<1x1x16xf32>
    %298 = vector.shape_cast %297 : vector<1x1x16xf32> to vector<1x16xf32>
    %299 = vector.broadcast %298 : vector<1x16xf32> to vector<16x16xf32>
    %300 = arith.addf %296, %299 : vector<16x16xf32>
    %c2_210 = arith.constant 2 : index
    %c0_211 = arith.constant 0 : index
    %c0_212 = arith.constant 0 : index
    %301 = vector.load %arg14[%c2_210, %c0_211, %c0_212] : memref<4x64x16xf32, #tpu.memory_space<vmem>>, vector<1x64x16xf32>
    %302 = vector.shape_cast %301 : vector<1x64x16xf32> to vector<64x16xf32>
    %cst_213 = arith.constant dense<0.000000e+00> : vector<16x16xf32>
    %303 = tpu.matmul %1, %302, %cst_213 {dimension_numbers = #tpu.dot_dimension_numbers<[1], [0], [0], [1], [0, 0, 1, 1], [], []>} : vector<16x64xf32>, vector<64x16xf32>, vector<16x16xf32> -> vector<16x16xf32>
    %c2_214 = arith.constant 2 : index
    %c0_215 = arith.constant 0 : index
    %c0_216 = arith.constant 0 : index
    %304 = vector.load %arg15[%c2_214, %c0_215, %c0_216] : memref<4x1x16xf32, #tpu.memory_space<vmem>>, vector<1x1x16xf32>
    %305 = vector.shape_cast %304 : vector<1x1x16xf32> to vector<1x16xf32>
    %306 = vector.broadcast %305 : vector<1x16xf32> to vector<16x16xf32>
    %307 = arith.addf %303, %306 : vector<16x16xf32>
    %c2_217 = arith.constant 2 : index
    %c0_218 = arith.constant 0 : index
    %c0_219 = arith.constant 0 : index
    %308 = vector.load %arg16[%c2_217, %c0_218, %c0_219] : memref<4x64x16xf32, #tpu.memory_space<vmem>>, vector<1x64x16xf32>
    %309 = vector.shape_cast %308 : vector<1x64x16xf32> to vector<64x16xf32>
    %cst_220 = arith.constant dense<0.000000e+00> : vector<16x16xf32>
    %310 = tpu.matmul %1, %309, %cst_220 {dimension_numbers = #tpu.dot_dimension_numbers<[1], [0], [0], [1], [0, 0, 1, 1], [], []>} : vector<16x64xf32>, vector<64x16xf32>, vector<16x16xf32> -> vector<16x16xf32>
    %c2_221 = arith.constant 2 : index
    %c0_222 = arith.constant 0 : index
    %c0_223 = arith.constant 0 : index
    %311 = vector.load %arg17[%c2_221, %c0_222, %c0_223] : memref<4x1x16xf32, #tpu.memory_space<vmem>>, vector<1x1x16xf32>
    %312 = vector.shape_cast %311 : vector<1x1x16xf32> to vector<1x16xf32>
    %313 = vector.broadcast %312 : vector<1x16xf32> to vector<16x16xf32>
    %314 = arith.addf %310, %313 : vector<16x16xf32>
    %cst_224 = arith.constant dense<0.000000e+00> : vector<16x16xf32>
    %315 = tpu.matmul %300, %307, %cst_224 {dimension_numbers = #tpu.dot_dimension_numbers<[1], [1], [0], [0], [0, 0, 1, 0], [], []>} : vector<16x16xf32>, vector<16x16xf32>, vector<16x16xf32> -> vector<16x16xf32>
    %cst_225 = arith.constant 2.500000e-01 : f32
    %316 = vector.broadcast %cst_225 : f32 to vector<16x16xf32>
    %317 = arith.mulf %315, %316 : vector<16x16xf32>
    %318 = arith.addf %317, %3 : vector<16x16xf32>
    %cst_226 = arith.constant dense<0xFF800000> : vector<16xf32>
    %319 = vector.multi_reduction <maximumf>, %318, %cst_226 [1] : vector<16x16xf32> to vector<16xf32>
    %320 = vector.shape_cast %319 : vector<16xf32> to vector<16x1xf32>
    %321 = vector.broadcast %320 : vector<16x1xf32> to vector<16x16xf32>
    %322 = arith.subf %318, %321 : vector<16x16xf32>
    %323 = math.exp %322 : vector<16x16xf32>
    %cst_227 = arith.constant dense<0.000000e+00> : vector<16xf32>
    %324 = vector.multi_reduction <add>, %323, %cst_227 [1] : vector<16x16xf32> to vector<16xf32>
    %325 = vector.shape_cast %324 : vector<16xf32> to vector<16x1xf32>
    %326 = tpu.reciprocal %325 {approx = true} : vector<16x1xf32> -> vector<16x1xf32>
    %327 = vector.broadcast %326 : vector<16x1xf32> to vector<16x16xf32>
    %328 = arith.mulf %323, %327 : vector<16x16xf32>
    %cst_228 = arith.constant dense<0.000000e+00> : vector<16x16xf32>
    %329 = tpu.matmul %328, %314, %cst_228 {dimension_numbers = #tpu.dot_dimension_numbers<[1], [0], [0], [1], [0, 0, 1, 1], [], []>} : vector<16x16xf32>, vector<16x16xf32>, vector<16x16xf32> -> vector<16x16xf32>
    %c2_229 = arith.constant 2 : index
    %c0_230 = arith.constant 0 : index
    %c0_231 = arith.constant 0 : index
    %330 = vector.load %arg18[%c2_229, %c0_230, %c0_231] : memref<4x16x64xf32, #tpu.memory_space<vmem>>, vector<1x16x64xf32>
    %331 = vector.shape_cast %330 : vector<1x16x64xf32> to vector<16x64xf32>
    %cst_232 = arith.constant dense<0.000000e+00> : vector<16x64xf32>
    %332 = tpu.matmul %329, %331, %cst_232 {dimension_numbers = #tpu.dot_dimension_numbers<[1], [0], [0], [1], [0, 0, 1, 1], [], []>} : vector<16x16xf32>, vector<16x64xf32>, vector<16x64xf32> -> vector<16x64xf32>
    %333 = arith.addf %293, %332 : vector<16x64xf32>
    %c3_233 = arith.constant 3 : index
    %c0_234 = arith.constant 0 : index
    %c0_235 = arith.constant 0 : index
    %334 = vector.load %arg12[%c3_233, %c0_234, %c0_235] : memref<4x64x16xf32, #tpu.memory_space<vmem>>, vector<1x64x16xf32>
    %335 = vector.shape_cast %334 : vector<1x64x16xf32> to vector<64x16xf32>
    %cst_236 = arith.constant dense<0.000000e+00> : vector<16x16xf32>
    %336 = tpu.matmul %214, %335, %cst_236 {dimension_numbers = #tpu.dot_dimension_numbers<[1], [0], [0], [1], [0, 0, 1, 1], [], []>} : vector<16x64xf32>, vector<64x16xf32>, vector<16x16xf32> -> vector<16x16xf32>
    %c3_237 = arith.constant 3 : index
    %c0_238 = arith.constant 0 : index
    %c0_239 = arith.constant 0 : index
    %337 = vector.load %arg13[%c3_237, %c0_238, %c0_239] : memref<4x1x16xf32, #tpu.memory_space<vmem>>, vector<1x1x16xf32>
    %338 = vector.shape_cast %337 : vector<1x1x16xf32> to vector<1x16xf32>
    %339 = vector.broadcast %338 : vector<1x16xf32> to vector<16x16xf32>
    %340 = arith.addf %336, %339 : vector<16x16xf32>
    %c3_240 = arith.constant 3 : index
    %c0_241 = arith.constant 0 : index
    %c0_242 = arith.constant 0 : index
    %341 = vector.load %arg14[%c3_240, %c0_241, %c0_242] : memref<4x64x16xf32, #tpu.memory_space<vmem>>, vector<1x64x16xf32>
    %342 = vector.shape_cast %341 : vector<1x64x16xf32> to vector<64x16xf32>
    %cst_243 = arith.constant dense<0.000000e+00> : vector<16x16xf32>
    %343 = tpu.matmul %1, %342, %cst_243 {dimension_numbers = #tpu.dot_dimension_numbers<[1], [0], [0], [1], [0, 0, 1, 1], [], []>} : vector<16x64xf32>, vector<64x16xf32>, vector<16x16xf32> -> vector<16x16xf32>
    %c3_244 = arith.constant 3 : index
    %c0_245 = arith.constant 0 : index
    %c0_246 = arith.constant 0 : index
    %344 = vector.load %arg15[%c3_244, %c0_245, %c0_246] : memref<4x1x16xf32, #tpu.memory_space<vmem>>, vector<1x1x16xf32>
    %345 = vector.shape_cast %344 : vector<1x1x16xf32> to vector<1x16xf32>
    %346 = vector.broadcast %345 : vector<1x16xf32> to vector<16x16xf32>
    %347 = arith.addf %343, %346 : vector<16x16xf32>
    %c3_247 = arith.constant 3 : index
    %c0_248 = arith.constant 0 : index
    %c0_249 = arith.constant 0 : index
    %348 = vector.load %arg16[%c3_247, %c0_248, %c0_249] : memref<4x64x16xf32, #tpu.memory_space<vmem>>, vector<1x64x16xf32>
    %349 = vector.shape_cast %348 : vector<1x64x16xf32> to vector<64x16xf32>
    %cst_250 = arith.constant dense<0.000000e+00> : vector<16x16xf32>
    %350 = tpu.matmul %1, %349, %cst_250 {dimension_numbers = #tpu.dot_dimension_numbers<[1], [0], [0], [1], [0, 0, 1, 1], [], []>} : vector<16x64xf32>, vector<64x16xf32>, vector<16x16xf32> -> vector<16x16xf32>
    %c3_251 = arith.constant 3 : index
    %c0_252 = arith.constant 0 : index
    %c0_253 = arith.constant 0 : index
    %351 = vector.load %arg17[%c3_251, %c0_252, %c0_253] : memref<4x1x16xf32, #tpu.memory_space<vmem>>, vector<1x1x16xf32>
    %352 = vector.shape_cast %351 : vector<1x1x16xf32> to vector<1x16xf32>
    %353 = vector.broadcast %352 : vector<1x16xf32> to vector<16x16xf32>
    %354 = arith.addf %350, %353 : vector<16x16xf32>
    %cst_254 = arith.constant dense<0.000000e+00> : vector<16x16xf32>
    %355 = tpu.matmul %340, %347, %cst_254 {dimension_numbers = #tpu.dot_dimension_numbers<[1], [1], [0], [0], [0, 0, 1, 0], [], []>} : vector<16x16xf32>, vector<16x16xf32>, vector<16x16xf32> -> vector<16x16xf32>
    %cst_255 = arith.constant 2.500000e-01 : f32
    %356 = vector.broadcast %cst_255 : f32 to vector<16x16xf32>
    %357 = arith.mulf %355, %356 : vector<16x16xf32>
    %358 = arith.addf %357, %3 : vector<16x16xf32>
    %cst_256 = arith.constant dense<0xFF800000> : vector<16xf32>
    %359 = vector.multi_reduction <maximumf>, %358, %cst_256 [1] : vector<16x16xf32> to vector<16xf32>
    %360 = vector.shape_cast %359 : vector<16xf32> to vector<16x1xf32>
    %361 = vector.broadcast %360 : vector<16x1xf32> to vector<16x16xf32>
    %362 = arith.subf %358, %361 : vector<16x16xf32>
    %363 = math.exp %362 : vector<16x16xf32>
    %cst_257 = arith.constant dense<0.000000e+00> : vector<16xf32>
    %364 = vector.multi_reduction <add>, %363, %cst_257 [1] : vector<16x16xf32> to vector<16xf32>
    %365 = vector.shape_cast %364 : vector<16xf32> to vector<16x1xf32>
    %366 = tpu.reciprocal %365 {approx = true} : vector<16x1xf32> -> vector<16x1xf32>
    %367 = vector.broadcast %366 : vector<16x1xf32> to vector<16x16xf32>
    %368 = arith.mulf %363, %367 : vector<16x16xf32>
    %cst_258 = arith.constant dense<0.000000e+00> : vector<16x16xf32>
    %369 = tpu.matmul %368, %354, %cst_258 {dimension_numbers = #tpu.dot_dimension_numbers<[1], [0], [0], [1], [0, 0, 1, 1], [], []>} : vector<16x16xf32>, vector<16x16xf32>, vector<16x16xf32> -> vector<16x16xf32>
    %c3_259 = arith.constant 3 : index
    %c0_260 = arith.constant 0 : index
    %c0_261 = arith.constant 0 : index
    %370 = vector.load %arg18[%c3_259, %c0_260, %c0_261] : memref<4x16x64xf32, #tpu.memory_space<vmem>>, vector<1x16x64xf32>
    %371 = vector.shape_cast %370 : vector<1x16x64xf32> to vector<16x64xf32>
    %cst_262 = arith.constant dense<0.000000e+00> : vector<16x64xf32>
    %372 = tpu.matmul %369, %371, %cst_262 {dimension_numbers = #tpu.dot_dimension_numbers<[1], [0], [0], [1], [0, 0, 1, 1], [], []>} : vector<16x16xf32>, vector<16x64xf32>, vector<16x64xf32> -> vector<16x64xf32>
    %373 = arith.addf %333, %372 : vector<16x64xf32>
    %c0_263 = arith.constant 0 : index
    %c0_264 = arith.constant 0 : index
    %374 = vector.load %arg19[%c0_263, %c0_264] : memref<1x64xf32, #tpu.memory_space<vmem>>, vector<1x64xf32>
    %375 = vector.broadcast %374 : vector<1x64xf32> to vector<16x64xf32>
    %376 = arith.addf %373, %375 : vector<16x64xf32>
    %377 = arith.addf %190, %376 : vector<16x64xf32>
    %c0_265 = arith.constant 0 : index
    %c0_266 = arith.constant 0 : index
    %378 = vector.load %arg28[%c0_265, %c0_266] : memref<1x64xf32, #tpu.memory_space<vmem>>, vector<1x64xf32>
    %c0_267 = arith.constant 0 : index
    %c0_268 = arith.constant 0 : index
    %379 = vector.load %arg29[%c0_267, %c0_268] : memref<1x64xf32, #tpu.memory_space<vmem>>, vector<1x64xf32>
    %cst_269 = arith.constant dense<0.000000e+00> : vector<16xf32>
    %380 = vector.multi_reduction <add>, %377, %cst_269 [1] : vector<16x64xf32> to vector<16xf32>
    %381 = vector.shape_cast %380 : vector<16xf32> to vector<16x1xf32>
    %cst_270 = arith.constant 6.400000e+01 : f32
    %382 = vector.broadcast %cst_270 : f32 to vector<16x1xf32>
    %383 = arith.divf %381, %382 : vector<16x1xf32>
    %384 = vector.broadcast %383 : vector<16x1xf32> to vector<16x64xf32>
    %385 = arith.subf %377, %384 : vector<16x64xf32>
    %386 = arith.mulf %385, %385 : vector<16x64xf32>
    %cst_271 = arith.constant dense<0.000000e+00> : vector<16xf32>
    %387 = vector.multi_reduction <add>, %386, %cst_271 [1] : vector<16x64xf32> to vector<16xf32>
    %388 = vector.shape_cast %387 : vector<16xf32> to vector<16x1xf32>
    %cst_272 = arith.constant 6.400000e+01 : f32
    %389 = vector.broadcast %cst_272 : f32 to vector<16x1xf32>
    %390 = arith.divf %388, %389 : vector<16x1xf32>
    %391 = vector.broadcast %383 : vector<16x1xf32> to vector<16x64xf32>
    %392 = arith.subf %377, %391 : vector<16x64xf32>
    %cst_273 = arith.constant 9.99999974E-6 : f32
    %393 = vector.broadcast %cst_273 : f32 to vector<16x1xf32>
    %394 = arith.addf %390, %393 : vector<16x1xf32>
    %395 = math.rsqrt %394 : vector<16x1xf32>
    %396 = vector.broadcast %395 : vector<16x1xf32> to vector<16x64xf32>
    %397 = arith.mulf %392, %396 : vector<16x64xf32>
    %398 = vector.broadcast %378 : vector<1x64xf32> to vector<16x64xf32>
    %399 = arith.mulf %397, %398 : vector<16x64xf32>
    %400 = vector.broadcast %379 : vector<1x64xf32> to vector<16x64xf32>
    %401 = arith.addf %399, %400 : vector<16x64xf32>
    %c0_274 = arith.constant 0 : index
    %c0_275 = arith.constant 0 : index
    %402 = vector.load %arg20[%c0_274, %c0_275] : memref<64x128xf32, #tpu.memory_space<vmem>>, vector<64x128xf32>
    %cst_276 = arith.constant dense<0.000000e+00> : vector<16x128xf32>
    %403 = tpu.matmul %401, %402, %cst_276 {dimension_numbers = #tpu.dot_dimension_numbers<[1], [0], [0], [1], [0, 0, 1, 1], [], []>} : vector<16x64xf32>, vector<64x128xf32>, vector<16x128xf32> -> vector<16x128xf32>
    %c0_277 = arith.constant 0 : index
    %c0_278 = arith.constant 0 : index
    %404 = vector.load %arg21[%c0_277, %c0_278] : memref<1x128xf32, #tpu.memory_space<vmem>>, vector<1x128xf32>
    %405 = vector.broadcast %404 : vector<1x128xf32> to vector<16x128xf32>
    %406 = arith.addf %403, %405 : vector<16x128xf32>
    %cst_279 = arith.constant 5.000000e-01 : f32
    %407 = vector.broadcast %cst_279 : f32 to vector<16x128xf32>
    %408 = arith.mulf %407, %406 : vector<16x128xf32>
    %cst_280 = arith.constant 4.471500e-02 : f32
    %409 = vector.broadcast %cst_280 : f32 to vector<16x128xf32>
    %410 = arith.mulf %409, %406 : vector<16x128xf32>
    %411 = arith.mulf %410, %406 : vector<16x128xf32>
    %412 = arith.mulf %411, %406 : vector<16x128xf32>
    %413 = arith.addf %406, %412 : vector<16x128xf32>
    %cst_281 = arith.constant 0.797884583 : f32
    %414 = vector.broadcast %cst_281 : f32 to vector<16x128xf32>
    %415 = arith.mulf %414, %413 : vector<16x128xf32>
    %416 = math.tanh %415 : vector<16x128xf32>
    %cst_282 = arith.constant 1.000000e+00 : f32
    %417 = vector.broadcast %cst_282 : f32 to vector<16x128xf32>
    %418 = arith.addf %417, %416 : vector<16x128xf32>
    %419 = arith.mulf %408, %418 : vector<16x128xf32>
    %c0_283 = arith.constant 0 : index
    %c0_284 = arith.constant 0 : index
    %420 = vector.load %arg22[%c0_283, %c0_284] : memref<128x64xf32, #tpu.memory_space<vmem>>, vector<128x64xf32>
    %cst_285 = arith.constant dense<0.000000e+00> : vector<16x64xf32>
    %421 = tpu.matmul %419, %420, %cst_285 {dimension_numbers = #tpu.dot_dimension_numbers<[1], [0], [0], [1], [0, 0, 1, 1], [], []>} : vector<16x128xf32>, vector<128x64xf32>, vector<16x64xf32> -> vector<16x64xf32>
    %422 = arith.addf %377, %421 : vector<16x64xf32>
    %c0_286 = arith.constant 0 : index
    %c0_287 = arith.constant 0 : index
    %423 = vector.load %arg23[%c0_286, %c0_287] : memref<1x64xf32, #tpu.memory_space<vmem>>, vector<1x64xf32>
    %424 = vector.broadcast %423 : vector<1x64xf32> to vector<16x64xf32>
    %425 = arith.addf %422, %424 : vector<16x64xf32>
    %c0_288 = arith.constant 0 : index
    %c0_289 = arith.constant 0 : index
    %426 = vector.load %arg30[%c0_288, %c0_289] : memref<16x64xf32, #tpu.memory_space<vmem>>, vector<16x64xf32>
    tpu.vector_store %arg30[%c0_288, %c0_289], %425 {strides = array<i32>} : memref<16x64xf32, #tpu.memory_space<vmem>>, vector<16x64xf32>,
    return
  }
}

</mosaic_0001>

<bundles_post_ra>
// kernel: end_to_end_forward.8
= control target key start
LH: loop header
LB: loop body
LE: loop exit
PB: predicated region body
PF: predicated region fallthrough
CT: control target
= control target key end

     0   :  { %vm30_vm0 = vcmask 261120   ;;  %vm100_vm1 = vcmask 523264   ;;  %s294_s1 = inlined_call_operand.vmem [shape: f32[32,64], index: 1, kind: input, shape index: {}]   ;;  %s295_s2 = inlined_call_operand.vmem [shape: f32[1,64], index: 2, kind: input, shape index: {}]   ;;  %s296_s0 = inlined_call_operand.vmem [shape: f32[16,32], index: 0, kind: input, shape index: {}]   ;;  %s297_s3 = inlined_call_operand.vmem [shape: f32[64,256], index: 3, kind: input, shape index: {}]   ;;  %s298_s4 = inlined_call_operand.vmem [shape: f32[1,256], index: 4, kind: input, shape index: {}]   ;;  %s299_s5 = inlined_call_operand.vmem [shape: f32[16,256], index: 5, kind: output, shape index: {}]  }
   0x1   :  { %v25_v0 = vld [vmem:[%s294_s1 + $0x18] sm:$0xff]  ;;  %v24_v1 = vld [vmem:[%s294_s1 + $0x10] sm:$0xff]  ;;  %v23_v2 = vld [vmem:[%s294_s1 + $0x8] sm:$0xff] }
   0x2   :  { %49 = vmatpush.msra.mxu0 %v25_v0  ;;  %v22_v3 = vld [vmem:[%s294_s1] sm:$0xff]  ;;  %v21_v5 = vld [vmem:[%s296_s0 + $0x8] sm:$0xff]  ;;  %v92_v6 = vld [vmem:[%s297_s3 + $0x70] sm:$0xff] }
   0x3   :  { %v20_v4 = vld [vmem:[%s296_s0] sm:$0xff]  ;;  %v93_v7 = vld [vmem:[%s297_s3 + $0x78] sm:$0xff]  ;;  %115 = vmatpush.msra.mxu1 %v92_v6  ;;  %v91_v9 = vld [vmem:[%s297_s3 + $0x68] sm:$0xff]  ;;  %167 = vmatpush.msra.mxu3 %v92_v6 }
   0x4   :  { %50 = vmatpush.msra.mxu0 %v24_v1  ;;  %138 = vmatpush.msra.mxu2 %v93_v7  ;;  %v90_v8 = vld [vmem:[%s297_s3 + $0x60] sm:$0xff]  ;;  %v88_v10 = vld [vmem:[%s297_s3 + $0x50] sm:$0xff]  ;;  %v89_v11 = vld [vmem:[%s297_s3 + $0x58] sm:$0xff] }
   0x5   :  { %116 = vmatpush.msra.mxu1 %v90_v8  ;;  %v86_v12 = vld [vmem:[%s297_s3 + $0x40] sm:$0xff]  ;;  %v87_v13 = vld [vmem:[%s297_s3 + $0x48] sm:$0xff]  ;;  %168 = vmatpush.msra.mxu3 %v90_v8  ;;  %v84_v14 = vld [vmem:[%s297_s3 + $0x30] sm:$0xff] }
   0x6   :  { %51 = vmatpush.msra.mxu0 %v23_v2  ;;  %139 = vmatpush.msra.mxu2 %v91_v9  ;;  %v85_v15 = vld [vmem:[%s297_s3 + $0x38] sm:$0xff]  ;;  %v82_v16 = vld [vmem:[%s297_s3 + $0x20] sm:$0xff]  ;;  %v83_v17 = vld [vmem:[%s297_s3 + $0x28] sm:$0xff] }
   0x7   :  { %117 = vmatpush.msra.mxu1 %v88_v10  ;;  %169 = vmatpush.msra.mxu3 %v88_v10  ;;  %v80_v18 = vld [vmem:[%s297_s3 + $0x10] sm:$0xff]  ;;  %v81_v19 = vld [vmem:[%s297_s3 + $0x18] sm:$0xff]  ;;  %v78_v20 = vld [vmem:[%s297_s3] sm:$0xff] }
   0x8   :  { %52 = vmatpush.msra.mxu0 %v22_v3  ;;  %140 = vmatpush.msra.mxu2 %v89_v11  ;;  %v79_v21 = vld [vmem:[%s297_s3 + $0x8] sm:$0xff]  ;;  %v175_v22 = vld [vmem:[%s295_s2] ss:$0 sm:$0xff] }
   0x9   :  { %161 = vmatmul.msk.f32.vlgmr.msra.gmra.mxu0 %vm30_vm0, %v20_v4  ;;  %118 = vmatpush.msra.mxu1 %v86_v12  ;;  %v94_v45 = vld [vmem:[%s298_s4] sm:$0x3] }
   0xa   :  { %141 = vmatpush.msra.mxu2 %v87_v13  ;;  %170 = vmatpush.msra.mxu3 %v86_v12  ;;  %v96_v46 = vperm.slane %v94_v45, 0  ;;  %v97_v49 = vperm.slane %v94_v45, 1 }
   0xb   :  { %119 = vmatpush.msra.mxu1 %v84_v14 }
   0xc   :  { %142 = vmatpush.msra.mxu2 %v85_v15  ;;  %171 = vmatpush.msra.mxu3 %v84_v14 }
   0xd   :  { %120 = vmatpush.msra.mxu1 %v82_v16 }
   0xe   :  { %143 = vmatpush.msra.mxu2 %v83_v17  ;;  %172 = vmatpush.msra.mxu3 %v82_v16 }
   0xf   :  { %121 = vmatpush.msra.mxu1 %v80_v18 }
  0x10   :  { %144 = vmatpush.msra.mxu2 %v81_v19  ;;  %173 = vmatpush.msra.mxu3 %v80_v18 }
  0x11   :  { %162 = vmatmul.msk.f32.gmra.mxu0 %vm30_vm0, %v21_v5  ;;  %122 = vmatpush.msra.mxu1 %v78_v20 }
  0x12   :  { %145 = vmatpush.msra.mxu2 %v79_v21  ;;  %174 = vmatpush.msra.mxu3 %v78_v20 }
  0x86   :  { %v54_v23 = vpop.f32.mrf.mxu0 }
  0x87   :  { %v55_v24 = vadd.f32 %v175_v22, %v54_v23 }
  0x89   :  { %v62_v25 = vmul.f32 0.044715, %v55_v24  ;;  %v60_v38 = vmul.f32 0.5, %v55_v24 }
  0x8b   :  { %v64_v26 = vmul.f32 %v62_v25, %v55_v24 }
  0x8d   :  { %v66_v27 = vmul.f32 %v64_v26, %v55_v24 }
  0x8e   :  { %v57_v28 = vpop.f32.mrf.mxu0 }
  0x8f   :  { %v58_v29 = vadd.f32 %v175_v22, %v57_v28  ;;  %v68_v30 = vadd.f32 %v66_v27, %v55_v24 }
  0x91   :  { %v63_v31 = vmul.f32 0.044715, %v58_v29  ;;  %v70_v32 = vmul.f32 0.7978846, %v68_v30  ;;  %v61_v42 = vmul.f32 0.5, %v58_v29 }
  0x93   :  { %176 = vtanh.f32 %v70_v32  ;;  %v65_v33 = vmul.f32 %v63_v31, %v58_v29 }
  0x95   :  { %v67_v34 = vmul.f32 %v65_v33, %v58_v29 }
  0x97   :  { %v69_v35 = vadd.f32 %v67_v34, %v58_v29 }
  0x99   :  { %v177_v36 = vpop.eup %176  ;;  %v71_v37 = vmul.f32 0.7978846, %v69_v35 }
  0x9a   :  { %v74_v39 = vadd.f32 1.0, %v177_v36 }
  0x9b   :  { %178 = vtanh.f32 %v71_v37 }
  0x9c   :  { %v76_v40 = vmul.f32 %v74_v39, %v60_v38 }
  0x9e   :  { %163 = vmatmul.msk.f32.vlgmr.msra.gmra.mxu1 %vm100_vm1, %v76_v40  ;;  %165 = vmatmul.msk.f32.vlgmr.msra.gmra.mxu2 %vm100_vm1, %v76_v40 }
  0xa1   :  { %v179_v41 = vpop.eup %178 }
  0xa2   :  { %v75_v43 = vadd.f32 1.0, %v179_v41 }
  0xa4   :  { %v77_v44 = vmul.f32 %v75_v43, %v61_v42 }
  0xa6   :  { %164 = vmatmul.msk.f32.vlgmr.msra.gmra.mxu3 %vm100_vm1, %v77_v44  ;;  %166 = vmatmul.msk.f32.gmra.mxu2 %vm100_vm1, %v77_v44 }
 0x11b   :  { %v124_v47 = vpop.f32.mrf.mxu1 }
 0x11c   :  { %v125_v48 = vadd.f32 %v124_v47, %v96_v46 }
 0x11e   :  { %153 = vst [vmem:[%s299_s5] sm:$0xff] %v125_v48 }
 0x121   :  { %v147_v50 = vpop.f32.mrf.mxu2 }
 0x122   :  { %v148_v51 = vadd.f32 %v147_v50, %v97_v49 }
 0x124   :  { %154 = vst [vmem:[%s299_s5 + $0x8] sm:$0xff] %v148_v51 }
 0x129   :  { %v127_v52 = vpop.f32.mrf.mxu3  ;;  %v150_v53 = vpop.f32.mrf.mxu2 }
 0x12a   :  { %v128_v54 = vadd.f32 %v127_v52, %v96_v46  ;;  %v151_v55 = vadd.f32 %v150_v53, %v97_v49 }
 0x12c   :  { %155 = vst [vmem:[%s299_s5 + $0x10] sm:$0xff] %v128_v54 }
 0x12d   :  { %156 = vst [vmem:[%s299_s5 + $0x18] sm:$0xff] %v151_v55 }

// kernel: end_to_end_forward.9
= control target key start
LH: loop header
LB: loop body
LE: loop exit
PB: predicated region body
PF: predicated region fallthrough
CT: control target
= control target key end

     0   :  { %vm304_vm0 = vcmask 523264   ;;  %s694_s1 = inlined_call_operand.vmem [shape: f32[256,256], index: 1, kind: input, shape index: {}]   ;;  %s695_s0 = inlined_call_operand.vmem [shape: f32[16,256], index: 0, kind: input, shape index: {}]   ;;  %s696_s3 = inlined_call_operand.vmem [shape: f32[256,64], index: 3, kind: input, shape index: {}]   ;;  %s697_s4 = inlined_call_operand.vmem [shape: f32[1,64], index: 4, kind: input, shape index: {}]   ;;  %s698_s2 = inlined_call_operand.vmem [shape: f32[1,256], index: 2, kind: input, shape index: {}]   ;;  %s699_s5 = inlined_call_operand.vmem [shape: f32[16,64], index: 5, kind: output, shape index: {}]  }
   0x1   :  { %v54_v0 = vld [vmem:[%s694_s1 + $0xf0] sm:$0xff]  ;;  %v55_v1 = vld [vmem:[%s694_s1 + $0xf8] sm:$0xff]  ;;  %v52_v2 = vld [vmem:[%s694_s1 + $0xe0] sm:$0xff] }
   0x2   :  { %94 = vmatpush.msra.mxu0 %v54_v0  ;;  %140 = vmatpush.msra.mxu2 %v55_v1  ;;  %v86_v3 = vld [vmem:[%s694_s1 + $0x1f0] sm:$0xff]  ;;  %v53_v4 = vld [vmem:[%s694_s1 + $0xe8] sm:$0xff]  ;;  %v87_v5 = vld [vmem:[%s694_s1 + $0x1f8] sm:$0xff] }
   0x3   :  { %117 = vmatpush.msra.mxu1 %v86_v3  ;;  %163 = vmatpush.msra.mxu3 %v87_v5  ;;  %v50_v6 = vld [vmem:[%s694_s1 + $0xd0] sm:$0xff]  ;;  %v84_v7 = vld [vmem:[%s694_s1 + $0x1e0] sm:$0xff]  ;;  %v51_v8 = vld [vmem:[%s694_s1 + $0xd8] sm:$0xff] }
   0x4   :  { %95 = vmatpush.msra.mxu0 %v52_v2  ;;  %141 = vmatpush.msra.mxu2 %v53_v4  ;;  %v85_v9 = vld [vmem:[%s694_s1 + $0x1e8] sm:$0xff]  ;;  %v82_v10 = vld [vmem:[%s694_s1 + $0x1d0] sm:$0xff]  ;;  %v48_v11 = vld [vmem:[%s694_s1 + $0xc0] sm:$0xff] }
   0x5   :  { %118 = vmatpush.msra.mxu1 %v84_v7  ;;  %164 = vmatpush.msra.mxu3 %v85_v9  ;;  %v49_v12 = vld [vmem:[%s694_s1 + $0xc8] sm:$0xff]  ;;  %v83_v13 = vld [vmem:[%s694_s1 + $0x1d8] sm:$0xff]  ;;  %v80_v14 = vld [vmem:[%s694_s1 + $0x1c0] sm:$0xff] }
   0x6   :  { %96 = vmatpush.msra.mxu0 %v50_v6  ;;  %142 = vmatpush.msra.mxu2 %v51_v8  ;;  %v81_v15 = vld [vmem:[%s694_s1 + $0x1c8] sm:$0xff]  ;;  %v46_v16 = vld [vmem:[%s694_s1 + $0xb0] sm:$0xff]  ;;  %v47_v17 = vld [vmem:[%s694_s1 + $0xb8] sm:$0xff] }
   0x7   :  { %119 = vmatpush.msra.mxu1 %v82_v10  ;;  %165 = vmatpush.msra.mxu3 %v83_v13  ;;  %v78_v18 = vld [vmem:[%s694_s1 + $0x1b0] sm:$0xff]  ;;  %v79_v19 = vld [vmem:[%s694_s1 + $0x1b8] sm:$0xff]  ;;  %v44_v20 = vld [vmem:[%s694_s1 + $0xa0] sm:$0xff] }
   0x8   :  { %97 = vmatpush.msra.mxu0 %v48_v11  ;;  %143 = vmatpush.msra.mxu2 %v49_v12  ;;  %v45_v21 = vld [vmem:[%s694_s1 + $0xa8] sm:$0xff]  ;;  %v76_v22 = vld [vmem:[%s694_s1 + $0x1a0] sm:$0xff]  ;;  %v42_v24 = vld [vmem:[%s694_s1 + $0x90] sm:$0xff] }
   0x9   :  { %120 = vmatpush.msra.mxu1 %v80_v14  ;;  %166 = vmatpush.msra.mxu3 %v81_v15  ;;  %v77_v23 = vld [vmem:[%s694_s1 + $0x1a8] sm:$0xff]  ;;  %v43_v25 = vld [vmem:[%s694_s1 + $0x98] sm:$0xff]  ;;  %v74_v26 = vld [vmem:[%s694_s1 + $0x190] sm:$0xff] }
   0xa   :  { %98 = vmatpush.msra.mxu0 %v46_v16  ;;  %144 = vmatpush.msra.mxu2 %v47_v17  ;;  %v75_v27 = vld [vmem:[%s694_s1 + $0x198] sm:$0xff]  ;;  %v40_v28 = vld [vmem:[%s694_s1 + $0x80] sm:$0xff]  ;;  %v41_v29 = vld [vmem:[%s694_s1 + $0x88] sm:$0xff] }
   0xb   :  { %121 = vmatpush.msra.mxu1 %v78_v18  ;;  %167 = vmatpush.msra.mxu3 %v79_v19  ;;  %v72_v30 = vld [vmem:[%s694_s1 + $0x180] sm:$0xff]  ;;  %v73_v31 = vld [vmem:[%s694_s1 + $0x188] sm:$0xff]  ;;  %v38_v32 = vld [vmem:[%s694_s1 + $0x70] sm:$0xff] }
   0xc   :  { %99 = vmatpush.msra.mxu0 %v44_v20  ;;  %145 = vmatpush.msra.mxu2 %v45_v21  ;;  %v39_v33 = vld [vmem:[%s694_s1 + $0x78] sm:$0xff]  ;;  %v70_v34 = vld [vmem:[%s694_s1 + $0x170] sm:$0xff]  ;;  %v36_v36 = vld [vmem:[%s694_s1 + $0x60] sm:$0xff] }
   0xd   :  { %122 = vmatpush.msra.mxu1 %v76_v22  ;;  %168 = vmatpush.msra.mxu3 %v77_v23  ;;  %v71_v35 = vld [vmem:[%s694_s1 + $0x178] sm:$0xff]  ;;  %v37_v37 = vld [vmem:[%s694_s1 + $0x68] sm:$0xff]  ;;  %v68_v38 = vld [vmem:[%s694_s1 + $0x160] sm:$0xff] }
   0xe   :  { %100 = vmatpush.msra.mxu0 %v42_v24  ;;  %146 = vmatpush.msra.mxu2 %v43_v25  ;;  %v69_v39 = vld [vmem:[%s694_s1 + $0x168] sm:$0xff]  ;;  %v34_v40 = vld [vmem:[%s694_s1 + $0x50] sm:$0xff]  ;;  %v35_v41 = vld [vmem:[%s694_s1 + $0x58] sm:$0xff] }
   0xf   :  { %123 = vmatpush.msra.mxu1 %v74_v26  ;;  %169 = vmatpush.msra.mxu3 %v75_v27  ;;  %v66_v42 = vld [vmem:[%s694_s1 + $0x150] sm:$0xff]  ;;  %v67_v43 = vld [vmem:[%s694_s1 + $0x158] sm:$0xff]  ;;  %v32_v44 = vld [vmem:[%s694_s1 + $0x40] sm:$0xff] }
  0x10   :  { %101 = vmatpush.msra.mxu0 %v40_v28  ;;  %147 = vmatpush.msra.mxu2 %v41_v29  ;;  %v33_v45 = vld [vmem:[%s694_s1 + $0x48] sm:$0xff]  ;;  %v64_v46 = vld [vmem:[%s694_s1 + $0x140] sm:$0xff]  ;;  %v30_v48 = vld [vmem:[%s694_s1 + $0x30] sm:$0xff] }
  0x11   :  { %124 = vmatpush.msra.mxu1 %v72_v30  ;;  %170 = vmatpush.msra.mxu3 %v73_v31  ;;  %v65_v47 = vld [vmem:[%s694_s1 + $0x148] sm:$0xff]  ;;  %v31_v49 = vld [vmem:[%s694_s1 + $0x38] sm:$0xff]  ;;  %v62_v50 = vld [vmem:[%s694_s1 + $0x130] sm:$0xff] }
  0x12   :  { %102 = vmatpush.msra.mxu0 %v38_v32  ;;  %148 = vmatpush.msra.mxu2 %v39_v33  ;;  %v63_v51 = vld [vmem:[%s694_s1 + $0x138] sm:$0xff]  ;;  %v28_v52 = vld [vmem:[%s694_s1 + $0x20] sm:$0xff]  ;;  %v29_v53 = vld [vmem:[%s694_s1 + $0x28] sm:$0xff] }
  0x13   :  { %125 = vmatpush.msra.mxu1 %v70_v34  ;;  %171 = vmatpush.msra.mxu3 %v71_v35  ;;  %v60_v54 = vld [vmem:[%s694_s1 + $0x120] sm:$0xff]  ;;  %v61_v55 = vld [vmem:[%s694_s1 + $0x128] sm:$0xff]  ;;  %v26_v56 = vld [vmem:[%s694_s1 + $0x10] sm:$0xff] }
  0x14   :  { %103 = vmatpush.msra.mxu0 %v36_v36  ;;  %149 = vmatpush.msra.mxu2 %v37_v37  ;;  %v27_v57 = vld [vmem:[%s694_s1 + $0x18] sm:$0xff]  ;;  %v58_v58 = vld [vmem:[%s694_s1 + $0x110] sm:$0xff]  ;;  %v24_v60 = vld [vmem:[%s694_s1] sm:$0xff] }
  0x15   :  { %126 = vmatpush.msra.mxu1 %v68_v38  ;;  %172 = vmatpush.msra.mxu3 %v69_v39  ;;  %v59_v59 = vld [vmem:[%s694_s1 + $0x118] sm:$0xff]  ;;  %v25_v61 = vld [vmem:[%s694_s1 + $0x8] sm:$0xff]  ;;  %v20_v62 = vld [vmem:[%s695_s0] sm:$0xff] }
  0x16   :  { %104 = vmatpush.msra.mxu0 %v34_v40  ;;  %150 = vmatpush.msra.mxu2 %v35_v41  ;;  %v56_v63 = vld [vmem:[%s694_s1 + $0x100] sm:$0xff]  ;;  %v57_v0 = vld [vmem:[%s694_s1 + $0x108] sm:$0xff]  ;;  %v237_v2 = vld [vmem:[%s696_s3 + $0x78] sm:$0xff] }
  0x17   :  { %127 = vmatpush.msra.mxu1 %v66_v42  ;;  %173 = vmatpush.msra.mxu3 %v67_v43  ;;  %v21_v1 = vld [vmem:[%s695_s0 + $0x8] sm:$0xff]  ;;  %v236_v3 = vld [vmem:[%s696_s3 + $0x70] sm:$0xff]  ;;  %v23_v6 = vld [vmem:[%s695_s0 + $0x18] sm:$0xff] }
  0x18   :  { %105 = vmatpush.msra.mxu0 %v32_v44  ;;  %151 = vmatpush.msra.mxu2 %v33_v45  ;;  %v235_v4 = vld [vmem:[%s696_s3 + $0x68] sm:$0xff]  ;;  %v22_v5 = vld [vmem:[%s695_s0 + $0x10] sm:$0xff]  ;;  %v234_v7 = vld [vmem:[%s696_s3 + $0x60] sm:$0xff] }
  0x19   :  { %128 = vmatpush.msra.mxu1 %v64_v46  ;;  %174 = vmatpush.msra.mxu3 %v65_v47  ;;  %v253_v8 = vld [vmem:[%s696_s3 + $0xf8] sm:$0xff]  ;;  %v252_v10 = vld [vmem:[%s696_s3 + $0xf0] sm:$0xff]  ;;  %v251_v12 = vld [vmem:[%s696_s3 + $0xe8] sm:$0xff] }
  0x1a   :  { %106 = vmatpush.msra.mxu0 %v30_v48  ;;  %152 = vmatpush.msra.mxu2 %v31_v49  ;;  %v233_v9 = vld [vmem:[%s696_s3 + $0x58] sm:$0xff]  ;;  %v232_v11 = vld [vmem:[%s696_s3 + $0x50] sm:$0xff]  ;;  %v231_v13 = vld [vmem:[%s696_s3 + $0x48] sm:$0xff] }
  0x1b   :  { %129 = vmatpush.msra.mxu1 %v62_v50  ;;  %175 = vmatpush.msra.mxu3 %v63_v51  ;;  %v250_v14 = vld [vmem:[%s696_s3 + $0xe0] sm:$0xff]  ;;  %v249_v16 = vld [vmem:[%s696_s3 + $0xd8] sm:$0xff]  ;;  %v248_v18 = vld [vmem:[%s696_s3 + $0xd0] sm:$0xff] }
  0x1c   :  { %107 = vmatpush.msra.mxu0 %v28_v52  ;;  %153 = vmatpush.msra.mxu2 %v29_v53  ;;  %v230_v15 = vld [vmem:[%s696_s3 + $0x40] sm:$0xff]  ;;  %v229_v17 = vld [vmem:[%s696_s3 + $0x38] sm:$0xff]  ;;  %v228_v19 = vld [vmem:[%s696_s3 + $0x30] sm:$0xff] }
  0x1d   :  { %130 = vmatpush.msra.mxu1 %v60_v54  ;;  %176 = vmatpush.msra.mxu3 %v61_v55  ;;  %v247_v20 = vld [vmem:[%s696_s3 + $0xc8] sm:$0xff]  ;;  %v246_v22 = vld [vmem:[%s696_s3 + $0xc0] sm:$0xff]  ;;  %v245_v24 = vld [vmem:[%s696_s3 + $0xb8] sm:$0xff] }
  0x1e   :  { %108 = vmatpush.msra.mxu0 %v26_v56  ;;  %154 = vmatpush.msra.mxu2 %v27_v57  ;;  %v227_v21 = vld [vmem:[%s696_s3 + $0x28] sm:$0xff]  ;;  %v226_v23 = vld [vmem:[%s696_s3 + $0x20] sm:$0xff]  ;;  %v225_v25 = vld [vmem:[%s696_s3 + $0x18] sm:$0xff] }
  0x1f   :  { %131 = vmatpush.msra.mxu1 %v58_v58  ;;  %177 = vmatpush.msra.mxu3 %v59_v59  ;;  %v244_v26 = vld [vmem:[%s696_s3 + $0xb0] sm:$0xff]  ;;  %v243_v28 = vld [vmem:[%s696_s3 + $0xa8] sm:$0xff]  ;;  %v242_v30 = vld [vmem:[%s696_s3 + $0xa0] sm:$0xff] }
  0x20   :  { %109 = vmatpush.msra.mxu0 %v24_v60  ;;  %155 = vmatpush.msra.mxu2 %v25_v61  ;;  %v224_v27 = vld [vmem:[%s696_s3 + $0x10] sm:$0xff]  ;;  %v223_v29 = vld [vmem:[%s696_s3 + $0x8] sm:$0xff]  ;;  %v222_v31 = vld [vmem:[%s696_s3] sm:$0xff] }
  0x21   :  { %110 = vmatmul.f32.vlgmr.msra.gmra.mxu0 %v20_v62  ;;  %156 = vmatmul.f32.vlgmr.msra.gmra.mxu2 %v20_v62  ;;  %v241_v32 = vld [vmem:[%s696_s3 + $0x98] sm:$0xff]  ;;  %v88_v33 = vld [vmem:[%s698_s2] sm:$0x3]  ;;  %v240_v34 = vld [vmem:[%s696_s3 + $0x90] sm:$0xff] }
  0x22   :  { %132 = vmatpush.msra.mxu1 %v56_v63  ;;  %178 = vmatpush.msra.mxu3 %v57_v0  ;;  %v239_v35 = vld [vmem:[%s696_s3 + $0x88] sm:$0xff]  ;;  %v238_v36 = vld [vmem:[%s696_s3 + $0x80] sm:$0xff]  ;;  %v90_v37 = vperm.slane %v88_v33, 0  ;;  %v91_v42 = vperm.slane %v88_v33, 1 }
  0x23   :  { %133 = vmatmul.f32.vlgmr.msra.gmra.mxu1 %v21_v1  ;;  %179 = vmatmul.f32.vlgmr.msra.gmra.mxu3 %v21_v1 }
  0x24   :  { %258 = vmatpush.msrb.mxu0 %v237_v2  ;;  %311 = vmatpush.msrb.mxu2 %v237_v2 }
  0x25   :  { %281 = vmatpush.msrb.mxu1 %v253_v8  ;;  %327 = vmatpush.msrb.mxu3 %v253_v8 }
  0x26   :  { %259 = vmatpush.msrb.mxu0 %v236_v3  ;;  %312 = vmatpush.msrb.mxu2 %v236_v3 }
  0x27   :  { %282 = vmatpush.msrb.mxu1 %v252_v10  ;;  %328 = vmatpush.msrb.mxu3 %v252_v10 }
  0x28   :  { %260 = vmatpush.msrb.mxu0 %v235_v4  ;;  %313 = vmatpush.msrb.mxu2 %v235_v4 }
  0x29   :  { %113 = vmatmul.f32.gmra.mxu0 %v22_v5  ;;  %159 = vmatmul.f32.gmra.mxu2 %v22_v5 }
  0x2a   :  { %261 = vmatpush.msrb.mxu0 %v234_v7  ;;  %314 = vmatpush.msrb.mxu2 %v234_v7 }
  0x2b   :  { %136 = vmatmul.f32.gmra.mxu1 %v23_v6  ;;  %182 = vmatmul.f32.gmra.mxu3 %v23_v6 }
  0x2c   :  { %262 = vmatpush.msrb.mxu0 %v233_v9  ;;  %315 = vmatpush.msrb.mxu2 %v233_v9 }
  0x2d   :  { %283 = vmatpush.msrb.mxu1 %v251_v12  ;;  %329 = vmatpush.msrb.mxu3 %v251_v12 }
  0x2e   :  { %263 = vmatpush.msrb.mxu0 %v232_v11  ;;  %316 = vmatpush.msrb.mxu2 %v232_v11 }
  0x2f   :  { %284 = vmatpush.msrb.mxu1 %v250_v14  ;;  %330 = vmatpush.msrb.mxu3 %v250_v14 }
  0x30   :  { %264 = vmatpush.msrb.mxu0 %v231_v13  ;;  %317 = vmatpush.msrb.mxu2 %v231_v13 }
  0x31   :  { %285 = vmatpush.msrb.mxu1 %v249_v16  ;;  %331 = vmatpush.msrb.mxu3 %v249_v16 }
  0x32   :  { %265 = vmatpush.msrb.mxu0 %v230_v15  ;;  %318 = vmatpush.msrb.mxu2 %v230_v15 }
  0x33   :  { %286 = vmatpush.msrb.mxu1 %v248_v18  ;;  %332 = vmatpush.msrb.mxu3 %v248_v18 }
  0x34   :  { %266 = vmatpush.msrb.mxu0 %v229_v17  ;;  %319 = vmatpush.msrb.mxu2 %v229_v17 }
  0x35   :  { %287 = vmatpush.msrb.mxu1 %v247_v20  ;;  %333 = vmatpush.msrb.mxu3 %v247_v20 }
  0x36   :  { %267 = vmatpush.msrb.mxu0 %v228_v19  ;;  %320 = vmatpush.msrb.mxu2 %v228_v19 }
  0x37   :  { %288 = vmatpush.msrb.mxu1 %v246_v22  ;;  %334 = vmatpush.msrb.mxu3 %v246_v22 }
  0x38   :  { %268 = vmatpush.msrb.mxu0 %v227_v21  ;;  %321 = vmatpush.msrb.mxu2 %v227_v21 }
  0x39   :  { %289 = vmatpush.msrb.mxu1 %v245_v24  ;;  %335 = vmatpush.msrb.mxu3 %v245_v24 }
  0x3a   :  { %269 = vmatpush.msrb.mxu0 %v226_v23  ;;  %322 = vmatpush.msrb.mxu2 %v226_v23 }
  0x3b   :  { %290 = vmatpush.msrb.mxu1 %v244_v26  ;;  %336 = vmatpush.msrb.mxu3 %v244_v26 }
  0x3c   :  { %270 = vmatpush.msrb.mxu0 %v225_v25  ;;  %323 = vmatpush.msrb.mxu2 %v225_v25 }
  0x3d   :  { %291 = vmatpush.msrb.mxu1 %v243_v28  ;;  %337 = vmatpush.msrb.mxu3 %v243_v28 }
  0x3e   :  { %271 = vmatpush.msrb.mxu0 %v224_v27  ;;  %324 = vmatpush.msrb.mxu2 %v224_v27  ;;  %v343_v27 = vld [vmem:[%s697_s4] ss:$0 sm:$0xff] }
  0x3f   :  { %292 = vmatpush.msrb.mxu1 %v242_v30  ;;  %338 = vmatpush.msrb.mxu3 %v242_v30 }
  0x40   :  { %272 = vmatpush.msrb.mxu0 %v223_v29  ;;  %325 = vmatpush.msrb.mxu2 %v223_v29 }
  0x41   :  { %293 = vmatpush.msrb.mxu1 %v241_v32  ;;  %339 = vmatpush.msrb.mxu3 %v241_v32 }
  0x42   :  { %273 = vmatpush.msrb.mxu0 %v222_v31  ;;  %326 = vmatpush.msrb.mxu2 %v222_v31 }
  0x43   :  { %294 = vmatpush.msrb.mxu1 %v240_v34  ;;  %340 = vmatpush.msrb.mxu3 %v240_v34 }
  0x45   :  { %295 = vmatpush.msrb.mxu1 %v239_v35  ;;  %341 = vmatpush.msrb.mxu3 %v239_v35 }
  0x47   :  { %296 = vmatpush.msrb.mxu1 %v238_v36  ;;  %342 = vmatpush.msrb.mxu3 %v238_v36 }
  0x9e   :  { %v111_v38 = vpop.f32.mrf.mxu0 }
  0x9f   :  { %v112_v39 = vadd.f32 %v111_v38, %v90_v37 }
  0xa0   :  { %v134_v40 = vpop.f32.mrf.mxu1 }
  0xa1   :  { %v135_v41 = vadd.f32 %v134_v40, %v112_v39 }
  0xa3   :  { %v190_v43 = vmul.f32 0.044715, %v135_v41  ;;  %v186_v9 = vmul.f32 0.5, %v135_v41 }
  0xa4   :  { %v157_v44 = vpop.f32.mrf.mxu2 }
  0xa5   :  { %v158_v45 = vadd.f32 %v157_v44, %v91_v42  ;;  %v194_v46 = vmul.f32 %v190_v43, %v135_v41 }
  0xa6   :  { %v114_v47 = vpop.f32.mrf.mxu0  ;;  %v180_v48 = vpop.f32.mrf.mxu3 }
  0xa7   :  { %v115_v49 = vadd.f32 %v114_v47, %v90_v37  ;;  %v181_v50 = vadd.f32 %v180_v48, %v158_v45  ;;  %v198_v51 = vmul.f32 %v194_v46, %v135_v41 }
  0xa8   :  { %v137_v52 = vpop.f32.mrf.mxu1 }
  0xa9   :  { %v191_v53 = vmul.f32 0.044715, %v181_v50  ;;  %v138_v54 = vadd.f32 %v137_v52, %v115_v49  ;;  %v202_v55 = vadd.f32 %v198_v51, %v135_v41  ;;  %v187_v16 = vmul.f32 0.5, %v181_v50 }
  0xab   :  { %v192_v56 = vmul.f32 0.044715, %v138_v54  ;;  %v206_v57 = vmul.f32 0.7978846, %v202_v55  ;;  %v195_v58 = vmul.f32 %v191_v53, %v181_v50  ;;  %v188_v20 = vmul.f32 0.5, %v138_v54 }
  0xac   :  { %v160_v59 = vpop.f32.mrf.mxu2 }
  0xad   :  { %v161_v60 = vadd.f32 %v160_v59, %v91_v42  ;;  %344 = vtanh.f32 %v206_v57  ;;  %v199_v61 = vmul.f32 %v195_v58, %v181_v50  ;;  %v196_v62 = vmul.f32 %v192_v56, %v138_v54 }
  0xae   :  { %v183_v63 = vpop.f32.mrf.mxu3 }
  0xaf   :  { %v184_v0 = vadd.f32 %v183_v63, %v161_v60  ;;  %v203_v1 = vadd.f32 %v199_v61, %v181_v50  ;;  %v200_v2 = vmul.f32 %v196_v62, %v138_v54 }
  0xb1   :  { %v193_v3 = vmul.f32 0.044715, %v184_v0  ;;  %v207_v4 = vmul.f32 0.7978846, %v203_v1  ;;  %v204_v5 = vadd.f32 %v200_v2, %v138_v54  ;;  %v189_v24 = vmul.f32 0.5, %v184_v0 }
  0xb3   :  { %v345_v6 = vpop.eup %344  ;;  %346 = vtanh.f32 %v207_v4  ;;  %v208_v7 = vmul.f32 0.7978846, %v204_v5  ;;  %v197_v8 = vmul.f32 %v193_v3, %v184_v0 }
  0xb4   :  { %v214_v10 = vadd.f32 1.0, %v345_v6 }
  0xb5   :  { %348 = vtanh.f32 %v208_v7  ;;  %v201_v11 = vmul.f32 %v197_v8, %v184_v0 }
  0xb6   :  { %v218_v12 = vmul.f32 %v214_v10, %v186_v9 }
  0xb7   :  { %v205_v13 = vadd.f32 %v201_v11, %v184_v0 }
  0xb8   :  { %274 = vmatmul.f32.vlgmr.msrb.gmra.mxu0 %v218_v12 }
  0xb9   :  { %v347_v14 = vpop.eup %346  ;;  %v209_v15 = vmul.f32 0.7978846, %v205_v13 }
  0xba   :  { %v215_v17 = vadd.f32 1.0, %v347_v14 }
  0xbb   :  { %v349_v18 = vpop.eup %348  ;;  %350 = vtanh.f32 %v209_v15 }
  0xbc   :  { %v219_v19 = vmul.f32 %v215_v17, %v187_v16  ;;  %v216_v21 = vadd.f32 1.0, %v349_v18 }
  0xbe   :  { %297 = vmatmul.f32.vlgmr.msrb.gmra.mxu1 %v219_v19  ;;  %v220_v22 = vmul.f32 %v216_v21, %v188_v20 }
  0xc0   :  { %277 = vmatmul.f32.vlgmr.msrb.gmra.mxu2 %v220_v22 }
  0xc1   :  { %v351_v23 = vpop.eup %350 }
  0xc2   :  { %v217_v25 = vadd.f32 1.0, %v351_v23 }
  0xc4   :  { %v221_v26 = vmul.f32 %v217_v25, %v189_v24 }
  0xc6   :  { %300 = vmatmul.f32.vlgmr.msrb.gmra.mxu3 %v221_v26 }
 0x135   :  { %v275_v28 = vpop.f32.mrf.mxu0 }
 0x136   :  { %v276_v29 = vadd.f32 %v343_v27, %v275_v28 }
 0x13b   :  { %v298_v30 = vpop.f32.mrf.mxu1 }
 0x13c   :  { %v299_v31 = vadd.f32 %v298_v30, %v276_v29 }
 0x13e   :  { %305 = vst.msk [vmem:[%s699_s5] sm:$0xff] %vm304_vm0, %v299_v31 }
 0x143   :  { %v278_v32 = vpop.f32.mrf.mxu2 }
 0x144   :  { %v279_v33 = vadd.f32 %v343_v27, %v278_v32 }
 0x149   :  { %v301_v34 = vpop.f32.mrf.mxu3 }
 0x14a   :  { %v302_v35 = vadd.f32 %v301_v34, %v279_v33 }
 0x14c   :  { %306 = vst.msk [vmem:[%s699_s5 + $0x8] sm:$0xff] %vm304_vm0, %v302_v35 }

// kernel: end_to_end_forward.15
= control target key start
LH: loop header
LB: loop body
LE: loop exit
PB: predicated region body
PF: predicated region fallthrough
CT: control target
= control target key end

     0   :  { %10 = vsyncpa [#allocation3], 0  ;;  %s1171_s21 = smov [#allocation2]   ;;  %s1172_s23 = smov 256   ;;  %s1647_s0 = inlined_call_operand.vmem [shape: f32[16,64], index: 0, kind: input, shape index: {}]   ;;  %s1648_s1 = inlined_call_operand.vmem [shape: f32[64,1024], index: 1, kind: input, shape index: {}]   ;;  %s1649_s2 = inlined_call_operand.vmem [shape: f32[1,1024], index: 2, kind: input, shape index: {}]   ;;  %s1650_s3 = inlined_call_operand.hbm [shape: f32[1024,256], index: 3, kind: input, shape index: {}]   ;;  %s1651_s4 = inlined_call_operand.vmem [shape: f32[1,256], index: 4, kind: input, shape index: {}]   ;;  %s1652_s5 = inlined_call_operand.vmem [shape: f32[16,256], index: 5, kind: output, shape index: {}]  }
   0x1   :  { %s21_s20 = sshll.u32 %s1650_s3, 4  ;;  %s23_s22 = sshll.u32 %s1171_s21, 4  ;;  %s22_s20 = int_to_ptr.hbm [resolvable:$true] %s21_s20  ;;  %s24_s22 = int_to_ptr.vmem [resolvable:$true] %s23_s22 }
   0x2   :  { %s1173_s24 = smov 16  }
   0x3   :  { %29 = dma.hbm_to_vmem [thread:$0]  %s22_s20, 32768, %s24_s22, [#allocation3], %s1172_s23, %s1172_s23, %s1173_s24  }
   0x4   :  { %1169 = dma.done.wait [#allocation3], 32768  }
   0x5   :  { %1170 = vsyncadd [#allocation3], 4294934528  ;;  %v94_v0 = vld [vmem:[%s1648_s1 + $0x1c0] sm:$0xff]  ;;  %v95_v1 = vld [vmem:[%s1648_s1 + $0x1c8] sm:$0xff]  ;;  %vm120_vm0 = vcmask 523264  }
   0x6   :  { %v96_v2 = vld [vmem:[%s1648_s1 + $0x1d0] sm:$0xff]  ;;  %135 = vmatpush.msra.mxu0 %v94_v0  ;;  %158 = vmatpush.msra.mxu1 %v95_v1  ;;  %v97_v3 = vld [vmem:[%s1648_s1 + $0x1d8] sm:$0xff]  ;;  %v86_v4 = vld [vmem:[%s1648_s1 + $0x180] sm:$0xff] }
   0x7   :  { %v87_v5 = vld [vmem:[%s1648_s1 + $0x188] sm:$0xff]  ;;  %181 = vmatpush.msra.mxu2 %v96_v2  ;;  %204 = vmatpush.msra.mxu3 %v97_v3  ;;  %v88_v6 = vld [vmem:[%s1648_s1 + $0x190] sm:$0xff]  ;;  %v89_v7 = vld [vmem:[%s1648_s1 + $0x198] sm:$0xff] }
   0x8   :  { %v78_v8 = vld [vmem:[%s1648_s1 + $0x140] sm:$0xff]  ;;  %136 = vmatpush.msra.mxu0 %v86_v4  ;;  %159 = vmatpush.msra.mxu1 %v87_v5  ;;  %v79_v9 = vld [vmem:[%s1648_s1 + $0x148] sm:$0xff]  ;;  %v80_v10 = vld [vmem:[%s1648_s1 + $0x150] sm:$0xff] }
   0x9   :  { %v81_v11 = vld [vmem:[%s1648_s1 + $0x158] sm:$0xff]  ;;  %182 = vmatpush.msra.mxu2 %v88_v6  ;;  %205 = vmatpush.msra.mxu3 %v89_v7  ;;  %v70_v12 = vld [vmem:[%s1648_s1 + $0x100] sm:$0xff]  ;;  %v71_v13 = vld [vmem:[%s1648_s1 + $0x108] sm:$0xff] }
   0xa   :  { %137 = vmatpush.msra.mxu0 %v78_v8  ;;  %160 = vmatpush.msra.mxu1 %v79_v9  ;;  %v72_v14 = vld [vmem:[%s1648_s1 + $0x110] sm:$0xff]  ;;  %v73_v15 = vld [vmem:[%s1648_s1 + $0x118] sm:$0xff]  ;;  %v62_v16 = vld [vmem:[%s1648_s1 + $0xc0] sm:$0xff] }
   0xb   :  { %183 = vmatpush.msra.mxu2 %v80_v10  ;;  %206 = vmatpush.msra.mxu3 %v81_v11  ;;  %v63_v17 = vld [vmem:[%s1648_s1 + $0xc8] sm:$0xff]  ;;  %v64_v18 = vld [vmem:[%s1648_s1 + $0xd0] sm:$0xff]  ;;  %v65_v19 = vld [vmem:[%s1648_s1 + $0xd8] sm:$0xff] }
   0xc   :  { %138 = vmatpush.msra.mxu0 %v70_v12  ;;  %161 = vmatpush.msra.mxu1 %v71_v13  ;;  %v54_v20 = vld [vmem:[%s1648_s1 + $0x80] sm:$0xff]  ;;  %v55_v21 = vld [vmem:[%s1648_s1 + $0x88] sm:$0xff]  ;;  %v56_v22 = vld [vmem:[%s1648_s1 + $0x90] sm:$0xff] }
   0xd   :  { %184 = vmatpush.msra.mxu2 %v72_v14  ;;  %207 = vmatpush.msra.mxu3 %v73_v15  ;;  %v57_v23 = vld [vmem:[%s1648_s1 + $0x98] sm:$0xff]  ;;  %v46_v24 = vld [vmem:[%s1648_s1 + $0x40] sm:$0xff]  ;;  %v47_v25 = vld [vmem:[%s1648_s1 + $0x48] sm:$0xff] }
   0xe   :  { %139 = vmatpush.msra.mxu0 %v62_v16  ;;  %162 = vmatpush.msra.mxu1 %v63_v17  ;;  %v48_v26 = vld [vmem:[%s1648_s1 + $0x50] sm:$0xff]  ;;  %v49_v27 = vld [vmem:[%s1648_s1 + $0x58] sm:$0xff]  ;;  %v38_v28 = vld [vmem:[%s1648_s1] sm:$0xff] }
   0xf   :  { %185 = vmatpush.msra.mxu2 %v64_v18  ;;  %208 = vmatpush.msra.mxu3 %v65_v19  ;;  %v39_v29 = vld [vmem:[%s1648_s1 + $0x8] sm:$0xff]  ;;  %v40_v30 = vld [vmem:[%s1648_s1 + $0x10] sm:$0xff]  ;;  %v41_v31 = vld [vmem:[%s1648_s1 + $0x18] sm:$0xff] }
  0x10   :  { %140 = vmatpush.msra.mxu0 %v54_v20  ;;  %163 = vmatpush.msra.mxu1 %v55_v21  ;;  %v1306_v32 = vld [vmem:[%s1647_s0] sm:$0xff]  ;;  %v99_v34 = vld [vmem:[%s1648_s1 + $0x1e8] sm:$0xff]  ;;  %v100_v35 = vld [vmem:[%s1648_s1 + $0x1f0] sm:$0xff] }
  0x11   :  { %186 = vmatpush.msra.mxu2 %v56_v22  ;;  %209 = vmatpush.msra.mxu3 %v57_v23  ;;  %v98_v33 = vld [vmem:[%s1648_s1 + $0x1e0] sm:$0xff]  ;;  %v101_v36 = vld [vmem:[%s1648_s1 + $0x1f8] sm:$0xff]  ;;  %v91_v38 = vld [vmem:[%s1648_s1 + $0x1a8] sm:$0xff] }
  0x12   :  { %141 = vmatpush.msra.mxu0 %v46_v24  ;;  %164 = vmatpush.msra.mxu1 %v47_v25  ;;  %v90_v37 = vld [vmem:[%s1648_s1 + $0x1a0] sm:$0xff]  ;;  %v92_v39 = vld [vmem:[%s1648_s1 + $0x1b0] sm:$0xff]  ;;  %v93_v40 = vld [vmem:[%s1648_s1 + $0x1b8] sm:$0xff] }
  0x13   :  { %187 = vmatpush.msra.mxu2 %v48_v26  ;;  %210 = vmatpush.msra.mxu3 %v49_v27  ;;  %v82_v41 = vld [vmem:[%s1648_s1 + $0x160] sm:$0xff]  ;;  %v83_v42 = vld [vmem:[%s1648_s1 + $0x168] sm:$0xff]  ;;  %v84_v43 = vld [vmem:[%s1648_s1 + $0x170] sm:$0xff] }
  0x14   :  { %142 = vmatpush.msra.mxu0 %v38_v28  ;;  %165 = vmatpush.msra.mxu1 %v39_v29  ;;  %v85_v44 = vld [vmem:[%s1648_s1 + $0x178] sm:$0xff]  ;;  %v74_v45 = vld [vmem:[%s1648_s1 + $0x120] sm:$0xff]  ;;  %v75_v46 = vld [vmem:[%s1648_s1 + $0x128] sm:$0xff] }
  0x15   :  { %188 = vmatpush.msra.mxu2 %v40_v30  ;;  %211 = vmatpush.msra.mxu3 %v41_v31  ;;  %v76_v47 = vld [vmem:[%s1648_s1 + $0x130] sm:$0xff]  ;;  %v77_v48 = vld [vmem:[%s1648_s1 + $0x138] sm:$0xff]  ;;  %v1367_v49 = vld [vmem:[%s1647_s0 + $0x8] sm:$0xff] }
  0x16   :  { %1094 = vmatmul.msk.f32.vlgmr.msra.gmra.mxu0 %vm120_vm0, %v1306_v32  ;;  %1096 = vmatmul.msk.f32.vlgmr.msra.gmra.mxu1 %vm120_vm0, %v1306_v32  ;;  %v66_v50 = vld [vmem:[%s1648_s1 + $0xe0] sm:$0xff]  ;;  %v67_v51 = vld [vmem:[%s1648_s1 + $0xe8] sm:$0xff]  ;;  %v68_v52 = vld [vmem:[%s1648_s1 + $0xf0] sm:$0xff] }
  0x17   :  { %1098 = vmatmul.msk.f32.vlgmr.msra.gmra.mxu2 %vm120_vm0, %v1306_v32  ;;  %1100 = vmatmul.msk.f32.vlgmr.msra.gmra.mxu3 %vm120_vm0, %v1306_v32  ;;  %v69_v53 = vld [vmem:[%s1648_s1 + $0xf8] sm:$0xff]  ;;  %v58_v54 = vld [vmem:[%s1648_s1 + $0xa0] sm:$0xff]  ;;  %v59_v55 = vld [vmem:[%s1648_s1 + $0xa8] sm:$0xff] }
  0x18   :  { %227 = vmatpush.msrb.mxu0 %v98_v33  ;;  %250 = vmatpush.msrb.mxu1 %v99_v34  ;;  %v60_v56 = vld [vmem:[%s1648_s1 + $0xb0] sm:$0xff]  ;;  %v61_v57 = vld [vmem:[%s1648_s1 + $0xb8] sm:$0xff]  ;;  %v50_v58 = vld [vmem:[%s1648_s1 + $0x60] sm:$0xff] }
  0x19   :  { %273 = vmatpush.msrb.mxu2 %v100_v35  ;;  %296 = vmatpush.msrb.mxu3 %v101_v36  ;;  %v51_v59 = vld [vmem:[%s1648_s1 + $0x68] sm:$0xff]  ;;  %v52_v60 = vld [vmem:[%s1648_s1 + $0x70] sm:$0xff]  ;;  %v53_v61 = vld [vmem:[%s1648_s1 + $0x78] sm:$0xff] }
  0x1a   :  { %228 = vmatpush.msrb.mxu0 %v90_v37  ;;  %251 = vmatpush.msrb.mxu1 %v91_v38  ;;  %v42_v62 = vld [vmem:[%s1648_s1 + $0x20] sm:$0xff]  ;;  %v43_v63 = vld [vmem:[%s1648_s1 + $0x28] sm:$0xff]  ;;  %v44_v0 = vld [vmem:[%s1648_s1 + $0x30] sm:$0xff] }
  0x1b   :  { %274 = vmatpush.msrb.mxu2 %v92_v39  ;;  %297 = vmatpush.msrb.mxu3 %v93_v40  ;;  %v45_v1 = vld [vmem:[%s1648_s1 + $0x38] sm:$0xff]  ;;  %v485_v2 = vld [vmem:[#allocation2 + $0xf0] sm:$0xff]  ;;  %v483_v6 = vld [vmem:[#allocation2 + $0xe0] sm:$0xff] }
  0x1c   :  { %229 = vmatpush.msrb.mxu0 %v82_v41  ;;  %252 = vmatpush.msrb.mxu1 %v83_v42  ;;  %v517_v3 = vld [vmem:[#allocation2 + $0x1f0] sm:$0xff]  ;;  %v515_v7 = vld [vmem:[#allocation2 + $0x1e0] sm:$0xff] }
  0x1d   :  { %275 = vmatpush.msrb.mxu2 %v84_v43  ;;  %298 = vmatpush.msrb.mxu3 %v85_v44  ;;  %v549_v4 = vld [vmem:[#allocation2 + $0x2f0] sm:$0xff]  ;;  %v547_v8 = vld [vmem:[#allocation2 + $0x2e0] sm:$0xff] }
  0x1e   :  { %230 = vmatpush.msrb.mxu0 %v74_v45  ;;  %253 = vmatpush.msrb.mxu1 %v75_v46  ;;  %v581_v5 = vld [vmem:[#allocation2 + $0x3f0] sm:$0xff]  ;;  %v579_v9 = vld [vmem:[#allocation2 + $0x3e0] sm:$0xff] }
  0x1f   :  { %276 = vmatpush.msrb.mxu2 %v76_v47  ;;  %299 = vmatpush.msrb.mxu3 %v77_v48  ;;  %v481_v10 = vld [vmem:[#allocation2 + $0xd0] sm:$0xff]  ;;  %v479_v14 = vld [vmem:[#allocation2 + $0xc0] sm:$0xff] }
  0x20   :  { %1095 = vmatmul.msk.f32.gmra.mxu0 %vm120_vm0, %v1367_v49  ;;  %1097 = vmatmul.msk.f32.gmra.mxu1 %vm120_vm0, %v1367_v49  ;;  %v513_v11 = vld [vmem:[#allocation2 + $0x1d0] sm:$0xff]  ;;  %v511_v15 = vld [vmem:[#allocation2 + $0x1c0] sm:$0xff] }
  0x21   :  { %1099 = vmatmul.msk.f32.gmra.mxu2 %vm120_vm0, %v1367_v49  ;;  %1101 = vmatmul.msk.f32.gmra.mxu3 %vm120_vm0, %v1367_v49  ;;  %v545_v12 = vld [vmem:[#allocation2 + $0x2d0] sm:$0xff]  ;;  %v543_v16 = vld [vmem:[#allocation2 + $0x2c0] sm:$0xff] }
  0x22   :  { %231 = vmatpush.msrb.mxu0 %v66_v50  ;;  %254 = vmatpush.msrb.mxu1 %v67_v51  ;;  %v577_v13 = vld [vmem:[#allocation2 + $0x3d0] sm:$0xff]  ;;  %v575_v17 = vld [vmem:[#allocation2 + $0x3c0] sm:$0xff] }
  0x23   :  { %277 = vmatpush.msrb.mxu2 %v68_v52  ;;  %300 = vmatpush.msrb.mxu3 %v69_v53  ;;  %v477_v18 = vld [vmem:[#allocation2 + $0xb0] sm:$0xff]  ;;  %v475_v22 = vld [vmem:[#allocation2 + $0xa0] sm:$0xff] }
  0x24   :  { %232 = vmatpush.msrb.mxu0 %v58_v54  ;;  %255 = vmatpush.msrb.mxu1 %v59_v55  ;;  %v509_v19 = vld [vmem:[#allocation2 + $0x1b0] sm:$0xff]  ;;  %v507_v23 = vld [vmem:[#allocation2 + $0x1a0] sm:$0xff] }
  0x25   :  { %278 = vmatpush.msrb.mxu2 %v60_v56  ;;  %301 = vmatpush.msrb.mxu3 %v61_v57  ;;  %v541_v20 = vld [vmem:[#allocation2 + $0x2b0] sm:$0xff]  ;;  %v539_v24 = vld [vmem:[#allocation2 + $0x2a0] sm:$0xff] }
  0x26   :  { %233 = vmatpush.msrb.mxu0 %v50_v58  ;;  %256 = vmatpush.msrb.mxu1 %v51_v59  ;;  %v573_v21 = vld [vmem:[#allocation2 + $0x3b0] sm:$0xff]  ;;  %v571_v25 = vld [vmem:[#allocation2 + $0x3a0] sm:$0xff] }
  0x27   :  { %279 = vmatpush.msrb.mxu2 %v52_v60  ;;  %302 = vmatpush.msrb.mxu3 %v53_v61  ;;  %v473_v26 = vld [vmem:[#allocation2 + $0x90] sm:$0xff]  ;;  %v471_v30 = vld [vmem:[#allocation2 + $0x80] sm:$0xff] }
  0x28   :  { %234 = vmatpush.msrb.mxu0 %v42_v62  ;;  %257 = vmatpush.msrb.mxu1 %v43_v63  ;;  %v505_v27 = vld [vmem:[#allocation2 + $0x190] sm:$0xff]  ;;  %v503_v31 = vld [vmem:[#allocation2 + $0x180] sm:$0xff] }
  0x29   :  { %280 = vmatpush.msrb.mxu2 %v44_v0  ;;  %303 = vmatpush.msrb.mxu3 %v45_v1  ;;  %v537_v28 = vld [vmem:[#allocation2 + $0x290] sm:$0xff]  ;;  %v567_v33 = vld [vmem:[#allocation2 + $0x380] sm:$0xff] }
  0x2a   :  { %1102 = vmatmul.msk.f32.vlgmr.msrb.gmra.mxu0 %vm120_vm0, %v1306_v32  ;;  %1104 = vmatmul.msk.f32.vlgmr.msrb.gmra.mxu1 %vm120_vm0, %v1306_v32  ;;  %v569_v29 = vld [vmem:[#allocation2 + $0x390] sm:$0xff]  ;;  %v467_v38 = vld [vmem:[#allocation2 + $0x60] sm:$0xff] }
  0x2b   :  { %1106 = vmatmul.msk.f32.vlgmr.msrb.gmra.mxu2 %vm120_vm0, %v1306_v32  ;;  %1108 = vmatmul.msk.f32.vlgmr.msrb.gmra.mxu3 %vm120_vm0, %v1306_v32  ;;  %v535_v32 = vld [vmem:[#allocation2 + $0x280] sm:$0xff]  ;;  %v469_v34 = vld [vmem:[#allocation2 + $0x70] sm:$0xff] }
  0x2c   :  { %717 = vmatpush.msra.mxu0 %v485_v2  ;;  %740 = vmatpush.msra.mxu1 %v517_v3  ;;  %v501_v35 = vld [vmem:[#allocation2 + $0x170] sm:$0xff]  ;;  %v499_v39 = vld [vmem:[#allocation2 + $0x160] sm:$0xff] }
  0x2d   :  { %763 = vmatpush.msra.mxu2 %v549_v4  ;;  %786 = vmatpush.msra.mxu3 %v581_v5  ;;  %v533_v36 = vld [vmem:[#allocation2 + $0x270] sm:$0xff]  ;;  %v531_v40 = vld [vmem:[#allocation2 + $0x260] sm:$0xff] }
  0x2e   :  { %718 = vmatpush.msra.mxu0 %v483_v6  ;;  %741 = vmatpush.msra.mxu1 %v515_v7  ;;  %v565_v37 = vld [vmem:[#allocation2 + $0x370] sm:$0xff]  ;;  %v563_v41 = vld [vmem:[#allocation2 + $0x360] sm:$0xff] }
  0x2f   :  { %764 = vmatpush.msra.mxu2 %v547_v8  ;;  %787 = vmatpush.msra.mxu3 %v579_v9  ;;  %v465_v42 = vld [vmem:[#allocation2 + $0x50] sm:$0xff]  ;;  %v463_v46 = vld [vmem:[#allocation2 + $0x40] sm:$0xff] }
  0x30   :  { %719 = vmatpush.msra.mxu0 %v481_v10  ;;  %742 = vmatpush.msra.mxu1 %v513_v11  ;;  %v497_v43 = vld [vmem:[#allocation2 + $0x150] sm:$0xff]  ;;  %v495_v47 = vld [vmem:[#allocation2 + $0x140] sm:$0xff] }
  0x31   :  { %765 = vmatpush.msra.mxu2 %v545_v12  ;;  %788 = vmatpush.msra.mxu3 %v577_v13  ;;  %v529_v44 = vld [vmem:[#allocation2 + $0x250] sm:$0xff]  ;;  %v527_v48 = vld [vmem:[#allocation2 + $0x240] sm:$0xff] }
  0x32   :  { %1103 = vmatmul.msk.f32.gmra.mxu0 %vm120_vm0, %v1367_v49  ;;  %1105 = vmatmul.msk.f32.gmra.mxu1 %vm120_vm0, %v1367_v49  ;;  %v561_v45 = vld [vmem:[#allocation2 + $0x350] sm:$0xff]  ;;  %v459_v54 = vld [vmem:[#allocation2 + $0x20] sm:$0xff] }
  0x33   :  { %1107 = vmatmul.msk.f32.gmra.mxu2 %vm120_vm0, %v1367_v49  ;;  %1109 = vmatmul.msk.f32.gmra.mxu3 %vm120_vm0, %v1367_v49  ;;  %v559_v49 = vld [vmem:[#allocation2 + $0x340] sm:$0xff]  ;;  %v461_v50 = vld [vmem:[#allocation2 + $0x30] sm:$0xff] }
  0x34   :  { %720 = vmatpush.msra.mxu0 %v479_v14  ;;  %743 = vmatpush.msra.mxu1 %v511_v15  ;;  %v493_v51 = vld [vmem:[#allocation2 + $0x130] sm:$0xff]  ;;  %v491_v55 = vld [vmem:[#allocation2 + $0x120] sm:$0xff] }
  0x35   :  { %766 = vmatpush.msra.mxu2 %v543_v16  ;;  %789 = vmatpush.msra.mxu3 %v575_v17  ;;  %v525_v52 = vld [vmem:[#allocation2 + $0x230] sm:$0xff]  ;;  %v523_v56 = vld [vmem:[#allocation2 + $0x220] sm:$0xff] }
  0x36   :  { %721 = vmatpush.msra.mxu0 %v477_v18  ;;  %744 = vmatpush.msra.mxu1 %v509_v19  ;;  %v557_v53 = vld [vmem:[#allocation2 + $0x330] sm:$0xff]  ;;  %v555_v57 = vld [vmem:[#allocation2 + $0x320] sm:$0xff] }
  0x37   :  { %767 = vmatpush.msra.mxu2 %v541_v20  ;;  %790 = vmatpush.msra.mxu3 %v573_v21  ;;  %v457_v58 = vld [vmem:[#allocation2 + $0x10] sm:$0xff]  ;;  %v455_v62 = vld [vmem:[#allocation2] sm:$0xff] }
  0x38   :  { %722 = vmatpush.msra.mxu0 %v475_v22  ;;  %745 = vmatpush.msra.mxu1 %v507_v23  ;;  %v489_v59 = vld [vmem:[#allocation2 + $0x110] sm:$0xff]  ;;  %v487_v63 = vld [vmem:[#allocation2 + $0x100] sm:$0xff] }
  0x39   :  { %768 = vmatpush.msra.mxu2 %v539_v24  ;;  %791 = vmatpush.msra.mxu3 %v571_v25  ;;  %v521_v60 = vld [vmem:[#allocation2 + $0x210] sm:$0xff]  ;;  %v519_v2 = vld [vmem:[#allocation2 + $0x200] sm:$0xff] }
  0x3a   :  { %723 = vmatpush.msra.mxu0 %v473_v26  ;;  %746 = vmatpush.msra.mxu1 %v505_v27  ;;  %v553_v61 = vld [vmem:[#allocation2 + $0x310] sm:$0xff]  ;;  %v551_v3 = vld [vmem:[#allocation2 + $0x300] sm:$0xff] }
  0x3b   :  { %769 = vmatpush.msra.mxu2 %v537_v28  ;;  %792 = vmatpush.msra.mxu3 %v569_v29  ;;  %v613_v0 = vld [vmem:[#allocation2 + $0x4f0] sm:$0xff]  ;;  %v611_v4 = vld [vmem:[#allocation2 + $0x4e0] sm:$0xff] }
  0x3c   :  { %724 = vmatpush.msra.mxu0 %v471_v30  ;;  %747 = vmatpush.msra.mxu1 %v503_v31  ;;  %v645_v1 = vld [vmem:[#allocation2 + $0x5f0] sm:$0xff]  ;;  %v643_v5 = vld [vmem:[#allocation2 + $0x5e0] sm:$0xff] }
  0x3d   :  { %770 = vmatpush.msra.mxu2 %v535_v32  ;;  %793 = vmatpush.msra.mxu3 %v567_v33  ;;  %v677_v6 = vld [vmem:[#allocation2 + $0x6f0] sm:$0xff]  ;;  %v607_v10 = vld [vmem:[#allocation2 + $0x4c0] sm:$0xff] }
  0x3e   :  { %725 = vmatpush.msra.mxu0 %v469_v34  ;;  %748 = vmatpush.msra.mxu1 %v501_v35  ;;  %v709_v7 = vld [vmem:[#allocation2 + $0x7f0] sm:$0xff]  ;;  %v639_v11 = vld [vmem:[#allocation2 + $0x5c0] sm:$0xff] }
  0x3f   :  { %771 = vmatpush.msra.mxu2 %v533_v36  ;;  %794 = vmatpush.msra.mxu3 %v565_v37  ;;  %v609_v8 = vld [vmem:[#allocation2 + $0x4d0] sm:$0xff]  ;;  %v675_v14 = vld [vmem:[#allocation2 + $0x6e0] sm:$0xff] }
  0x40   :  { %726 = vmatpush.msra.mxu0 %v467_v38  ;;  %749 = vmatpush.msra.mxu1 %v499_v39  ;;  %v641_v9 = vld [vmem:[#allocation2 + $0x5d0] sm:$0xff]  ;;  %v707_v15 = vld [vmem:[#allocation2 + $0x7e0] sm:$0xff] }
  0x41   :  { %772 = vmatpush.msra.mxu2 %v531_v40  ;;  %795 = vmatpush.msra.mxu3 %v563_v41  ;;  %v605_v12 = vld [vmem:[#allocation2 + $0x4b0] sm:$0xff]  ;;  %v603_v16 = vld [vmem:[#allocation2 + $0x4a0] sm:$0xff] }
  0x42   :  { %727 = vmatpush.msra.mxu0 %v465_v42  ;;  %750 = vmatpush.msra.mxu1 %v497_v43  ;;  %v637_v13 = vld [vmem:[#allocation2 + $0x5b0] sm:$0xff]  ;;  %v635_v17 = vld [vmem:[#allocation2 + $0x5a0] sm:$0xff] }
  0x43   :  { %773 = vmatpush.msra.mxu2 %v529_v44  ;;  %796 = vmatpush.msra.mxu3 %v561_v45  ;;  %v673_v18 = vld [vmem:[#allocation2 + $0x6d0] sm:$0xff]  ;;  %v671_v22 = vld [vmem:[#allocation2 + $0x6c0] sm:$0xff] }
  0x44   :  { %728 = vmatpush.msra.mxu0 %v463_v46  ;;  %751 = vmatpush.msra.mxu1 %v495_v47  ;;  %v705_v19 = vld [vmem:[#allocation2 + $0x7d0] sm:$0xff]  ;;  %v703_v23 = vld [vmem:[#allocation2 + $0x7c0] sm:$0xff] }
  0x45   :  { %774 = vmatpush.msra.mxu2 %v527_v48  ;;  %797 = vmatpush.msra.mxu3 %v559_v49  ;;  %v601_v20 = vld [vmem:[#allocation2 + $0x490] sm:$0xff]  ;;  %v599_v24 = vld [vmem:[#allocation2 + $0x480] sm:$0xff] }
  0x46   :  { %729 = vmatpush.msra.mxu0 %v461_v50  ;;  %752 = vmatpush.msra.mxu1 %v493_v51  ;;  %v633_v21 = vld [vmem:[#allocation2 + $0x590] sm:$0xff]  ;;  %v631_v25 = vld [vmem:[#allocation2 + $0x580] sm:$0xff] }
  0x47   :  { %775 = vmatpush.msra.mxu2 %v525_v52  ;;  %798 = vmatpush.msra.mxu3 %v557_v53  ;;  %v669_v26 = vld [vmem:[#allocation2 + $0x6b0] sm:$0xff]  ;;  %v667_v30 = vld [vmem:[#allocation2 + $0x6a0] sm:$0xff] }
  0x48   :  { %730 = vmatpush.msra.mxu0 %v459_v54  ;;  %753 = vmatpush.msra.mxu1 %v491_v55  ;;  %v701_v27 = vld [vmem:[#allocation2 + $0x7b0] sm:$0xff]  ;;  %v699_v31 = vld [vmem:[#allocation2 + $0x7a0] sm:$0xff] }
  0x49   :  { %776 = vmatpush.msra.mxu2 %v523_v56  ;;  %799 = vmatpush.msra.mxu3 %v555_v57  ;;  %v597_v28 = vld [vmem:[#allocation2 + $0x470] sm:$0xff]  ;;  %v595_v32 = vld [vmem:[#allocation2 + $0x460] sm:$0xff] }
  0x4a   :  { %731 = vmatpush.msra.mxu0 %v457_v58  ;;  %754 = vmatpush.msra.mxu1 %v489_v59  ;;  %v629_v29 = vld [vmem:[#allocation2 + $0x570] sm:$0xff]  ;;  %v627_v33 = vld [vmem:[#allocation2 + $0x560] sm:$0xff] }
  0x4b   :  { %777 = vmatpush.msra.mxu2 %v521_v60  ;;  %800 = vmatpush.msra.mxu3 %v553_v61  ;;  %v665_v34 = vld [vmem:[#allocation2 + $0x690] sm:$0xff]  ;;  %v663_v38 = vld [vmem:[#allocation2 + $0x680] sm:$0xff] }
  0x4c   :  { %732 = vmatpush.msra.mxu0 %v455_v62  ;;  %755 = vmatpush.msra.mxu1 %v487_v63  ;;  %v697_v35 = vld [vmem:[#allocation2 + $0x790] sm:$0xff]  ;;  %v695_v39 = vld [vmem:[#allocation2 + $0x780] sm:$0xff] }
  0x4d   :  { %778 = vmatpush.msra.mxu2 %v519_v2  ;;  %801 = vmatpush.msra.mxu3 %v551_v3  ;;  %v593_v36 = vld [vmem:[#allocation2 + $0x450] sm:$0xff]  ;;  %v591_v40 = vld [vmem:[#allocation2 + $0x440] sm:$0xff] }
  0x4e   :  { %809 = vmatpush.msrb.mxu0 %v613_v0  ;;  %832 = vmatpush.msrb.mxu1 %v645_v1  ;;  %v625_v37 = vld [vmem:[#allocation2 + $0x550] sm:$0xff]  ;;  %v623_v41 = vld [vmem:[#allocation2 + $0x540] sm:$0xff] }
  0x4f   :  { %855 = vmatpush.msrb.mxu2 %v677_v6  ;;  %878 = vmatpush.msrb.mxu3 %v709_v7  ;;  %v661_v42 = vld [vmem:[#allocation2 + $0x670] sm:$0xff]  ;;  %v659_v46 = vld [vmem:[#allocation2 + $0x660] sm:$0xff] }
  0x50   :  { %810 = vmatpush.msrb.mxu0 %v611_v4  ;;  %833 = vmatpush.msrb.mxu1 %v643_v5  ;;  %v693_v43 = vld [vmem:[#allocation2 + $0x770] sm:$0xff]  ;;  %v691_v47 = vld [vmem:[#allocation2 + $0x760] sm:$0xff] }
  0x51   :  { %856 = vmatpush.msrb.mxu2 %v675_v14  ;;  %879 = vmatpush.msrb.mxu3 %v707_v15  ;;  %v589_v44 = vld [vmem:[#allocation2 + $0x430] sm:$0xff]  ;;  %v587_v48 = vld [vmem:[#allocation2 + $0x420] sm:$0xff] }
  0x52   :  { %811 = vmatpush.msrb.mxu0 %v609_v8  ;;  %834 = vmatpush.msrb.mxu1 %v641_v9  ;;  %v621_v45 = vld [vmem:[#allocation2 + $0x530] sm:$0xff]  ;;  %v619_v49 = vld [vmem:[#allocation2 + $0x520] sm:$0xff] }
  0x53   :  { %857 = vmatpush.msrb.mxu2 %v673_v18  ;;  %880 = vmatpush.msrb.mxu3 %v705_v19  ;;  %v657_v50 = vld [vmem:[#allocation2 + $0x650] sm:$0xff]  ;;  %v655_v54 = vld [vmem:[#allocation2 + $0x640] sm:$0xff] }
  0x54   :  { %812 = vmatpush.msrb.mxu0 %v607_v10  ;;  %835 = vmatpush.msrb.mxu1 %v639_v11  ;;  %v689_v51 = vld [vmem:[#allocation2 + $0x750] sm:$0xff]  ;;  %v1444_v55 = vld [vmem:[%s1649_s2] sm:$0xff] }
  0x55   :  { %858 = vmatpush.msrb.mxu2 %v671_v22  ;;  %881 = vmatpush.msrb.mxu3 %v703_v23  ;;  %v585_v52 = vld [vmem:[#allocation2 + $0x410] sm:$0xff]  ;;  %v687_v56 = vld [vmem:[#allocation2 + $0x740] sm:$0xff]  ;;  %v104_v61 = vperm.slane %v1444_v55, 0  ;;  %v105_v62 = vperm.slane %v1444_v55, 1  ;;  %v106_v11 = vperm.slane %v1444_v55, 2 }
  0x56   :  { %813 = vmatpush.msrb.mxu0 %v605_v12  ;;  %836 = vmatpush.msrb.mxu1 %v637_v13  ;;  %v617_v53 = vld [vmem:[#allocation2 + $0x510] sm:$0xff]  ;;  %v583_v57 = vld [vmem:[#allocation2 + $0x400] sm:$0xff]  ;;  %v107_v12 = vperm.slane %v1444_v55, 3 }
  0x57   :  { %859 = vmatpush.msrb.mxu2 %v669_v26  ;;  %882 = vmatpush.msrb.mxu3 %v701_v27  ;;  %v615_v58 = vld [vmem:[#allocation2 + $0x500] sm:$0xff]  ;;  %v653_v59 = vld [vmem:[#allocation2 + $0x630] sm:$0xff] }
  0x58   :  { %814 = vmatpush.msrb.mxu0 %v603_v16  ;;  %837 = vmatpush.msrb.mxu1 %v635_v17  ;;  %v685_v60 = vld [vmem:[#allocation2 + $0x730] sm:$0xff]  ;;  %v651_v63 = vld [vmem:[#allocation2 + $0x620] sm:$0xff] }
  0x59   :  { %860 = vmatpush.msrb.mxu2 %v667_v30  ;;  %883 = vmatpush.msrb.mxu3 %v699_v31  ;;  %v683_v0 = vld [vmem:[#allocation2 + $0x720] sm:$0xff]  ;;  %v649_v1 = vld [vmem:[#allocation2 + $0x610] sm:$0xff] }
  0x5a   :  { %815 = vmatpush.msrb.mxu0 %v601_v20  ;;  %838 = vmatpush.msrb.mxu1 %v633_v21  ;;  %v681_v2 = vld [vmem:[#allocation2 + $0x710] sm:$0xff]  ;;  %v647_v7 = vld [vmem:[#allocation2 + $0x600] sm:$0xff] }
  0x5b   :  { %861 = vmatpush.msrb.mxu2 %v665_v34  ;;  %884 = vmatpush.msrb.mxu3 %v697_v35  ;;  %v679_v8 = vld [vmem:[#allocation2 + $0x700] sm:$0xff] }
  0x5c   :  { %816 = vmatpush.msrb.mxu0 %v599_v24  ;;  %839 = vmatpush.msrb.mxu1 %v631_v25 }
  0x5d   :  { %862 = vmatpush.msrb.mxu2 %v663_v38  ;;  %885 = vmatpush.msrb.mxu3 %v695_v39 }
  0x5e   :  { %817 = vmatpush.msrb.mxu0 %v597_v28  ;;  %840 = vmatpush.msrb.mxu1 %v629_v29 }
  0x5f   :  { %863 = vmatpush.msrb.mxu2 %v661_v42  ;;  %886 = vmatpush.msrb.mxu3 %v693_v43  ;;  %v108_v43 = vperm.slane %v1444_v55, 4 }
  0x60   :  { %818 = vmatpush.msrb.mxu0 %v595_v32  ;;  %841 = vmatpush.msrb.mxu1 %v627_v33 }
  0x61   :  { %864 = vmatpush.msrb.mxu2 %v659_v46  ;;  %887 = vmatpush.msrb.mxu3 %v691_v47  ;;  %v110_v47 = vperm.slane %v1444_v55, 6 }
  0x62   :  { %819 = vmatpush.msrb.mxu0 %v593_v36  ;;  %842 = vmatpush.msrb.mxu1 %v625_v37 }
  0x63   :  { %865 = vmatpush.msrb.mxu2 %v657_v50  ;;  %888 = vmatpush.msrb.mxu3 %v689_v51 }
  0x64   :  { %820 = vmatpush.msrb.mxu0 %v591_v40  ;;  %843 = vmatpush.msrb.mxu1 %v623_v41 }
  0x65   :  { %866 = vmatpush.msrb.mxu2 %v655_v54  ;;  %889 = vmatpush.msrb.mxu3 %v687_v56 }
  0x66   :  { %821 = vmatpush.msrb.mxu0 %v589_v44  ;;  %844 = vmatpush.msrb.mxu1 %v621_v45  ;;  %v109_v44 = vperm.slane %v1444_v55, 5 }
  0x67   :  { %867 = vmatpush.msrb.mxu2 %v653_v59  ;;  %890 = vmatpush.msrb.mxu3 %v685_v60 }
  0x68   :  { %822 = vmatpush.msrb.mxu0 %v587_v48  ;;  %845 = vmatpush.msrb.mxu1 %v619_v49 }
  0x69   :  { %868 = vmatpush.msrb.mxu2 %v651_v63  ;;  %891 = vmatpush.msrb.mxu3 %v683_v0 }
  0x6a   :  { %823 = vmatpush.msrb.mxu0 %v585_v52  ;;  %846 = vmatpush.msrb.mxu1 %v617_v53 }
  0x6b   :  { %869 = vmatpush.msrb.mxu2 %v649_v1  ;;  %892 = vmatpush.msrb.mxu3 %v681_v2  ;;  %v486_v2 = vld [vmem:[#allocation2 + $0xf8] sm:$0xff] }
  0x6c   :  { %824 = vmatpush.msrb.mxu0 %v583_v57  ;;  %847 = vmatpush.msrb.mxu1 %v615_v58 }
  0x6d   :  { %870 = vmatpush.msrb.mxu2 %v647_v7  ;;  %893 = vmatpush.msrb.mxu3 %v679_v8  ;;  %v111_v8 = vperm.slane %v1444_v55, 7 }
  0x93   :  { %v144_v3 = vpop.f32.mrf.mxu0  ;;  %v167_v4 = vpop.f32.mrf.mxu1 }
  0x94   :  { %v145_v5 = vadd.f32 %v144_v3, %v104_v61  ;;  %v168_v6 = vadd.f32 %v167_v4, %v105_v62 }
  0x96   :  { %v327_v9 = vmul.f32 0.044715, %v145_v5  ;;  %v328_v10 = vmul.f32 0.044715, %v168_v6  ;;  %v311_v51 = vmul.f32 0.5, %v145_v5  ;;  %v312_v52 = vmul.f32 0.5, %v168_v6 }
  0x98   :  { %v343_v13 = vmul.f32 %v327_v9, %v145_v5  ;;  %v344_v14 = vmul.f32 %v328_v10, %v168_v6  ;;  %v518_v10 = vld [vmem:[#allocation2 + $0x1f8] sm:$0xff] }
  0x9a   :  { %v359_v15 = vmul.f32 %v343_v13, %v145_v5  ;;  %v360_v16 = vmul.f32 %v344_v14, %v168_v6  ;;  %v190_v17 = vpop.f32.mrf.mxu2  ;;  %v213_v18 = vpop.f32.mrf.mxu3 }
  0x9b   :  { %v1450_v19 = vadd.f32 %v190_v17, %v106_v11  ;;  %v1452_v20 = vadd.f32 %v213_v18, %v107_v12  ;;  %v516_v17 = vld [vmem:[#allocation2 + $0x1e8] sm:$0xff] }
  0x9c   :  { %v375_v21 = vadd.f32 %v359_v15, %v145_v5  ;;  %v376_v22 = vadd.f32 %v360_v16, %v168_v6 }
  0x9d   :  { %v329_v23 = vmul.f32 0.044715, %v1450_v19  ;;  %v330_v24 = vmul.f32 0.044715, %v1452_v20  ;;  %v147_v25 = vpop.f32.mrf.mxu0  ;;  %v170_v26 = vpop.f32.mrf.mxu1  ;;  %v313_v18 = vmul.f32 0.5, %v1450_v19 }
  0x9e   :  { %v1456_v27 = vadd.f32 %v147_v25, %v104_v61  ;;  %v1458_v28 = vadd.f32 %v170_v26, %v105_v62  ;;  %v391_v29 = vmul.f32 0.7978846, %v375_v21  ;;  %v392_v30 = vmul.f32 0.7978846, %v376_v22  ;;  %v482_v22 = vld [vmem:[#allocation2 + $0xd8] sm:$0xff] }
  0x9f   :  { %v345_v31 = vmul.f32 %v329_v23, %v1450_v19  ;;  %v346_v32 = vmul.f32 %v330_v24, %v1452_v20  ;;  %v314_v23 = vmul.f32 0.5, %v1452_v20 }
  0xa0   :  { %1113 = vtanh.f32 %v391_v29  ;;  %v335_v33 = vmul.f32 0.044715, %v1456_v27  ;;  %v336_v36 = vmul.f32 0.044715, %v1458_v28 }
  0xa1   :  { %v361_v34 = vmul.f32 %v345_v31, %v1450_v19  ;;  %v362_v35 = vmul.f32 %v346_v32, %v1452_v20  ;;  %1115 = vtanh.f32 %v392_v30 }
  0xa2   :  { %v351_v37 = vmul.f32 %v335_v33, %v1456_v27  ;;  %v352_v40 = vmul.f32 %v336_v36, %v1458_v28  ;;  %v514_v33 = vld [vmem:[#allocation2 + $0x1d8] sm:$0xff] }
  0xa3   :  { %v377_v38 = vadd.f32 %v361_v34, %v1450_v19  ;;  %v378_v39 = vadd.f32 %v362_v35, %v1452_v20  ;;  %v319_v34 = vmul.f32 0.5, %v1456_v27 }
  0xa4   :  { %v193_v41 = vpop.f32.mrf.mxu2  ;;  %v216_v42 = vpop.f32.mrf.mxu3  ;;  %v367_v45 = vmul.f32 %v351_v37, %v1456_v27  ;;  %v368_v54 = vmul.f32 %v352_v40, %v1458_v28 }
  0xa5   :  { %v1473_v46 = vadd.f32 %v193_v41, %v106_v11  ;;  %v393_v48 = vmul.f32 0.7978846, %v377_v38  ;;  %v394_v49 = vmul.f32 0.7978846, %v378_v39  ;;  %v1478_v57 = vadd.f32 %v216_v42, %v107_v12  ;;  %v484_v11 = vld [vmem:[#allocation2 + $0xe8] sm:$0xff] }
  0xa6   :  { %v1114_v50 = vpop.eup %1113  ;;  %v383_v53 = vadd.f32 %v367_v45, %v1456_v27  ;;  %v384_v4 = vadd.f32 %v368_v54, %v1458_v28  ;;  %v480_v38 = vld [vmem:[#allocation2 + $0xc8] sm:$0xff]  ;;  %v320_v42 = vmul.f32 0.5, %v1458_v28  ;;  %v510_v28 = vld [vmem:[#allocation2 + $0x1b8] sm:$0xff] }
  0xa7   :  { %v1116_v56 = vpop.eup %1115  ;;  %v236_v58 = vpop.f32.mrf.mxu0  ;;  %v423_v60 = vadd.f32 1.0, %v1114_v50  ;;  %1117 = vtanh.f32 %v393_v48  ;;  %v337_v61 = vmul.f32 0.044715, %v1473_v46  ;;  %v338_v14 = vmul.f32 0.044715, %v1478_v57  ;;  %v512_v27 = vld [vmem:[#allocation2 + $0x1c8] sm:$0xff] }
  0xa8   :  { %v259_v59 = vpop.f32.mrf.mxu1  ;;  %v1483_v62 = vadd.f32 %v236_v58, %v108_v43  ;;  %v424_v0 = vadd.f32 1.0, %v1116_v56  ;;  %1119 = vtanh.f32 %v394_v49  ;;  %v399_v3 = vmul.f32 0.7978846, %v383_v53  ;;  %v582_v53 = vld [vmem:[#allocation2 + $0x3f8] sm:$0xff] }
  0xa9   :  { %v1487_v63 = vadd.f32 %v259_v59, %v109_v44  ;;  %v1489_v1 = vmul.f32 %v423_v60, %v311_v51  ;;  %v353_v5 = vmul.f32 %v337_v61, %v1473_v46  ;;  %v400_v12 = vmul.f32 0.7978846, %v384_v4  ;;  %v478_v56 = vld [vmem:[#allocation2 + $0xb8] sm:$0xff]  ;;  %v580_v4 = vld [vmem:[#allocation2 + $0x3e8] sm:$0xff] }
  0xaa   :  { %v331_v6 = vmul.f32 0.044715, %v1483_v62  ;;  %v1496_v9 = vmul.f32 %v424_v0, %v312_v52  ;;  %1121 = vtanh.f32 %v399_v3  ;;  %v354_v25 = vmul.f32 %v338_v14, %v1478_v57  ;;  %v550_v52 = vld [vmem:[#allocation2 + $0x2f8] sm:$0xff]  ;;  %v548_v3 = vld [vmem:[#allocation2 + $0x2e8] sm:$0xff] }
  0xab   :  { %v332_v7 = vmul.f32 0.044715, %v1487_v63  ;;  %733 = vmatmul.f32.vlgmr.msra.gmra.mxu0 %v1489_v1  ;;  %v369_v13 = vmul.f32 %v353_v5, %v1473_v46  ;;  %1123 = vtanh.f32 %v400_v12 }
  0xac   :  { %v347_v15 = vmul.f32 %v331_v6, %v1483_v62  ;;  %756 = vmatmul.f32.vlgmr.msra.gmra.mxu1 %v1496_v9  ;;  %901 = vmatpush.msra.mxu0 %v486_v2  ;;  %v370_v45 = vmul.f32 %v354_v25, %v1478_v57 }
  0xad   :  { %v348_v16 = vmul.f32 %v332_v7, %v1487_v63  ;;  %v1118_v21 = vpop.eup %1117  ;;  %924 = vmatpush.msra.mxu1 %v518_v10  ;;  %v385_v24 = vadd.f32 %v369_v13, %v1473_v46  ;;  %v476_v7 = vld [vmem:[#allocation2 + $0xa8] sm:$0xff] }
  0xae   :  { %v1120_v26 = vpop.eup %1119  ;;  %v363_v29 = vmul.f32 %v347_v15, %v1483_v62  ;;  %v282_v31 = vpop.f32.mrf.mxu2  ;;  %902 = vmatpush.msra.mxu0 %v484_v11  ;;  %v425_v19 = vadd.f32 1.0, %v1118_v21  ;;  %v386_v58 = vadd.f32 %v370_v45, %v1478_v57  ;;  %v546_v15 = vld [vmem:[#allocation2 + $0x2d8] sm:$0xff] }
  0xaf   :  { %v364_v30 = vmul.f32 %v348_v16, %v1487_v63  ;;  %v305_v32 = vpop.f32.mrf.mxu3  ;;  %v1513_v20 = vadd.f32 %v282_v31, %v110_v47  ;;  %v239_v36 = vpop.f32.mrf.mxu0  ;;  %925 = vmatpush.msra.mxu1 %v516_v17  ;;  %v426_v37 = vadd.f32 1.0, %v1120_v26  ;;  %v401_v39 = vmul.f32 0.7978846, %v385_v24  ;;  %v544_v31 = vld [vmem:[#allocation2 + $0x2c8] sm:$0xff] }
  0xb0   :  { %v1517_v35 = vadd.f32 %v305_v32, %v111_v8  ;;  %v1521_v40 = vadd.f32 %v239_v36, %v108_v43  ;;  %903 = vmatpush.msra.mxu0 %v482_v22  ;;  %v1523_v41 = vmul.f32 %v425_v19, %v313_v18  ;;  %v1122_v48 = vpop.eup %1121  ;;  %v262_v43 = vpop.f32.mrf.mxu1  ;;  %v379_v59 = vadd.f32 %v363_v29, %v1483_v62  ;;  %v508_v22 = vld [vmem:[#allocation2 + $0x1a8] sm:$0xff] }
  0xb1   :  { %v333_v49 = vmul.f32 0.044715, %v1513_v20  ;;  %926 = vmatpush.msra.mxu1 %v514_v33  ;;  %v1529_v51 = vmul.f32 %v426_v37, %v314_v23  ;;  %1125 = vtanh.f32 %v401_v39  ;;  %v431_v54 = vadd.f32 1.0, %v1122_v48  ;;  %v1124_v61 = vpop.eup %1123  ;;  %v578_v23 = vld [vmem:[#allocation2 + $0x3d8] sm:$0xff]  ;;  %v576_v33 = vld [vmem:[#allocation2 + $0x3c8] sm:$0xff] }
  0xb2   :  { %v334_v50 = vmul.f32 0.044715, %v1517_v35  ;;  %779 = vmatmul.f32.vlgmr.msra.gmra.mxu2 %v1523_v41  ;;  %904 = vmatpush.msra.mxu0 %v480_v38  ;;  %v380_v60 = vadd.f32 %v364_v30, %v1487_v63  ;;  %v432_v6 = vadd.f32 1.0, %v1124_v61  ;;  %v402_v10 = vmul.f32 0.7978846, %v386_v58  ;;  %v474_v30 = vld [vmem:[#allocation2 + $0x98] sm:$0xff] }
  0xb3   :  { %v349_v0 = vmul.f32 %v333_v49, %v1513_v20  ;;  %802 = vmatmul.f32.vlgmr.msra.gmra.mxu3 %v1529_v51  ;;  %927 = vmatpush.msra.mxu1 %v512_v27  ;;  %v1538_v5 = vmul.f32 %v431_v54, %v319_v34  ;;  %v395_v11 = vmul.f32 0.7978846, %v379_v59  ;;  %v1544_v14 = vadd.f32 %v262_v43, %v109_v44  ;;  %v504_v38 = vld [vmem:[#allocation2 + $0x188] sm:$0xff]  ;;  %v542_v39 = vld [vmem:[#allocation2 + $0x2b8] sm:$0xff] }
  0xb4   :  { %v350_v2 = vmul.f32 %v334_v50, %v1517_v35  ;;  %947 = vmatpush.msra.mxu2 %v550_v52  ;;  %970 = vmatpush.msra.mxu3 %v582_v53  ;;  %v396_v16 = vmul.f32 0.7978846, %v380_v60  ;;  %v1547_v21 = vmul.f32 %v432_v6, %v320_v42  ;;  %v321_v24 = vmul.f32 0.5, %v1473_v46  ;;  %v506_v46 = vld [vmem:[#allocation2 + $0x198] sm:$0xff] }
  0xb5   :  { %v365_v12 = vmul.f32 %v349_v0, %v1513_v20  ;;  %905 = vmatpush.msra.mxu0 %v478_v56  ;;  %928 = vmatpush.msra.mxu1 %v510_v28  ;;  %1127 = vtanh.f32 %v402_v10  ;;  %v339_v25 = vmul.f32 0.044715, %v1521_v40  ;;  %v340_v36 = vmul.f32 0.044715, %v1544_v14  ;;  %v574_v49 = vld [vmem:[#allocation2 + $0x3b8] sm:$0xff]  ;;  %v540_v28 = vld [vmem:[#allocation2 + $0x2a8] sm:$0xff] }
  0xb6   :  { %v366_v13 = vmul.f32 %v350_v2, %v1517_v35  ;;  %v285_v17 = vpop.f32.mrf.mxu2  ;;  %736 = vmatmul.f32.gmra.mxu0 %v1538_v5  ;;  %948 = vmatpush.msra.mxu2 %v548_v3  ;;  %1129 = vtanh.f32 %v395_v11  ;;  %v322_v48 = vmul.f32 0.5, %v1478_v57  ;;  %v470_v50 = vld [vmem:[#allocation2 + $0x78] sm:$0xff]  ;;  %v315_v54 = vmul.f32 0.5, %v1483_v62  ;;  %v572_v0 = vld [vmem:[#allocation2 + $0x3a8] sm:$0xff] }
  0xb7   :  { %v308_v18 = vpop.f32.mrf.mxu3  ;;  %v1126_v44 = vpop.eup %1125  ;;  %v1553_v26 = vadd.f32 %v285_v17, %v110_v47  ;;  %971 = vmatpush.msra.mxu3 %v580_v4  ;;  %906 = vmatpush.msra.mxu0 %v476_v7  ;;  %v381_v32 = vadd.f32 %v365_v12, %v1513_v20  ;;  %1131 = vtanh.f32 %v396_v16  ;;  %v355_v55 = vmul.f32 %v339_v25, %v1521_v40  ;;  %v502_v56 = vld [vmem:[#allocation2 + $0x178] sm:$0xff]  ;;  %v468_v2 = vld [vmem:[#allocation2 + $0x68] sm:$0xff] }
  0xb8   :  { %v1557_v29 = vadd.f32 %v308_v18, %v111_v8  ;;  %759 = vmatmul.f32.gmra.mxu1 %v1547_v21  ;;  %949 = vmatpush.msra.mxu2 %v546_v15  ;;  %v433_v19 = vadd.f32 1.0, %v1126_v44  ;;  %v382_v47 = vadd.f32 %v366_v13, %v1517_v35  ;;  %v472_v8 = vld [vmem:[#allocation2 + $0x88] sm:$0xff]  ;;  %v356_v52 = vmul.f32 %v340_v36, %v1544_v14  ;;  %v570_v18 = vld [vmem:[#allocation2 + $0x398] sm:$0xff] }
  0xb9   :  { %929 = vmatpush.msra.mxu1 %v508_v22  ;;  %972 = vmatpush.msra.mxu3 %v578_v23  ;;  %v397_v34 = vmul.f32 0.7978846, %v381_v32  ;;  %v371_v42 = vmul.f32 %v355_v55, %v1521_v40  ;;  %v341_v45 = vmul.f32 0.044715, %v1553_v26  ;;  %v316_v61 = vmul.f32 0.5, %v1487_v63  ;;  %v500_v7 = vld [vmem:[#allocation2 + $0x168] sm:$0xff] }
  0xba   :  { %907 = vmatpush.msra.mxu0 %v474_v30  ;;  %950 = vmatpush.msra.mxu2 %v544_v31  ;;  %v1564_v37 = vmul.f32 %v433_v19, %v321_v24  ;;  %v398_v27 = vmul.f32 0.7978846, %v382_v47  ;;  %v342_v53 = vmul.f32 0.044715, %v1557_v29  ;;  %v372_v3 = vmul.f32 %v356_v52, %v1544_v14  ;;  %v538_v63 = vld [vmem:[#allocation2 + $0x298] sm:$0xff]  ;;  %v568_v19 = vld [vmem:[#allocation2 + $0x388] sm:$0xff] }
  0xbb   :  { %930 = vmatpush.msra.mxu1 %v506_v46  ;;  %973 = vmatpush.msra.mxu3 %v576_v33  ;;  %1133 = vtanh.f32 %v397_v34  ;;  %v1128_v43 = vpop.eup %1127  ;;  %v387_v58 = vadd.f32 %v371_v42, %v1521_v40  ;;  %v357_v57 = vmul.f32 %v341_v45, %v1553_v26  ;;  %v466_v25 = vld [vmem:[#allocation2 + $0x58] sm:$0xff]  ;;  %v318_v30 = vmul.f32 0.5, %v1517_v35  ;;  %v536_v33 = vld [vmem:[#allocation2 + $0x288] sm:$0xff] }
  0xbc   :  { %782 = vmatmul.f32.gmra.mxu2 %v1564_v37  ;;  %908 = vmatpush.msra.mxu0 %v472_v8  ;;  %1135 = vtanh.f32 %v398_v27  ;;  %v1130_v59 = vpop.eup %1129  ;;  %v434_v60 = vadd.f32 1.0, %v1128_v43  ;;  %v358_v4 = vmul.f32 %v342_v53, %v1557_v29  ;;  %v388_v15 = vadd.f32 %v372_v3, %v1544_v14  ;;  %v498_v44 = vld [vmem:[#allocation2 + $0x158] sm:$0xff]  ;;  %v464_v36 = vld [vmem:[#allocation2 + $0x48] sm:$0xff] }
  0xbd   :  { %931 = vmatpush.msra.mxu1 %v504_v38  ;;  %951 = vmatpush.msra.mxu2 %v542_v39  ;;  %v1132_v62 = vpop.eup %1131  ;;  %v427_v6 = vadd.f32 1.0, %v1130_v59  ;;  %v403_v10 = vmul.f32 0.7978846, %v387_v58  ;;  %v373_v11 = vmul.f32 %v357_v57, %v1553_v26  ;;  %v317_v47 = vmul.f32 0.5, %v1513_v20  ;;  %v496_v39 = vld [vmem:[#allocation2 + $0x148] sm:$0xff]  ;;  %v534_v27 = vld [vmem:[#allocation2 + $0x278] sm:$0xff] }
  0xbe   :  { %974 = vmatpush.msra.mxu3 %v574_v49  ;;  %909 = vmatpush.msra.mxu0 %v470_v50  ;;  %v1579_v12 = vmul.f32 %v434_v60, %v322_v48  ;;  %v428_v13 = vadd.f32 1.0, %v1132_v62  ;;  %v374_v16 = vmul.f32 %v358_v4, %v1557_v29  ;;  %v404_v31 = vmul.f32 0.7978846, %v388_v15  ;;  %v566_v20 = vld [vmem:[#allocation2 + $0x378] sm:$0xff]  ;;  %v532_v53 = vld [vmem:[#allocation2 + $0x268] sm:$0xff] }
  0xbf   :  { %932 = vmatpush.msra.mxu1 %v502_v56  ;;  %952 = vmatpush.msra.mxu2 %v540_v28  ;;  %v1583_v17 = vmul.f32 %v427_v6, %v315_v54  ;;  %1137 = vtanh.f32 %v403_v10  ;;  %v389_v22 = vadd.f32 %v373_v11, %v1553_v26  ;;  %v323_v45 = vmul.f32 0.5, %v1521_v40  ;;  %v462_v48 = vld [vmem:[#allocation2 + $0x38] sm:$0xff]  ;;  %v564_v43 = vld [vmem:[#allocation2 + $0x368] sm:$0xff] }
  0xc0   :  { %975 = vmatpush.msra.mxu3 %v572_v0  ;;  %910 = vmatpush.msra.mxu0 %v468_v2  ;;  %v1587_v24 = vmul.f32 %v428_v13, %v316_v61  ;;  %v390_v32 = vadd.f32 %v374_v16, %v1557_v29  ;;  %1139 = vtanh.f32 %v404_v31  ;;  %v494_v50 = vld [vmem:[#allocation2 + $0x138] sm:$0xff]  ;;  %v324_v54 = vmul.f32 0.5, %v1544_v14  ;;  %v492_v56 = vld [vmem:[#allocation2 + $0x128] sm:$0xff] }
  0xc1   :  { %v1134_v23 = vpop.eup %1133  ;;  %805 = vmatmul.f32.gmra.mxu3 %v1579_v12  ;;  %933 = vmatpush.msra.mxu1 %v500_v7  ;;  %v405_v8 = vmul.f32 0.7978846, %v389_v22  ;;  %v460_v58 = vld [vmem:[#allocation2 + $0x28] sm:$0xff]  ;;  %v530_v57 = vld [vmem:[#allocation2 + $0x258] sm:$0xff]  ;;  %v326_v2 = vmul.f32 0.5, %v1557_v29  ;;  %v325_v4 = vmul.f32 0.5, %v1553_v26 }
  0xc2   :  { %v1136_v46 = vpop.eup %1135  ;;  %825 = vmatmul.f32.vlgmr.msrb.gmra.mxu0 %v1583_v17  ;;  %953 = vmatpush.msra.mxu2 %v538_v63  ;;  %v429_v55 = vadd.f32 1.0, %v1134_v23  ;;  %v406_v35 = vmul.f32 0.7978846, %v390_v32  ;;  %v562_v61 = vld [vmem:[#allocation2 + $0x358] sm:$0xff]  ;;  %v528_v7 = vld [vmem:[#allocation2 + $0x248] sm:$0xff] }
  0xc3   :  { %848 = vmatmul.f32.vlgmr.msrb.gmra.mxu1 %v1587_v24  ;;  %976 = vmatpush.msra.mxu3 %v570_v18  ;;  %v430_v34 = vadd.f32 1.0, %v1136_v46  ;;  %1141 = vtanh.f32 %v405_v8  ;;  %v490_v0 = vld [vmem:[#allocation2 + $0x118] sm:$0xff]  ;;  %v560_v10 = vld [vmem:[#allocation2 + $0x348] sm:$0xff] }
  0xc4   :  { %911 = vmatpush.msra.mxu0 %v466_v25  ;;  %934 = vmatpush.msra.mxu1 %v498_v44  ;;  %v1594_v38 = vmul.f32 %v429_v55, %v317_v47  ;;  %1143 = vtanh.f32 %v406_v35  ;;  %v458_v14 = vld [vmem:[#allocation2 + $0x18] sm:$0xff]  ;;  %v456_v29 = vld [vmem:[#allocation2 + $0x8] sm:$0xff] }
  0xc5   :  { %954 = vmatpush.msra.mxu2 %v536_v33  ;;  %977 = vmatpush.msra.mxu3 %v568_v19  ;;  %v1596_v42 = vmul.f32 %v430_v34, %v318_v30  ;;  %v1138_v49 = vpop.eup %1137  ;;  %v488_v15 = vld [vmem:[#allocation2 + $0x108] sm:$0xff]  ;;  %v526_v26 = vld [vmem:[#allocation2 + $0x238] sm:$0xff] }
  0xc6   :  { %871 = vmatmul.f32.vlgmr.msrb.gmra.mxu2 %v1594_v38  ;;  %912 = vmatpush.msra.mxu0 %v464_v36  ;;  %v435_v52 = vadd.f32 1.0, %v1138_v49  ;;  %v1140_v28 = vpop.eup %1139  ;;  %v558_v16 = vld [vmem:[#allocation2 + $0x338] sm:$0xff]  ;;  %v524_v23 = vld [vmem:[#allocation2 + $0x228] sm:$0xff] }
  0xc7   :  { %935 = vmatpush.msra.mxu1 %v496_v39  ;;  %955 = vmatpush.msra.mxu2 %v534_v27  ;;  %v436_v60 = vadd.f32 1.0, %v1140_v28  ;;  %v614_v18 = vld [vmem:[#allocation2 + $0x4f8] sm:$0xff]  ;;  %v556_v25 = vld [vmem:[#allocation2 + $0x328] sm:$0xff] }
  0xc8   :  { %978 = vmatpush.msra.mxu3 %v566_v20  ;;  %913 = vmatpush.msra.mxu0 %v462_v48  ;;  %v1602_v40 = vmul.f32 %v435_v52, %v323_v45  ;;  %v646_v22 = vld [vmem:[#allocation2 + $0x5f8] sm:$0xff]  ;;  %v612_v44 = vld [vmem:[#allocation2 + $0x4e8] sm:$0xff] }
  0xc9   :  { %894 = vmatmul.f32.vlgmr.msrb.gmra.mxu3 %v1596_v42  ;;  %936 = vmatpush.msra.mxu1 %v494_v50  ;;  %v1142_v59 = vpop.eup %1141  ;;  %v1607_v6 = vmul.f32 %v436_v60, %v324_v54  ;;  %v522_v30 = vld [vmem:[#allocation2 + $0x218] sm:$0xff]  ;;  %v644_v31 = vld [vmem:[#allocation2 + $0x5e8] sm:$0xff] }
  0xca   :  { %956 = vmatpush.msra.mxu2 %v532_v53  ;;  %979 = vmatpush.msra.mxu3 %v564_v43  ;;  %v1144_v3 = vpop.eup %1143  ;;  %v437_v62 = vadd.f32 1.0, %v1142_v59  ;;  %v554_v32 = vld [vmem:[#allocation2 + $0x318] sm:$0xff]  ;;  %v520_v33 = vld [vmem:[#allocation2 + $0x208] sm:$0xff] }
  0xcb   :  { %828 = vmatmul.f32.gmra.mxu0 %v1602_v40  ;;  %937 = vmatpush.msra.mxu1 %v492_v56  ;;  %v438_v11 = vadd.f32 1.0, %v1144_v3  ;;  %v610_v46 = vld [vmem:[#allocation2 + $0x4d8] sm:$0xff]  ;;  %v552_v47 = vld [vmem:[#allocation2 + $0x308] sm:$0xff] }
  0xcc   :  { %914 = vmatpush.msra.mxu0 %v460_v58  ;;  %957 = vmatpush.msra.mxu2 %v530_v57  ;;  %v1609_v13 = vmul.f32 %v437_v62, %v325_v4  ;;  %v642_v19 = vld [vmem:[#allocation2 + $0x5d8] sm:$0xff]  ;;  %v608_v55 = vld [vmem:[#allocation2 + $0x4c8] sm:$0xff] }
  0xcd   :  { %980 = vmatpush.msra.mxu3 %v562_v61  ;;  %938 = vmatpush.msra.mxu1 %v490_v0  ;;  %v1612_v63 = vmul.f32 %v438_v11, %v326_v2  ;;  %v678_v8 = vld [vmem:[#allocation2 + $0x6f8] sm:$0xff]  ;;  %v640_v34 = vld [vmem:[#allocation2 + $0x5c8] sm:$0xff] }
  0xce   :  { %851 = vmatmul.f32.gmra.mxu1 %v1607_v6  ;;  %915 = vmatpush.msra.mxu0 %v458_v14  ;;  %v606_v36 = vld [vmem:[#allocation2 + $0x4b8] sm:$0xff]  ;;  %v708_v39 = vld [vmem:[#allocation2 + $0x7e8] sm:$0xff] }
  0xcf   :  { %958 = vmatpush.msra.mxu2 %v528_v7  ;;  %981 = vmatpush.msra.mxu3 %v560_v10  ;;  %v638_v35 = vld [vmem:[#allocation2 + $0x5b8] sm:$0xff]  ;;  %v604_v27 = vld [vmem:[#allocation2 + $0x4a8] sm:$0xff] }
  0xd0   :  { %874 = vmatmul.f32.gmra.mxu2 %v1609_v13  ;;  %916 = vmatpush.msra.mxu0 %v456_v29  ;;  %v636_v20 = vld [vmem:[#allocation2 + $0x5a8] sm:$0xff]  ;;  %v674_v45 = vld [vmem:[#allocation2 + $0x6d8] sm:$0xff] }
  0xd1   :  { %897 = vmatmul.f32.gmra.mxu3 %v1612_v63  ;;  %939 = vmatpush.msra.mxu1 %v488_v15  ;;  %v706_v48 = vld [vmem:[#allocation2 + $0x7d8] sm:$0xff]  ;;  %v672_v52 = vld [vmem:[#allocation2 + $0x6c8] sm:$0xff] }
  0xd2   :  { %959 = vmatpush.msra.mxu2 %v526_v26  ;;  %982 = vmatpush.msra.mxu3 %v558_v16  ;;  %v602_v49 = vld [vmem:[#allocation2 + $0x498] sm:$0xff]  ;;  %v632_v53 = vld [vmem:[#allocation2 + $0x588] sm:$0xff] }
  0xd3   :  { %993 = vmatpush.msrb.mxu0 %v614_v18  ;;  %1016 = vmatpush.msrb.mxu1 %v646_v22  ;;  %v634_v50 = vld [vmem:[#allocation2 + $0x598] sm:$0xff]  ;;  %v668_v56 = vld [vmem:[#allocation2 + $0x6a8] sm:$0xff] }
  0xd4   :  { %917 = vmatmul.f32.vlgmr.msra.gmra.mxu0 %v1489_v1  ;;  %960 = vmatpush.msra.mxu2 %v524_v23  ;;  %v710_v1 = vld [vmem:[#allocation2 + $0x7f8] sm:$0xff]  ;;  %v700_v28 = vld [vmem:[#allocation2 + $0x7a8] sm:$0xff] }
  0xd5   :  { %983 = vmatpush.msra.mxu3 %v556_v25  ;;  %994 = vmatpush.msrb.mxu0 %v612_v44  ;;  %v670_v43 = vld [vmem:[#allocation2 + $0x6b8] sm:$0xff]  ;;  %v596_v58 = vld [vmem:[#allocation2 + $0x468] sm:$0xff] }
  0xd6   :  { %940 = vmatmul.f32.vlgmr.msra.gmra.mxu1 %v1496_v9  ;;  %961 = vmatpush.msra.mxu2 %v522_v30  ;;  %v676_v9 = vld [vmem:[#allocation2 + $0x6e8] sm:$0xff]  ;;  %v702_v54 = vld [vmem:[#allocation2 + $0x7b8] sm:$0xff] }
  0xd7   :  { %1017 = vmatpush.msrb.mxu1 %v644_v31  ;;  %984 = vmatpush.msra.mxu3 %v554_v32  ;;  %v628_v57 = vld [vmem:[#allocation2 + $0x568] sm:$0xff]  ;;  %v666_v59 = vld [vmem:[#allocation2 + $0x698] sm:$0xff] }
  0xd8   :  { %995 = vmatpush.msrb.mxu0 %v610_v46  ;;  %962 = vmatpush.msra.mxu2 %v520_v33  ;;  %v698_v60 = vld [vmem:[#allocation2 + $0x798] sm:$0xff]  ;;  %v664_v2 = vld [vmem:[#allocation2 + $0x688] sm:$0xff] }
  0xd9   :  { %1018 = vmatpush.msrb.mxu1 %v642_v19  ;;  %985 = vmatpush.msra.mxu3 %v552_v47  ;;  %v594_v61 = vld [vmem:[#allocation2 + $0x458] sm:$0xff]  ;;  %v696_v3 = vld [vmem:[#allocation2 + $0x788] sm:$0xff] }
  0xda   :  { %996 = vmatpush.msrb.mxu0 %v608_v55  ;;  %1039 = vmatpush.msrb.mxu2 %v678_v8  ;;  %v626_v0 = vld [vmem:[#allocation2 + $0x558] sm:$0xff]  ;;  %v592_v14 = vld [vmem:[#allocation2 + $0x448] sm:$0xff] }
  0xdb   :  { %1019 = vmatpush.msrb.mxu1 %v640_v34  ;;  %1062 = vmatpush.msrb.mxu3 %v710_v1  ;;  %v694_v4 = vld [vmem:[#allocation2 + $0x778] sm:$0xff]  ;;  %v660_v10 = vld [vmem:[#allocation2 + $0x668] sm:$0xff] }
  0xdc   :  { %963 = vmatmul.f32.vlgmr.msra.gmra.mxu2 %v1523_v41  ;;  %986 = vmatmul.f32.vlgmr.msra.gmra.mxu3 %v1529_v51  ;;  %v704_v41 = vld [vmem:[#allocation2 + $0x7c8] sm:$0xff]  ;;  %v590_v62 = vld [vmem:[#allocation2 + $0x438] sm:$0xff] }
  0xdd   :  { %997 = vmatpush.msrb.mxu0 %v606_v36  ;;  %1020 = vmatpush.msrb.mxu1 %v638_v35  ;;  %v600_v51 = vld [vmem:[#allocation2 + $0x488] sm:$0xff]  ;;  %v622_v7 = vld [vmem:[#allocation2 + $0x538] sm:$0xff] }
  0xde   :  { %1040 = vmatpush.msrb.mxu2 %v676_v9  ;;  %1063 = vmatpush.msrb.mxu3 %v708_v39  ;;  %v692_v11 = vld [vmem:[#allocation2 + $0x768] sm:$0xff]  ;;  %v658_v26 = vld [vmem:[#allocation2 + $0x658] sm:$0xff] }
  0xdf   :  { %920 = vmatmul.f32.gmra.mxu0 %v1538_v5  ;;  %943 = vmatmul.f32.gmra.mxu1 %v1547_v21  ;;  %v598_v5 = vld [vmem:[#allocation2 + $0x478] sm:$0xff]  ;;  %v588_v29 = vld [vmem:[#allocation2 + $0x428] sm:$0xff] }
  0xe0   :  { %998 = vmatpush.msrb.mxu0 %v604_v27  ;;  %1021 = vmatpush.msrb.mxu1 %v636_v20  ;;  %v630_v21 = vld [vmem:[#allocation2 + $0x578] sm:$0xff]  ;;  %v620_v15 = vld [vmem:[#allocation2 + $0x528] sm:$0xff] }
  0xe1   :  { %1041 = vmatpush.msrb.mxu2 %v674_v45  ;;  %1064 = vmatpush.msrb.mxu3 %v706_v48  ;;  %v690_v16 = vld [vmem:[#allocation2 + $0x758] sm:$0xff]  ;;  %v656_v23 = vld [vmem:[#allocation2 + $0x648] sm:$0xff] }
  0xe2   :  { %999 = vmatpush.msrb.mxu0 %v602_v49  ;;  %1022 = vmatpush.msrb.mxu1 %v634_v50  ;;  %v586_v18 = vld [vmem:[#allocation2 + $0x418] sm:$0xff]  ;;  %v688_v25 = vld [vmem:[#allocation2 + $0x748] sm:$0xff] }
  0xe3   :  { %1042 = vmatpush.msrb.mxu2 %v672_v52  ;;  %1065 = vmatpush.msrb.mxu3 %v704_v41  ;;  %v618_v22 = vld [vmem:[#allocation2 + $0x518] sm:$0xff]  ;;  %v584_v44 = vld [vmem:[#allocation2 + $0x408] sm:$0xff] }
  0xe4   :  { %1000 = vmatpush.msrb.mxu0 %v600_v51  ;;  %1023 = vmatpush.msrb.mxu1 %v632_v53  ;;  %v616_v30 = vld [vmem:[#allocation2 + $0x508] sm:$0xff]  ;;  %v654_v31 = vld [vmem:[#allocation2 + $0x638] sm:$0xff] }
  0xe5   :  { %1043 = vmatpush.msrb.mxu2 %v670_v43  ;;  %1066 = vmatpush.msrb.mxu3 %v702_v54  ;;  %v686_v32 = vld [vmem:[#allocation2 + $0x738] sm:$0xff]  ;;  %v652_v46 = vld [vmem:[#allocation2 + $0x628] sm:$0xff] }
  0xe6   :  { %966 = vmatmul.f32.gmra.mxu2 %v1564_v37  ;;  %989 = vmatmul.f32.gmra.mxu3 %v1579_v12  ;;  %v624_v37 = vld [vmem:[#allocation2 + $0x548] sm:$0xff]  ;;  %v662_v12 = vld [vmem:[#allocation2 + $0x678] sm:$0xff] }
  0xe7   :  { %1001 = vmatpush.msrb.mxu0 %v598_v5  ;;  %1024 = vmatpush.msrb.mxu1 %v630_v21  ;;  %v684_v33 = vld [vmem:[#allocation2 + $0x728] sm:$0xff]  ;;  %v650_v19 = vld [vmem:[#allocation2 + $0x618] sm:$0xff] }
  0xe8   :  { %1044 = vmatpush.msrb.mxu2 %v668_v56  ;;  %1067 = vmatpush.msrb.mxu3 %v700_v28  ;;  %v682_v47 = vld [vmem:[#allocation2 + $0x718] sm:$0xff]  ;;  %v648_v55 = vld [vmem:[#allocation2 + $0x608] sm:$0xff] }
  0xe9   :  { %1002 = vmatpush.msrb.mxu0 %v596_v58  ;;  %1025 = vmatpush.msrb.mxu1 %v628_v57  ;;  %v680_v8 = vld [vmem:[#allocation2 + $0x708] sm:$0xff] }
  0xea   :  { %1045 = vmatpush.msrb.mxu2 %v666_v59  ;;  %1068 = vmatpush.msrb.mxu3 %v698_v60 }
  0xeb   :  { %1003 = vmatpush.msrb.mxu0 %v594_v61  ;;  %1026 = vmatpush.msrb.mxu1 %v626_v0 }
  0xec   :  { %1046 = vmatpush.msrb.mxu2 %v664_v2  ;;  %1069 = vmatpush.msrb.mxu3 %v696_v3 }
  0xed   :  { %1004 = vmatpush.msrb.mxu0 %v592_v14  ;;  %1027 = vmatpush.msrb.mxu1 %v624_v37 }
  0xee   :  { %1047 = vmatpush.msrb.mxu2 %v662_v12  ;;  %1070 = vmatpush.msrb.mxu3 %v694_v4 }
  0xef   :  { %1005 = vmatpush.msrb.mxu0 %v590_v62  ;;  %1028 = vmatpush.msrb.mxu1 %v622_v7 }
  0xf0   :  { %1048 = vmatpush.msrb.mxu2 %v660_v10  ;;  %1071 = vmatpush.msrb.mxu3 %v692_v11 }
  0xf1   :  { %1006 = vmatpush.msrb.mxu0 %v588_v29  ;;  %1029 = vmatpush.msrb.mxu1 %v620_v15 }
  0xf2   :  { %1049 = vmatpush.msrb.mxu2 %v658_v26  ;;  %1072 = vmatpush.msrb.mxu3 %v690_v16 }
  0xf3   :  { %1007 = vmatpush.msrb.mxu0 %v586_v18  ;;  %1030 = vmatpush.msrb.mxu1 %v618_v22 }
  0xf4   :  { %1050 = vmatpush.msrb.mxu2 %v656_v23  ;;  %1073 = vmatpush.msrb.mxu3 %v688_v25 }
  0xf5   :  { %1008 = vmatpush.msrb.mxu0 %v584_v44  ;;  %1031 = vmatpush.msrb.mxu1 %v616_v30 }
  0xf6   :  { %1051 = vmatpush.msrb.mxu2 %v654_v31  ;;  %1074 = vmatpush.msrb.mxu3 %v686_v32 }
  0xf7   :  { %1009 = vmatmul.f32.vlgmr.msrb.gmra.mxu0 %v1583_v17  ;;  %1032 = vmatmul.f32.vlgmr.msrb.gmra.mxu1 %v1587_v24  ;;  %v711_v24 = vld [vmem:[%s1651_s4] sm:$0x3] }
  0xf8   :  { %1052 = vmatpush.msrb.mxu2 %v652_v46  ;;  %1075 = vmatpush.msrb.mxu3 %v684_v33  ;;  %v713_v34 = vperm.slane %v711_v24, 0  ;;  %v714_v2 = vperm.slane %v711_v24, 1 }
  0xfa   :  { %1053 = vmatpush.msrb.mxu2 %v650_v19  ;;  %1076 = vmatpush.msrb.mxu3 %v682_v47 }
  0xfc   :  { %1054 = vmatpush.msrb.mxu2 %v648_v55  ;;  %1077 = vmatpush.msrb.mxu3 %v680_v8 }
  0xfd   :  { %1055 = vmatmul.f32.vlgmr.msrb.gmra.mxu2 %v1594_v38  ;;  %1078 = vmatmul.f32.vlgmr.msrb.gmra.mxu3 %v1596_v42 }
  0xff   :  { %1012 = vmatmul.f32.gmra.mxu0 %v1602_v40  ;;  %1035 = vmatmul.f32.gmra.mxu1 %v1607_v6 }
 0x105   :  { %1058 = vmatmul.f32.gmra.mxu2 %v1609_v13  ;;  %1081 = vmatmul.f32.gmra.mxu3 %v1612_v63 }
 0x128   :  { %v734_v17 = vpop.f32.mrf.mxu0 }
 0x129   :  { %v757_v1 = vpop.f32.mrf.mxu1  ;;  %v735_v35 = vadd.f32 %v734_v17, %v713_v34 }
 0x12b   :  { %v758_v9 = vadd.f32 %v757_v1, %v735_v35 }
 0x133   :  { %v737_v38 = vpop.f32.mrf.mxu0 }
 0x134   :  { %v738_v6 = vadd.f32 %v737_v38, %v713_v34 }
 0x135   :  { %v780_v36 = vpop.f32.mrf.mxu2  ;;  %v760_v40 = vpop.f32.mrf.mxu1 }
 0x136   :  { %v803_v42 = vpop.f32.mrf.mxu3  ;;  %v781_v39 = vadd.f32 %v780_v36, %v758_v9  ;;  %v761_v45 = vadd.f32 %v760_v40, %v738_v6 }
 0x138   :  { %v804_v20 = vadd.f32 %v803_v42, %v781_v39 }
 0x13f   :  { %v783_v27 = vpop.f32.mrf.mxu2  ;;  %v826_v13 = vpop.f32.mrf.mxu0 }
 0x140   :  { %v827_v63 = vadd.f32 %v826_v13, %v804_v20  ;;  %v784_v49 = vadd.f32 %v783_v27, %v761_v45  ;;  %v849_v50 = vpop.f32.mrf.mxu1 }
 0x142   :  { %v850_v52 = vadd.f32 %v849_v50, %v827_v63 }
 0x144   :  { %v806_v48 = vpop.f32.mrf.mxu3 }
 0x145   :  { %v807_v51 = vadd.f32 %v806_v48, %v784_v49 }
 0x148   :  { %v829_v43 = vpop.f32.mrf.mxu0 }
 0x149   :  { %v872_v41 = vpop.f32.mrf.mxu2  ;;  %v830_v21 = vadd.f32 %v829_v43, %v807_v51 }
 0x14a   :  { %v873_v53 = vadd.f32 %v872_v41, %v850_v52 }
 0x14b   :  { %v852_v56 = vpop.f32.mrf.mxu1 }
 0x14c   :  { %v895_v54 = vpop.f32.mrf.mxu3  ;;  %v853_v28 = vadd.f32 %v852_v56, %v830_v21 }
 0x14d   :  { %v896_v5 = vadd.f32 %v895_v54, %v873_v53 }
 0x14f   :  { %1085 = vst [vmem:[%s1652_s5] sm:$0xff] %v896_v5 }
 0x151   :  { %v918_v61 = vpop.f32.mrf.mxu0 }
 0x152   :  { %v919_v12 = vadd.f32 %v918_v61, %v714_v2 }
 0x153   :  { %v875_v58 = vpop.f32.mrf.mxu2  ;;  %v941_v0 = vpop.f32.mrf.mxu1 }
 0x154   :  { %v876_v57 = vadd.f32 %v875_v58, %v853_v28  ;;  %v898_v59 = vpop.f32.mrf.mxu3  ;;  %v942_v4 = vadd.f32 %v941_v0, %v919_v12 }
 0x156   :  { %v899_v60 = vadd.f32 %v898_v59, %v876_v57 }
 0x158   :  { %1087 = vst [vmem:[%s1652_s5 + $0x10] sm:$0xff] %v899_v60 }
 0x15c   :  { %v921_v3 = vpop.f32.mrf.mxu0  ;;  %v944_v62 = vpop.f32.mrf.mxu1 }
 0x15d   :  { %v922_v11 = vadd.f32 %v921_v3, %v714_v2 }
 0x15f   :  { %v964_v14 = vpop.f32.mrf.mxu2  ;;  %v987_v37 = vpop.f32.mrf.mxu3  ;;  %v945_v16 = vadd.f32 %v944_v62, %v922_v11 }
 0x160   :  { %v965_v7 = vadd.f32 %v964_v14, %v942_v4 }
 0x162   :  { %v988_v26 = vadd.f32 %v987_v37, %v965_v7 }
 0x169   :  { %v967_v29 = vpop.f32.mrf.mxu2  ;;  %v990_v15 = vpop.f32.mrf.mxu3 }
 0x16a   :  { %v968_v23 = vadd.f32 %v967_v29, %v945_v16 }
 0x16c   :  { %v991_v32 = vadd.f32 %v990_v15, %v968_v23 }
 0x174   :  { %v1010_v10 = vpop.f32.mrf.mxu0  ;;  %v1033_v22 = vpop.f32.mrf.mxu1 }
 0x175   :  { %v1011_v18 = vadd.f32 %v1010_v10, %v988_v26 }
 0x177   :  { %v1034_v25 = vadd.f32 %v1033_v22, %v1011_v18 }
 0x17c   :  { %v1013_v44 = vpop.f32.mrf.mxu0  ;;  %v1036_v47 = vpop.f32.mrf.mxu1 }
 0x17d   :  { %v1014_v33 = vadd.f32 %v1013_v44, %v991_v32 }
 0x17f   :  { %v1037_v55 = vadd.f32 %v1036_v47, %v1014_v33 }
 0x180   :  { %v1056_v30 = vpop.f32.mrf.mxu2  ;;  %v1079_v31 = vpop.f32.mrf.mxu3 }
 0x181   :  { %v1057_v46 = vadd.f32 %v1056_v30, %v1034_v25 }
 0x183   :  { %v1080_v19 = vadd.f32 %v1079_v31, %v1057_v46 }
 0x185   :  { %1086 = vst [vmem:[%s1652_s5 + $0x8] sm:$0xff] %v1080_v19 }
 0x188   :  { %v1059_v8 = vpop.f32.mrf.mxu2  ;;  %v1082_v24 = vpop.f32.mrf.mxu3 }
 0x189   :  { %v1060_v17 = vadd.f32 %v1059_v8, %v1037_v55 }
 0x18b   :  { %v1083_v34 = vadd.f32 %v1082_v24, %v1060_v17 }
 0x18d   :  { %1088 = vst [vmem:[%s1652_s5 + $0x18] sm:$0xff] %v1083_v34 }
 0x18e   :  { %1093 = vsyncpa [#allocation3], 1 }

// kernel: end_to_end_forward.10
= control target key start
LH: loop header
LB: loop body
LE: loop exit
PB: predicated region body
PF: predicated region fallthrough
CT: control target
= control target key end

     0   :  { %vm136_vm0 = vcmask 523264   ;;  %s2790_s6 = smov 24   ;;  %s2791_s10 = smov 25   ;;  %v2792_v4 = vmov 64.0   ;;  %vm309_vm8 = vcmask 130048   ;;  %s3566_s0 = inlined_call_operand.smem [shape: u32[31], index: -1, kind: input, shape index: {}] }
   0x1   :  { %s2829_s5 = sld [smem:[%s3566_s0]]   ;;  %2706 = vrcp.f32 %v2792_v4  ;;  %s2793_s14 = smov 5  }
   0x2   :  { %s2837_s9 = sld [smem:[%s3566_s0 + %s2790_s6]]   ;;  %s2794_s18 = smov 4  }
   0x3   :  { %s2843_s13 = sld [smem:[%s3566_s0 + %s2791_s10]]   ;;  %s2795_s22 = smov 8  }
   0x4   :  { %s2862_s17 = sld [smem:[%s3566_s0 + %s2793_s14]]   ;;  %s2796_s26 = smov 6  }
   0x5   :  { %s2867_s21 = sld [smem:[%s3566_s0 + %s2794_s18]]   ;;  %s2797_s30 = smov 9  }
   0x6   :  { %s2872_s25 = sld [smem:[%s3566_s0 + %s2795_s22]]   ;;  %s2798_s4 = smov 7  }
   0x7   :  { %v126_v0 = vld [vmem:[%s2829_s5] sm:$0xff]  ;;  %v127_v2 = vld [vmem:[%s2829_s5 + $0x8] sm:$0xff]  ;;  %v2707_v5 = vpop.eup %2706  ;;  %s2892_s29 = sld [smem:[%s3566_s0 + %s2796_s26]]   ;;  %s2805_s2 = smov 15  }
   0x8   :  { %v137_v1 = vsel %vm136_vm0, %v126_v0, 0.0  ;;  %v140_v3 = vsel %vm136_vm0, %v127_v2, 0.0  ;;  %v144_v6 = vmul.f32 64.0, %v2707_v5  ;;  %vm148_vm1 = vweird.f32 %v2707_v5  ;;  %s2927_s3 = sld [smem:[%s3566_s0 + %s2797_s30]]   ;;  %s2806_s7 = smov 1  }
   0x9   :  { %138 = vadd.xlane.f32.xlu0 %v137_v1  ;;  %s2948_s8 = sld [smem:[%s3566_s0 + %s2798_s4]]   ;;  %s2807_s11 = smov 12  }
   0xa   :  { %v145_v7 = vsub.f32 1.0, %v144_v6  ;;  %s3196_s6 = sld [smem:[%s3566_s0 + %s2805_s2]]   ;;  %s2808_s15 = smov 13  }
   0xb   :  { %v205_v21 = vld [vmem:[%s2867_s21 + $0x38] sm:$0xff]  ;;  %v204_v24 = vld [vmem:[%s2867_s21 + $0x30] sm:$0xff]  ;;  %v203_v27 = vld [vmem:[%s2867_s21 + $0x28] sm:$0xff]  ;;  %s2315_s10 = sld [smem:[%s3566_s0 + %s2806_s7]]   ;;  %s2809_s19 = smov 16  }
   0xc   :  { %v146_v8 = vmul.f32 %v2707_v5, %v145_v7  ;;  %v281_v22 = vld [vmem:[%s2872_s25 + $0x38] sm:$0xff]  ;;  %224 = vmatpush.msra.mxu1 %v205_v21  ;;  %v280_v25 = vld [vmem:[%s2872_s25 + $0x30] sm:$0xff]  ;;  %v279_v28 = vld [vmem:[%s2872_s25 + $0x28] sm:$0xff]  ;;  %s3207_s14 = sld [smem:[%s3566_s0 + %s2807_s11]]   ;;  %s2810_s23 = smov 3  }
   0xd   :  { %v2364_v23 = vld [vmem:[%s2867_s21 + $0x78] sm:$0xff]  ;;  %294 = vmatpush.msra.mxu2 %v281_v22  ;;  %v2363_v26 = vld [vmem:[%s2867_s21 + $0x70] sm:$0xff]  ;;  %v2362_v29 = vld [vmem:[%s2867_s21 + $0x68] sm:$0xff]  ;;  %s3231_s18 = sld [smem:[%s3566_s0 + %s2808_s15]]   ;;  %s2811_s27 = smov 17  }
   0xe   :  { %v147_v9 = vadd.f32 %v2707_v5, %v146_v8  ;;  %424 = vmatpush.msra.mxu0 %v2364_v23  ;;  %225 = vmatpush.msra.mxu1 %v204_v24  ;;  %v202_v30 = vld [vmem:[%s2867_s21 + $0x20] sm:$0xff]  ;;  %v201_v33 = vld [vmem:[%s2867_s21 + $0x18] sm:$0xff]  ;;  %v200_v36 = vld [vmem:[%s2867_s21 + $0x10] sm:$0xff]  ;;  %s3266_s22 = sld [smem:[%s3566_s0 + %s2809_s19]]  }
   0xf   :  { %295 = vmatpush.msra.mxu2 %v280_v25  ;;  %v278_v31 = vld [vmem:[%s2872_s25 + $0x20] sm:$0xff]  ;;  %v277_v34 = vld [vmem:[%s2872_s25 + $0x18] sm:$0xff]  ;;  %v276_v37 = vld [vmem:[%s2872_s25 + $0x10] sm:$0xff]  ;;  %s2317_s26 = sld [smem:[%s3566_s0 + %s2810_s23]]  }
  0x10   :  { %v2845_v10 = vsel %vm148_vm1, %v2707_v5, %v147_v9  ;;  %425 = vmatpush.msra.mxu0 %v2363_v26  ;;  %226 = vmatpush.msra.mxu1 %v203_v27  ;;  %v2361_v32 = vld [vmem:[%s2867_s21 + $0x60] sm:$0xff]  ;;  %v2360_v35 = vld [vmem:[%s2867_s21 + $0x58] sm:$0xff]  ;;  %v2359_v38 = vld [vmem:[%s2867_s21 + $0x50] sm:$0xff]  ;;  %s3304_s30 = sld [smem:[%s3566_s0 + %s2811_s27]]  }
  0x11   :  { %141 = vadd.xlane.f32.xlu0 %v140_v3  ;;  %296 = vmatpush.msra.mxu2 %v279_v28  ;;  %v199_v39 = vld [vmem:[%s2867_s21 + $0x8] sm:$0xff]  ;;  %v198_v42 = vld [vmem:[%s2867_s21] sm:$0xff]  ;;  %v246_v45 = vld [vmem:[%s2892_s29 + $0x38] sm:$0xff] }
  0x12   :  { %426 = vmatpush.msra.mxu0 %v2362_v29  ;;  %227 = vmatpush.msra.mxu1 %v202_v30  ;;  %v275_v40 = vld [vmem:[%s2872_s25 + $0x8] sm:$0xff]  ;;  %v274_v43 = vld [vmem:[%s2872_s25] sm:$0xff]  ;;  %v2386_v46 = vld [vmem:[%s2872_s25 + $0x78] sm:$0xff] }
  0x13   :  { %297 = vmatpush.msra.mxu2 %v278_v31  ;;  %v2358_v41 = vld [vmem:[%s2867_s21 + $0x48] sm:$0xff]  ;;  %v2357_v44 = vld [vmem:[%s2867_s21 + $0x40] sm:$0xff]  ;;  %v245_v48 = vld [vmem:[%s2892_s29 + $0x30] sm:$0xff] }
  0x14   :  { %427 = vmatpush.msra.mxu0 %v2361_v32  ;;  %228 = vmatpush.msra.mxu1 %v201_v33  ;;  %v2385_v49 = vld [vmem:[%s2872_s25 + $0x70] sm:$0xff]  ;;  %v244_v51 = vld [vmem:[%s2892_s29 + $0x28] sm:$0xff]  ;;  %v243_v54 = vld [vmem:[%s2892_s29 + $0x20] sm:$0xff] }
  0x15   :  { %298 = vmatpush.msra.mxu2 %v277_v34  ;;  %v2384_v52 = vld [vmem:[%s2872_s25 + $0x68] sm:$0xff]  ;;  %v2383_v55 = vld [vmem:[%s2872_s25 + $0x60] sm:$0xff]  ;;  %v242_v56 = vld [vmem:[%s2892_s29 + $0x18] sm:$0xff] }
  0x16   :  { %428 = vmatpush.msra.mxu0 %v2360_v35  ;;  %229 = vmatpush.msra.mxu1 %v200_v36  ;;  %v2382_v57 = vld [vmem:[%s2872_s25 + $0x58] sm:$0xff]  ;;  %v241_v58 = vld [vmem:[%s2892_s29 + $0x10] sm:$0xff]  ;;  %v240_v61 = vld [vmem:[%s2892_s29 + $0x8] sm:$0xff] }
  0x17   :  { %299 = vmatpush.msra.mxu2 %v276_v37  ;;  %v2381_v59 = vld [vmem:[%s2872_s25 + $0x50] sm:$0xff]  ;;  %v2380_v62 = vld [vmem:[%s2872_s25 + $0x48] sm:$0xff]  ;;  %v2379_v1 = vld [vmem:[%s2872_s25 + $0x40] sm:$0xff] }
  0x18   :  { %429 = vmatpush.msra.mxu0 %v2359_v38  ;;  %230 = vmatpush.msra.mxu1 %v199_v39  ;;  %v2375_v23 = vld [vmem:[%s2892_s29 + $0x78] sm:$0xff]  ;;  %v2373_v27 = vld [vmem:[%s2892_s29 + $0x68] sm:$0xff]  ;;  %v2372_v29 = vld [vmem:[%s2892_s29 + $0x60] sm:$0xff] }
  0x19   :  { %300 = vmatpush.msra.mxu2 %v275_v40  ;;  %v2371_v31 = vld [vmem:[%s2892_s29 + $0x58] sm:$0xff]  ;;  %v2369_v32 = vld [vmem:[%s2892_s29 + $0x48] sm:$0xff]  ;;  %v2368_v33 = vld [vmem:[%s2892_s29 + $0x40] sm:$0xff] }
  0x1a   :  { %430 = vmatpush.msra.mxu0 %v2358_v41  ;;  %231 = vmatpush.msra.mxu1 %v198_v42  ;;  %v2677_v40 = vld [vmem:[%s2948_s8] ss:$0 sm:$0xff] }
  0x1b   :  { %301 = vmatpush.msra.mxu2 %v274_v43  ;;  %v2674_v43 = vld [vmem:[%s2862_s17] ss:$0 sm:$0xff] }
  0x1c   :  { %431 = vmatpush.msra.mxu0 %v2357_v44  ;;  %259 = vmatpush.msrb.mxu1 %v246_v45  ;;  %v2676_v44 = vld [vmem:[%s2927_s3] ss:$0 sm:$0xff] }
  0x1d   :  { %498 = vmatpush.msrb.mxu2 %v2386_v46  ;;  %v2678_v46 = vld [vmem:[%s2927_s3 + $0x1] ss:$0 sm:$0xff] }
  0x1e   :  { %260 = vmatpush.msrb.mxu1 %v245_v48 }
  0x1f   :  { %499 = vmatpush.msrb.mxu2 %v2385_v49 }
  0x20   :  { %261 = vmatpush.msrb.mxu1 %v244_v51 }
  0x21   :  { %500 = vmatpush.msrb.mxu2 %v2384_v52 }
  0x22   :  { %262 = vmatpush.msrb.mxu1 %v243_v54  ;;  %v2679_v54 = vld [vmem:[%s2948_s8 + $0x1] ss:$0 sm:$0xff] }
  0x23   :  { %501 = vmatpush.msrb.mxu2 %v2383_v55 }
  0x24   :  { %263 = vmatpush.msrb.mxu1 %v242_v56 }
  0x25   :  { %502 = vmatpush.msrb.mxu2 %v2382_v57 }
  0x26   :  { %264 = vmatpush.msrb.mxu1 %v241_v58 }
  0x27   :  { %503 = vmatpush.msrb.mxu2 %v2381_v59 }
  0x28   :  { %265 = vmatpush.msrb.mxu1 %v240_v61 }
  0x29   :  { %504 = vmatpush.msrb.mxu2 %v2380_v62 }
  0x2b   :  { %505 = vmatpush.msrb.mxu2 %v2379_v1 }
  0x7c   :  { %v139_v11 = vpop.xlane.xlu0 %138 }
  0x7d   :  { %v150_v12 = vmul.f32 %v2845_v10, %v139_v11 }
  0x7f   :  { %v2848_v13 = vsub.f32 %v126_v0, %v150_v12  ;;  %v239_v0 = vld [vmem:[%s2892_s29] sm:$0xff] }
  0x80   :  { %266 = vmatpush.msrb.mxu1 %v239_v0  ;;  %v2672_v12 = vld [vmem:[%s2837_s9] ss:$0 sm:$0xff]  ;;  %s2799_s9 = smov 2  }
  0x81   :  { %v154_v14 = vmul.f32 %v2848_v13, %v2848_v13  ;;  %s2316_s12 = sld [smem:[%s3566_s0 + %s2799_s9]]   ;;  %s2814_s9 = smov 28  }
  0x83   :  { %v156_v15 = vsel %vm136_vm0, %v154_v14, 0.0 }
  0x84   :  { %157 = vadd.xlane.f32.xlu1 %v156_v15  ;;  %v142_v16 = vpop.xlane.xlu0 %141 }
  0x85   :  { %v151_v17 = vmul.f32 %v2845_v10, %v142_v16  ;;  %v2673_v16 = vld [vmem:[%s2843_s13] ss:$0 sm:$0xff]  ;;  %s2800_s13 = smov 10  }
  0x86   :  { %s3001_s16 = sld [smem:[%s3566_s0 + %s2800_s13]]   ;;  %s2815_s13 = smov 29  }
  0x87   :  { %v2854_v18 = vsub.f32 %v127_v2, %v151_v17  ;;  %v2989_v1 = vld [vmem:[%s2316_s12 + $0x8] sm:$0xff] }
  0x89   :  { %v155_v19 = vmul.f32 %v2854_v18, %v2854_v18 }
  0x8b   :  { %v159_v20 = vsel %vm136_vm0, %v155_v19, 0.0 }
  0x8c   :  { %160 = vadd.xlane.f32.xlu1 %v159_v20 }
  0xf7   :  { %v158_v47 = vpop.xlane.xlu1 %157 }
  0xf8   :  { %v162_v50 = vmul.f32 %v158_v47, %v2845_v10 }
  0xfa   :  { %v164_v53 = vadd.f32 1e-05, %v162_v50 }
  0xfc   :  { %2708 = vrsqrt.f32 %v164_v53  ;;  %vm172_vm3 = vweird.f32 %v164_v53 }
  0xff   :  { %v161_v60 = vpop.xlane.xlu1 %160 }
 0x100   :  { %v163_v63 = vmul.f32 %v161_v60, %v2845_v10  ;;  %v2985_v60 = vld [vmem:[%s2316_s12] sm:$0xff]  ;;  %s3489_s12 = sld [smem:[%s3566_s0 + %s2814_s9]]  }
 0x102   :  { %v2709_v2 = vpop.eup %2708  ;;  %v165_v3 = vadd.f32 1e-05, %v163_v63 }
 0x103   :  { %v167_v4 = vmul.f32 %v2709_v2, %v164_v53  ;;  %vm173_vm2 = vweird.f32 %v2709_v2 }
 0x104   :  { %2710 = vrsqrt.f32 %v165_v3  ;;  %vm174_vm4 = vmor %vm172_vm3, %vm173_vm2  ;;  %vm182_vm6 = vweird.f32 %v165_v3 }
 0x105   :  { %v168_v5 = vmul.f32 %v2709_v2, %v167_v4 }
 0x107   :  { %v169_v6 = vmul.f32 0.5, %v168_v5 }
 0x109   :  { %v170_v7 = vsub.f32 1.5, %v169_v6 }
 0x10a   :  { %v2711_v8 = vpop.eup %2710 }
 0x10b   :  { %v171_v9 = vmul.f32 %v2709_v2, %v170_v7  ;;  %v177_v11 = vmul.f32 %v2711_v8, %v165_v3  ;;  %vm183_vm5 = vweird.f32 %v2711_v8 }
 0x10c   :  { %vm184_vm7 = vmor %vm182_vm6, %vm183_vm5 }
 0x10d   :  { %v175_v14 = vsel %vm174_vm4, %v2709_v2, %v171_v9  ;;  %v178_v15 = vmul.f32 %v2711_v8, %v177_v11 }
 0x10e   :  { %v186_v17 = vmul.f32 %v175_v14, %v2848_v13  ;;  %v2374_v13 = vld [vmem:[%s2892_s29 + $0x70] sm:$0xff] }
 0x10f   :  { %v179_v19 = vmul.f32 0.5, %v178_v15 }
 0x110   :  { %v191_v20 = vmul.f32 %v2672_v12, %v186_v17 }
 0x111   :  { %v180_v21 = vsub.f32 1.5, %v179_v19 }
 0x112   :  { %v2929_v22 = vadd.f32 %v2673_v16, %v191_v20 }
 0x113   :  { %v181_v24 = vmul.f32 %v2711_v8, %v180_v21 }
 0x114   :  { %2345 = vmatmul.msk.f32.vlgmr.msra.gmra.mxu1 %vm136_vm0, %v2929_v22  ;;  %2349 = vmatmul.msk.f32.vlgmr.msra.gmra.mxu2 %vm136_vm0, %v2929_v22 }
 0x115   :  { %v185_v25 = vsel %vm184_vm7, %v2711_v8, %v181_v24  ;;  %2366 = vmatmul.msk.f32.vlgmr.msra.gmra.mxu0 %vm136_vm0, %v2929_v22  ;;  %461 = vmatpush.msra.mxu1 %v2375_v23  ;;  %v2409_v23 = vld [vmem:[%s2867_s21 + $0xb8] sm:$0xff]  ;;  %v2408_v24 = vld [vmem:[%s2867_s21 + $0xb0] sm:$0xff] }
 0x116   :  { %v187_v26 = vmul.f32 %v185_v25, %v2854_v18  ;;  %v2370_v18 = vld [vmem:[%s2892_s29 + $0x50] sm:$0xff]  ;;  %v2406_v25 = vld [vmem:[%s2867_s21 + $0xa0] sm:$0xff] }
 0x117   :  { %462 = vmatpush.msra.mxu1 %v2374_v13  ;;  %v2407_v13 = vld [vmem:[%s2867_s21 + $0xa8] sm:$0xff] }
 0x118   :  { %v192_v28 = vmul.f32 %v2672_v12, %v187_v26 }
 0x119   :  { %463 = vmatpush.msra.mxu1 %v2373_v27 }
 0x11a   :  { %v2942_v30 = vadd.f32 %v2673_v16, %v192_v28  ;;  %v2405_v28 = vld [vmem:[%s2867_s21 + $0x98] sm:$0xff] }
 0x11b   :  { %464 = vmatpush.msra.mxu1 %v2372_v29  ;;  %v2404_v29 = vld [vmem:[%s2867_s21 + $0x90] sm:$0xff] }
 0x11c   :  { %2346 = vmatmul.msk.f32.gmra.mxu1 %vm136_vm0, %v2942_v30  ;;  %2350 = vmatmul.msk.f32.gmra.mxu2 %vm136_vm0, %v2942_v30 }
 0x11d   :  { %2367 = vmatmul.msk.f32.gmra.mxu0 %vm136_vm0, %v2942_v30  ;;  %465 = vmatpush.msra.mxu1 %v2371_v31  ;;  %v401_v31 = vld [vmem:[%s3001_s16 + $0x8] sm:$0xff] }
 0x11e   :  { %655 = vmatpush.msra.mxu2 %v401_v31 }
 0x11f   :  { %466 = vmatpush.msra.mxu1 %v2370_v18 }
 0x121   :  { %467 = vmatpush.msra.mxu1 %v2369_v32  ;;  %v2675_v32 = vld [vmem:[%s2862_s17 + $0x1] ss:$0 sm:$0xff] }
 0x123   :  { %468 = vmatpush.msra.mxu1 %v2368_v33  ;;  %v2403_v33 = vld [vmem:[%s2867_s21 + $0x88] sm:$0xff] }
 0x124   :  { %2347 = vmatmul.msk.f32.vlgmr.msrb.gmra.mxu1 %vm136_vm0, %v2929_v22  ;;  %2388 = vmatmul.msk.f32.vlgmr.msrb.gmra.mxu2 %vm136_vm0, %v2929_v22 }
 0x12c   :  { %2348 = vmatmul.msk.f32.gmra.mxu1 %vm136_vm0, %v2942_v30  ;;  %2389 = vmatmul.msk.f32.gmra.mxu2 %vm136_vm0, %v2942_v30 }
 0x134   :  { %2377 = vmatmul.msk.f32.vlgmr.msra.gmra.mxu1 %vm136_vm0, %v2929_v22 }
 0x13c   :  { %2378 = vmatmul.msk.f32.gmra.mxu1 %vm136_vm0, %v2942_v30 }
 0x191   :  { %v233_v34 = vpop.f32.mrf.mxu1 }
 0x192   :  { %v234_v50 = vadd.f32 %v2674_v43, %v233_v34  ;;  %v433_v18 = vpop.f32.mrf.mxu0  ;;  %v2402_v34 = vld [vmem:[%s2867_s21 + $0x80] sm:$0xff] }
 0x197   :  { %v303_v35 = vpop.f32.mrf.mxu2 }
 0x198   :  { %v304_v53 = vadd.f32 %v2676_v44, %v303_v35  ;;  %v434_v35 = vadd.f32 %v2675_v32, %v433_v18  ;;  %v2451_v18 = vld [vmem:[%s2867_s21 + $0xf0] sm:$0xff] }
 0x199   :  { %v236_v36 = vpop.f32.mrf.mxu1 }
 0x19a   :  { %v237_v55 = vadd.f32 %v2674_v43, %v236_v36  ;;  %v436_v36 = vpop.f32.mrf.mxu0  ;;  %v2416_v43 = vld [vmem:[%s2892_s29 + $0x98] sm:$0xff] }
 0x19f   :  { %v306_v37 = vpop.f32.mrf.mxu2 }
 0x1a0   :  { %v307_v47 = vadd.f32 %v2676_v44, %v306_v37  ;;  %v437_v37 = vadd.f32 %v2675_v32, %v436_v36  ;;  %v2415_v44 = vld [vmem:[%s2892_s29 + $0x90] sm:$0xff]  ;;  %v2450_v32 = vld [vmem:[%s2867_s21 + $0xe8] sm:$0xff] }
 0x1a1   :  { %v268_v38 = vpop.f32.mrf.mxu1  ;;  %v2447_v36 = vld [vmem:[%s2867_s21 + $0xd0] sm:$0xff] }
 0x1a2   :  { %v269_v45 = vadd.f32 %v2677_v40, %v268_v38  ;;  %v400_v38 = vld [vmem:[%s3001_s16] sm:$0xff] }
 0x1a3   :  { %656 = vmatpush.msra.mxu2 %v400_v38  ;;  %v2445_v38 = vld [vmem:[%s2867_s21 + $0xc0] sm:$0xff] }
 0x1a7   :  { %v507_v39 = vpop.f32.mrf.mxu2 }
 0x1a8   :  { %v508_v52 = vadd.f32 %v2678_v46, %v507_v39  ;;  %v2420_v39 = vld [vmem:[%s2892_s29 + $0xb8] sm:$0xff] }
 0x1a9   :  { %v271_v41 = vpop.f32.mrf.mxu1  ;;  %2633 = vmatpush.msrb.mxu2 %v2420_v39 }
 0x1aa   :  { %v272_v42 = vadd.f32 %v2677_v40, %v271_v41  ;;  %v2419_v40 = vld [vmem:[%s2892_s29 + $0xb0] sm:$0xff]  ;;  %v2418_v41 = vld [vmem:[%s2892_s29 + $0xa8] sm:$0xff] }
 0x1ab   :  { %2634 = vmatpush.msrb.mxu2 %v2419_v40 }
 0x1ac   :  { %2351 = vmatpush.xpose.msk.msra.mxu3 %vm309_vm8, %v272_v42  ;;  %v2417_v42 = vld [vmem:[%s2892_s29 + $0xa0] sm:$0xff] }
 0x1ad   :  { %2635 = vmatpush.msrb.mxu2 %v2418_v41 }
 0x1af   :  { %v510_v48 = vpop.f32.mrf.mxu2  ;;  %2636 = vmatpush.msrb.mxu2 %v2417_v42 }
 0x1b0   :  { %v511_v49 = vadd.f32 %v2678_v46, %v510_v48  ;;  %2352 = vmatpush.xpose.msk.msra.mxu3 %vm309_vm8, %v269_v45  ;;  %v2414_v45 = vld [vmem:[%s2892_s29 + $0x88] sm:$0xff]  ;;  %v2413_v46 = vld [vmem:[%s2892_s29 + $0x80] sm:$0xff] }
 0x1b1   :  { %v470_v51 = vpop.f32.mrf.mxu1  ;;  %2637 = vmatpush.msrb.mxu2 %v2416_v43 }
 0x1b2   :  { %594 = vmatpush.msrb.mxu0 %v511_v49  ;;  %v471_v58 = vadd.f32 %v2679_v54, %v470_v51 }
 0x1b3   :  { %2353 = vmatmul.msk.f32.vlgmr.msra.gmra.mxu3 %vm309_vm8, %v234_v50  ;;  %2638 = vmatpush.msrb.mxu2 %v2415_v44 }
 0x1b4   :  { %391 = vmatpush.msrb.mxu3 %v307_v47  ;;  %595 = vmatpush.msrb.mxu0 %v508_v52 }
 0x1b5   :  { %2639 = vmatpush.msrb.mxu2 %v2414_v45 }
 0x1b6   :  { %392 = vmatpush.msrb.mxu3 %v304_v53  ;;  %723 = vmatpush.msra.mxu0 %v2420_v39 }
 0x1b7   :  { %2640 = vmatpush.msrb.mxu2 %v2413_v46 }
 0x1b8   :  { %724 = vmatpush.msra.mxu0 %v2419_v40  ;;  %v2680_v40 = vld [vmem:[%s2862_s17 + $0x2] ss:$0 sm:$0xff] }
 0x1b9   :  { %v473_v56 = vpop.f32.mrf.mxu1 }
 0x1ba   :  { %v474_v57 = vadd.f32 %v2679_v54, %v473_v56  ;;  %725 = vmatpush.msra.mxu0 %v2418_v41 }
 0x1bb   :  { %2354 = vmatmul.msk.f32.gmra.mxu3 %vm309_vm8, %v237_v55 }
 0x1bc   :  { %2390 = vmatpush.xpose.msk.msra.mxu3 %vm309_vm8, %v474_v57  ;;  %726 = vmatpush.msra.mxu0 %v2417_v42 }
 0x1be   :  { %727 = vmatpush.msra.mxu0 %v2416_v43  ;;  %v2463_v43 = vld [vmem:[%s2892_s29 + $0xf8] sm:$0xff] }
 0x1c0   :  { %2391 = vmatpush.xpose.msk.msra.mxu3 %vm309_vm8, %v471_v58  ;;  %728 = vmatpush.msra.mxu0 %v2415_v44 }
 0x1c2   :  { %729 = vmatpush.msra.mxu0 %v2414_v45  ;;  %v2462_v45 = vld [vmem:[%s2892_s29 + $0xf0] sm:$0xff] }
 0x1c4   :  { %730 = vmatpush.msra.mxu0 %v2413_v46  ;;  %v2461_v46 = vld [vmem:[%s2892_s29 + $0xe8] sm:$0xff] }
 0x236   :  { %v339_v59 = vpop.f32.mrf.mxu3 }
 0x237   :  { %v345_v61 = vmul.f32 0.25, %v339_v59 }
 0x239   :  { %v347_v62 = vadd.f32 %v345_v61, %v2985_v60 }
 0x23b   :  { %v349_v63 = vsel %vm309_vm8, %v347_v62, -inf }
 0x23c   :  { %350 = vmax.xlane.f32.xlu2 %v349_v63 }
 0x23e   :  { %v342_v0 = vpop.f32.mrf.mxu3 }
 0x23f   :  { %v346_v2 = vmul.f32 0.25, %v342_v0  ;;  %v3040_v0 = vld [vmem:[%s2948_s8 + $0x2] ss:$0 sm:$0xff] }
 0x241   :  { %v348_v3 = vadd.f32 %v346_v2, %v2989_v1 }
 0x243   :  { %v352_v4 = vsel %vm309_vm8, %v348_v3, -inf }
 0x244   :  { %353 = vmax.xlane.f32.xlu2 %v352_v4 }
 0x2af   :  { %v351_v5 = vpop.xlane.xlu2 %350 }
 0x2b0   :  { %v355_v6 = vsub.f32 %v347_v62, %v351_v5 }
 0x2b2   :  { %v357_v7 = vmul.f32 1.442695, %v355_v6 }
 0x2b4   :  { %2712 = vpow2.f32 %v357_v7 }
 0x2b7   :  { %v354_v8 = vpop.xlane.xlu2 %353 }
 0x2b8   :  { %v356_v9 = vsub.f32 %v348_v3, %v354_v8 }
 0x2ba   :  { %v2713_v11 = vpop.eup %2712  ;;  %v359_v12 = vmul.f32 1.442695, %v356_v9 }
 0x2bb   :  { %v361_v14 = vsel %vm309_vm8, %v2713_v11, 0.0 }
 0x2bc   :  { %2714 = vpow2.f32 %v359_v12  ;;  %362 = vadd.xlane.f32.xlu0 %v361_v14 }
 0x2c2   :  { %v2715_v15 = vpop.eup %2714 }
 0x2c3   :  { %v364_v16 = vsel %vm309_vm8, %v2715_v15, 0.0 }
 0x2c4   :  { %365 = vadd.xlane.f32.xlu1 %v364_v16 }
 0x32f   :  { %v363_v17 = vpop.xlane.xlu0 %362 }
 0x330   :  { %2716 = vrcp.f32 %v363_v17 }
 0x336   :  { %v2717_v19 = vpop.eup %2716 }
 0x337   :  { %v366_v20 = vpop.xlane.xlu1 %365  ;;  %v369_v21 = vmul.f32 %v2717_v19, %v2713_v11  ;;  %v2397_v11 = vld [vmem:[%s3001_s16 + $0x18] sm:$0xff] }
 0x338   :  { %2718 = vrcp.f32 %v366_v20  ;;  %626 = vmatpush.msrb.mxu1 %v2397_v11  ;;  %v2396_v20 = vld [vmem:[%s3001_s16 + $0x10] sm:$0xff] }
 0x339   :  { %2355 = vmatmul.msk.f32.vlgmr.msrb.gmra.mxu3 %vm309_vm8, %v369_v21  ;;  %v2431_v21 = vld [vmem:[%s2872_s25 + $0xb8] sm:$0xff] }
 0x33a   :  { %686 = vmatpush.msrb.mxu3 %v2409_v23  ;;  %627 = vmatpush.msrb.mxu1 %v2396_v20  ;;  %v2430_v23 = vld [vmem:[%s2872_s25 + $0xb0] sm:$0xff] }
 0x33c   :  { %687 = vmatpush.msrb.mxu3 %v2408_v24  ;;  %760 = vmatpush.msra.mxu1 %v2431_v21  ;;  %v2429_v24 = vld [vmem:[%s2872_s25 + $0xa8] sm:$0xff] }
 0x33e   :  { %v2719_v26 = vpop.eup %2718  ;;  %688 = vmatpush.msrb.mxu3 %v2407_v13  ;;  %761 = vmatpush.msra.mxu1 %v2430_v23  ;;  %v2428_v13 = vld [vmem:[%s2872_s25 + $0xa0] sm:$0xff] }
 0x33f   :  { %v370_v27 = vmul.f32 %v2719_v26, %v2715_v15  ;;  %v2426_v26 = vld [vmem:[%s2872_s25 + $0x90] sm:$0xff] }
 0x340   :  { %689 = vmatpush.msrb.mxu3 %v2406_v25  ;;  %762 = vmatpush.msra.mxu1 %v2429_v24  ;;  %v2427_v25 = vld [vmem:[%s2872_s25 + $0x98] sm:$0xff] }
 0x341   :  { %2356 = vmatmul.msk.f32.gmra.mxu3 %vm309_vm8, %v370_v27  ;;  %v2425_v27 = vld [vmem:[%s2872_s25 + $0x88] sm:$0xff] }
 0x342   :  { %690 = vmatpush.msrb.mxu3 %v2405_v28  ;;  %763 = vmatpush.msra.mxu1 %v2428_v13  ;;  %v2424_v28 = vld [vmem:[%s2872_s25 + $0x80] sm:$0xff] }
 0x344   :  { %691 = vmatpush.msrb.mxu3 %v2404_v29  ;;  %764 = vmatpush.msra.mxu1 %v2427_v25  ;;  %v2452_v29 = vld [vmem:[%s2867_s21 + $0xf8] sm:$0xff] }
 0x346   :  { %692 = vmatpush.msrb.mxu3 %v2403_v33  ;;  %765 = vmatpush.msra.mxu1 %v2426_v26  ;;  %v2449_v33 = vld [vmem:[%s2867_s21 + $0xe0] sm:$0xff] }
 0x348   :  { %693 = vmatpush.msrb.mxu3 %v2402_v34  ;;  %766 = vmatpush.msra.mxu1 %v2425_v27  ;;  %v2448_v34 = vld [vmem:[%s2867_s21 + $0xd8] sm:$0xff] }
 0x349   :  { %2392 = vmatmul.msk.f32.vlgmr.msra.gmra.mxu3 %vm309_vm8, %v434_v35 }
 0x34a   :  { %767 = vmatpush.msra.mxu1 %v2424_v28 }
 0x351   :  { %2393 = vmatmul.msk.f32.gmra.mxu3 %vm309_vm8, %v437_v37  ;;  %v2446_v37 = vld [vmem:[%s2867_s21 + $0xc8] sm:$0xff]  ;;  %s2802_s21 = smov 26  }
 0x352   :  { %s3161_s24 = sld [smem:[%s3566_s0 + %s2802_s21]]   ;;  %s2817_s21 = smov 20  }
 0x359   :  { %2411 = vmatmul.msk.f32.vlgmr.msrb.gmra.mxu3 %vm136_vm0, %v2929_v22 }
 0x361   :  { %2412 = vmatmul.msk.f32.gmra.mxu3 %vm136_vm0, %v2942_v30 }
 0x3bc   :  { %v394_v47 = vpop.f32.mrf.mxu3 }
 0x3bd   :  { %2400 = vmatmul.msk.f32.vlgmr.msra.gmra.mxu2 %vm309_vm8, %v394_v47  ;;  %v2460_v47 = vld [vmem:[%s2892_s29 + $0xe0] sm:$0xff] }
 0x3c4   :  { %v397_v48 = vpop.f32.mrf.mxu3 }
 0x3c5   :  { %2401 = vmatmul.msk.f32.gmra.mxu2 %vm309_vm8, %v397_v48 }
 0x3cc   :  { %v542_v49 = vpop.f32.mrf.mxu3 }
 0x3cd   :  { %v548_v50 = vmul.f32 0.25, %v542_v49  ;;  %2423 = vmatmul.msk.f32.vlgmr.msrb.gmra.mxu2 %vm136_vm0, %v2942_v30  ;;  %v2459_v49 = vld [vmem:[%s2892_s29 + $0xd8] sm:$0xff] }
 0x3cf   :  { %v550_v51 = vadd.f32 %v548_v50, %v2985_v60 }
 0x3d1   :  { %v552_v52 = vsel %vm309_vm8, %v550_v51, -inf }
 0x3d2   :  { %553 = vmax.xlane.f32.xlu2 %v552_v52  ;;  %v2457_v52 = vld [vmem:[%s2892_s29 + $0xc8] sm:$0xff] }
 0x3d4   :  { %v545_v53 = vpop.f32.mrf.mxu3 }
 0x3d5   :  { %v549_v54 = vmul.f32 0.25, %v545_v53  ;;  %v2456_v53 = vld [vmem:[%s2892_s29 + $0xc0] sm:$0xff] }
 0x3d7   :  { %v551_v55 = vadd.f32 %v549_v54, %v2989_v1 }
 0x3d9   :  { %v555_v56 = vsel %vm309_vm8, %v551_v55, -inf }
 0x3da   :  { %556 = vmax.xlane.f32.xlu0 %v555_v56  ;;  %v2442_v56 = vld [vmem:[%s3001_s16 + $0x28] sm:$0xff] }
 0x3dc   :  { %v695_v39 = vpop.f32.mrf.mxu3 }
 0x3dd   :  { %v696_v44 = vadd.f32 %v2680_v40, %v695_v39 }
 0x3e4   :  { %v698_v48 = vpop.f32.mrf.mxu3 }
 0x3e5   :  { %v699_v50 = vadd.f32 %v2680_v40, %v698_v48 }
 0x440   :  { %v3035_v57 = vpop.f32.mrf.mxu2 }
 0x445   :  { %v554_v58 = vpop.xlane.xlu2 %553 }
 0x446   :  { %v558_v59 = vsub.f32 %v550_v51, %v554_v58  ;;  %v2458_v51 = vld [vmem:[%s2892_s29 + $0xd0] sm:$0xff]  ;;  %s2819_s29 = smov 23  }
 0x447   :  { %s3543_s2 = sld [smem:[%s3566_s0 + %s2819_s29]]  }
 0x448   :  { %v560_v61 = vmul.f32 1.442695, %v558_v59  ;;  %v3037_v62 = vpop.f32.mrf.mxu2  ;;  %v2441_v59 = vld [vmem:[%s3001_s16 + $0x20] sm:$0xff] }
 0x44a   :  { %2720 = vpow2.f32 %v560_v61  ;;  %v2682_v61 = vld [vmem:[%s2927_s3 + $0x2] ss:$0 sm:$0xff] }
 0x44d   :  { %v557_v63 = vpop.xlane.xlu0 %556 }
 0x44e   :  { %v559_v2 = vsub.f32 %v551_v55, %v557_v63 }
 0x450   :  { %v2721_v3 = vpop.eup %2720  ;;  %v562_v4 = vmul.f32 1.442695, %v559_v2  ;;  %v735_v5 = vpop.f32.mrf.mxu2 }
 0x451   :  { %v736_v6 = vadd.f32 %v3040_v0, %v735_v5  ;;  %v564_v7 = vsel %vm309_vm8, %v2721_v3, 0.0 }
 0x452   :  { %2722 = vpow2.f32 %v562_v4  ;;  %565 = vadd.xlane.f32.xlu1 %v564_v7 }
 0x453   :  { %2435 = vmatpush.xpose.msk.msra.mxu2 %vm309_vm8, %v736_v6 }
 0x458   :  { %v2723_v8 = vpop.eup %2722 }
 0x459   :  { %v567_v9 = vsel %vm309_vm8, %v2723_v8, 0.0 }
 0x45a   :  { %568 = vadd.xlane.f32.xlu2 %v567_v9 }
 0x4c5   :  { %v566_v12 = vpop.xlane.xlu1 %565 }
 0x4c6   :  { %2724 = vrcp.f32 %v566_v12 }
 0x4cc   :  { %v2725_v14 = vpop.eup %2724 }
 0x4cd   :  { %v569_v15 = vpop.xlane.xlu2 %568  ;;  %v572_v16 = vmul.f32 %v2725_v14, %v2721_v3  ;;  %v2684_v14 = vld [vmem:[%s2948_s8 + $0x3] ss:$0 sm:$0xff] }
 0x4ce   :  { %2726 = vrcp.f32 %v569_v15 }
 0x4cf   :  { %2394 = vmatmul.msk.f32.vlgmr.msrb.gmra.mxu0 %vm309_vm8, %v572_v16 }
 0x4d0   :  { %888 = vmatpush.msrb.mxu0 %v2442_v56 }
 0x4d2   :  { %889 = vmatpush.msrb.mxu0 %v2441_v59 }
 0x4d4   :  { %v2727_v17 = vpop.eup %2726 }
 0x4d5   :  { %v573_v19 = vmul.f32 %v2727_v17, %v2723_v8 }
 0x4d7   :  { %2395 = vmatmul.msk.f32.gmra.mxu0 %vm309_vm8, %v573_v19 }
 0x4df   :  { %2422 = vmatmul.msk.f32.vlgmr.msra.gmra.mxu0 %vm136_vm0, %v2929_v22 }
 0x54c   :  { %v597_v31 = vpop.f32.mrf.mxu0 }
 0x54d   :  { %2398 = vmatmul.msk.f32.vlgmr.msrb.gmra.mxu1 %vm309_vm8, %v597_v31  ;;  %v2473_v31 = vld [vmem:[%s2872_s25 + $0xf0] sm:$0xff] }
 0x54e   :  { %921 = vmatpush.msrb.mxu1 %v2452_v29  ;;  %v2474_v29 = vld [vmem:[%s2872_s25 + $0xf8] sm:$0xff] }
 0x550   :  { %922 = vmatpush.msrb.mxu1 %v2451_v18  ;;  %v2472_v18 = vld [vmem:[%s2872_s25 + $0xe8] sm:$0xff] }
 0x552   :  { %923 = vmatpush.msrb.mxu1 %v2450_v32  ;;  %v2471_v32 = vld [vmem:[%s2872_s25 + $0xe0] sm:$0xff] }
 0x554   :  { %v600_v35 = vpop.f32.mrf.mxu0  ;;  %924 = vmatpush.msrb.mxu1 %v2449_v33  ;;  %v2470_v33 = vld [vmem:[%s2872_s25 + $0xd8] sm:$0xff] }
 0x555   :  { %2399 = vmatmul.msk.f32.gmra.mxu1 %vm309_vm8, %v600_v35  ;;  %v2468_v35 = vld [vmem:[%s2872_s25 + $0xc8] sm:$0xff] }
 0x556   :  { %925 = vmatpush.msrb.mxu1 %v2448_v34  ;;  %v2469_v34 = vld [vmem:[%s2872_s25 + $0xd0] sm:$0xff] }
 0x558   :  { %926 = vmatpush.msrb.mxu1 %v2447_v36  ;;  %v2467_v36 = vld [vmem:[%s2872_s25 + $0xc0] sm:$0xff]  ;;  %s2803_s25 = smov 14  }
 0x559   :  { %s3168_s28 = sld [smem:[%s3566_s0 + %s2803_s25]]   ;;  %s2818_s25 = smov 22  }
 0x55a   :  { %927 = vmatpush.msrb.mxu1 %v2446_v37 }
 0x55c   :  { %v732_v41 = vpop.f32.mrf.mxu0  ;;  %928 = vmatpush.msrb.mxu1 %v2445_v38 }
 0x55d   :  { %v733_v42 = vadd.f32 %v3040_v0, %v732_v41  ;;  %2433 = vmatmul.msk.f32.vlgmr.msra.gmra.mxu1 %vm136_vm0, %v2929_v22 }
 0x55f   :  { %2436 = vmatpush.xpose.msk.msra.mxu2 %vm309_vm8, %v733_v42 }
 0x562   :  { %2437 = vmatmul.msk.f32.vlgmr.msra.gmra.mxu2 %vm309_vm8, %v696_v44 }
 0x563   :  { %958 = vmatpush.msrb.mxu2 %v2463_v43 }
 0x565   :  { %959 = vmatpush.msrb.mxu2 %v2462_v45  ;;  %2434 = vmatmul.msk.f32.gmra.mxu1 %vm136_vm0, %v2942_v30 }
 0x567   :  { %960 = vmatpush.msrb.mxu2 %v2461_v46  ;;  %v2683_v46 = vld [vmem:[%s2862_s17 + $0x3] ss:$0 sm:$0xff]  ;;  %s2801_s17 = smov 11  }
 0x568   :  { %s2325_s20 = sld [smem:[%s3566_s0 + %s2801_s17]]   ;;  %s2816_s17 = smov 21  }
 0x569   :  { %961 = vmatpush.msrb.mxu2 %v2460_v47 }
 0x56a   :  { %2438 = vmatmul.msk.f32.gmra.mxu2 %vm309_vm8, %v699_v50 }
 0x56b   :  { %962 = vmatpush.msrb.mxu2 %v2459_v49 }
 0x56d   :  { %963 = vmatpush.msrb.mxu2 %v2458_v51  ;;  %2454 = vmatmul.msk.f32.vlgmr.msrb.gmra.mxu1 %vm136_vm0, %v2929_v22  ;;  %v2685_v51 = vld [vmem:[%s2927_s3 + $0x3] ss:$0 sm:$0xff]  ;;  %s2820_s3 = smov 30  }
 0x56f   :  { %964 = vmatpush.msrb.mxu2 %v2457_v52 }
 0x571   :  { %965 = vmatpush.msrb.mxu2 %v2456_v53 }
 0x572   :  { %2465 = vmatmul.msk.f32.vlgmr.msrb.gmra.mxu2 %vm136_vm0, %v2929_v22 }
 0x575   :  { %2455 = vmatmul.msk.f32.gmra.mxu1 %vm136_vm0, %v2942_v30 }
 0x57a   :  { %2466 = vmatmul.msk.f32.gmra.mxu2 %vm136_vm0, %v2942_v30 }
 0x5ca   :  { %v3095_v54 = vpop.f32.mrf.mxu1 }
 0x5cb   :  { %v659_v53 = vadd.f32 %v3035_v57, %v3095_v54 }
 0x5d2   :  { %v3097_v55 = vpop.f32.mrf.mxu1 }
 0x5d3   :  { %v662_v59 = vadd.f32 %v3037_v62, %v3097_v55 }
 0x5da   :  { %v769_v58 = vpop.f32.mrf.mxu1 }
 0x5db   :  { %v770_v2 = vadd.f32 %v2682_v61, %v769_v58 }
 0x5e2   :  { %v772_v63 = vpop.f32.mrf.mxu1 }
 0x5e3   :  { %v773_v0 = vadd.f32 %v2682_v61, %v772_v63 }
 0x5e5   :  { %v804_v3 = vpop.f32.mrf.mxu2  ;;  %856 = vmatpush.msra.mxu3 %v773_v0 }
 0x5e6   :  { %v810_v4 = vmul.f32 0.25, %v804_v3 }
 0x5e7   :  { %857 = vmatpush.msra.mxu3 %v770_v2 }
 0x5e8   :  { %v812_v5 = vadd.f32 %v810_v4, %v2985_v60 }
 0x5e9   :  { %995 = vmatpush.msrb.mxu3 %v2474_v29 }
 0x5ea   :  { %v814_v6 = vsel %vm309_vm8, %v812_v5, -inf  ;;  %v930_v45 = vpop.f32.mrf.mxu1 }
 0x5eb   :  { %815 = vmax.xlane.f32.xlu0 %v814_v6  ;;  %996 = vmatpush.msrb.mxu3 %v2473_v31  ;;  %v931_v47 = vadd.f32 %v2683_v46, %v930_v45  ;;  %v2788_v31 = vld [vmem:[%s2829_s5] sm:$0xff] }
 0x5ed   :  { %v807_v7 = vpop.f32.mrf.mxu2  ;;  %997 = vmatpush.msrb.mxu3 %v2472_v18 }
 0x5ee   :  { %v811_v8 = vmul.f32 0.25, %v807_v7 }
 0x5ef   :  { %998 = vmatpush.msrb.mxu3 %v2471_v32 }
 0x5f0   :  { %v813_v9 = vadd.f32 %v811_v8, %v2989_v1 }
 0x5f1   :  { %999 = vmatpush.msrb.mxu3 %v2470_v33 }
 0x5f2   :  { %v817_v11 = vsel %vm309_vm8, %v813_v9, -inf  ;;  %v933_v49 = vpop.f32.mrf.mxu1 }
 0x5f3   :  { %818 = vmax.xlane.f32.xlu1 %v817_v11  ;;  %1000 = vmatpush.msrb.mxu3 %v2469_v34  ;;  %v934_v50 = vadd.f32 %v2683_v46, %v933_v49 }
 0x5f5   :  { %v967_v12 = vpop.f32.mrf.mxu2  ;;  %1001 = vmatpush.msrb.mxu3 %v2468_v35 }
 0x5f6   :  { %v968_v17 = vadd.f32 %v2684_v14, %v967_v12 }
 0x5f7   :  { %1002 = vmatpush.msrb.mxu3 %v2467_v36  ;;  %v2789_v36 = vld [vmem:[%s2829_s5 + $0x8] sm:$0xff]  ;;  %s2804_s5 = smov 27  }
 0x5f8   :  { %s3191_s1 = sld [smem:[%s3566_s0 + %s2804_s5]]  }
 0x5f9   :  { %s3526_s5 = sld [smem:[%s3566_s0 + %s2818_s25]]  }
 0x5fd   :  { %v970_v15 = vpop.f32.mrf.mxu2 }
 0x5fe   :  { %v971_v16 = vadd.f32 %v2684_v14, %v970_v15 }
 0x600   :  { %2478 = vmatpush.xpose.msk.msra.mxu0 %vm309_vm8, %v971_v16 }
 0x604   :  { %2479 = vmatpush.xpose.msk.msra.mxu0 %vm309_vm8, %v968_v17 }
 0x65e   :  { %v816_v19 = vpop.xlane.xlu0 %815 }
 0x65f   :  { %v820_v20 = vsub.f32 %v812_v5, %v816_v19 }
 0x661   :  { %v822_v21 = vmul.f32 1.442695, %v820_v20 }
 0x663   :  { %2728 = vpow2.f32 %v822_v21 }
 0x666   :  { %v819_v23 = vpop.xlane.xlu1 %818 }
 0x667   :  { %v821_v24 = vsub.f32 %v813_v9, %v819_v23 }
 0x669   :  { %v2729_v13 = vpop.eup %2728  ;;  %v824_v25 = vmul.f32 1.442695, %v821_v24  ;;  %v2484_v24 = vld [vmem:[%s3001_s16 + $0x30] sm:$0xff] }
 0x66a   :  { %v826_v26 = vsel %vm309_vm8, %v2729_v13, 0.0 }
 0x66b   :  { %2730 = vpow2.f32 %v824_v25  ;;  %827 = vadd.xlane.f32.xlu2 %v826_v26  ;;  %v2686_v26 = vld [vmem:[%s2325_s20] ss:$0 sm:$0xff]  ;;  %s3518_s20 = sld [smem:[%s3566_s0 + %s2816_s17]]  }
 0x671   :  { %v2731_v27 = vpop.eup %2730 }
 0x672   :  { %v829_v28 = vsel %vm309_vm8, %v2731_v27, 0.0 }
 0x673   :  { %830 = vadd.xlane.f32.xlu0 %v829_v28 }
 0x6de   :  { %v828_v37 = vpop.xlane.xlu2 %827 }
 0x6df   :  { %2732 = vrcp.f32 %v828_v37 }
 0x6e5   :  { %v2733_v38 = vpop.eup %2732 }
 0x6e6   :  { %v834_v39 = vmul.f32 %v2733_v38, %v2729_v13  ;;  %v831_v40 = vpop.xlane.xlu0 %830 }
 0x6e7   :  { %2734 = vrcp.f32 %v831_v40  ;;  %v1245_v40 = vld [vmem:[%s3168_s28 + $0x30] sm:$0xff] }
 0x6e8   :  { %2439 = vmatmul.msk.f32.vlgmr.msra.gmra.mxu3 %vm309_vm8, %v834_v39  ;;  %v1246_v39 = vld [vmem:[%s3168_s28 + $0x38] sm:$0xff] }
 0x6ed   :  { %v2735_v41 = vpop.eup %2734 }
 0x6ee   :  { %v835_v42 = vmul.f32 %v2735_v41, %v2731_v27  ;;  %v1244_v41 = vld [vmem:[%s3168_s28 + $0x28] sm:$0xff] }
 0x6f0   :  { %2440 = vmatmul.msk.f32.gmra.mxu3 %vm309_vm8, %v835_v42  ;;  %v1243_v42 = vld [vmem:[%s3168_s28 + $0x20] sm:$0xff] }
 0x6f8   :  { %2476 = vmatmul.msk.f32.vlgmr.msrb.gmra.mxu3 %vm136_vm0, %v2929_v22 }
 0x700   :  { %2477 = vmatmul.msk.f32.gmra.mxu3 %vm136_vm0, %v2942_v30 }
 0x76b   :  { %v859_v43 = vpop.f32.mrf.mxu3 }
 0x76c   :  { %2443 = vmatmul.msk.f32.vlgmr.msrb.gmra.mxu0 %vm309_vm8, %v859_v43 }
 0x76d   :  { %1265 = vmatpush.msrb.mxu0 %v1246_v39 }
 0x76f   :  { %1266 = vmatpush.msrb.mxu0 %v1245_v40 }
 0x771   :  { %1267 = vmatpush.msrb.mxu0 %v1244_v41 }
 0x773   :  { %v862_v44 = vpop.f32.mrf.mxu3  ;;  %1268 = vmatpush.msrb.mxu0 %v1243_v42 }
 0x774   :  { %2444 = vmatmul.msk.f32.gmra.mxu0 %vm309_vm8, %v862_v44 }
 0x77b   :  { %v1004_v48 = vpop.f32.mrf.mxu3 }
 0x77c   :  { %2480 = vmatmul.msk.f32.vlgmr.msra.gmra.mxu0 %vm309_vm8, %v931_v47  ;;  %v1005_v30 = vadd.f32 %v2685_v51, %v1004_v48 }
 0x783   :  { %v1007_v52 = vpop.f32.mrf.mxu3 }
 0x784   :  { %v1008_v22 = vadd.f32 %v2685_v51, %v1007_v52  ;;  %2481 = vmatmul.msk.f32.gmra.mxu0 %vm309_vm8, %v934_v50 }
 0x786   :  { %1091 = vmatpush.msra.mxu1 %v1008_v22  ;;  %v1242_v22 = vld [vmem:[%s3168_s28 + $0x18] sm:$0xff] }
 0x787   :  { %1269 = vmatpush.msrb.mxu0 %v1242_v22  ;;  %v1286_v22 = vld [vmem:[%s3266_s22 + $0x30] sm:$0xff] }
 0x788   :  { %1092 = vmatpush.msra.mxu1 %v1005_v30  ;;  %v1241_v30 = vld [vmem:[%s3168_s28 + $0x10] sm:$0xff] }
 0x789   :  { %1270 = vmatpush.msrb.mxu0 %v1241_v30  ;;  %v1285_v30 = vld [vmem:[%s3266_s22 + $0x28] sm:$0xff] }
 0x7e9   :  { %v891_v56 = vpop.f32.mrf.mxu0 }
 0x7ea   :  { %v897_v58 = vadd.f32 %v891_v56, %v659_v53  ;;  %v1240_v53 = vld [vmem:[%s3168_s28 + $0x8] sm:$0xff]  ;;  %v1239_v56 = vld [vmem:[%s3168_s28] sm:$0xff] }
 0x7eb   :  { %1271 = vmatpush.msrb.mxu0 %v1240_v53  ;;  %v1284_v53 = vld [vmem:[%s3266_s22 + $0x20] sm:$0xff] }
 0x7ed   :  { %1272 = vmatpush.msrb.mxu0 %v1239_v56  ;;  %v1283_v56 = vld [vmem:[%s3266_s22 + $0x18] sm:$0xff] }
 0x7f1   :  { %v894_v61 = vpop.f32.mrf.mxu0 }
 0x7f2   :  { %v898_v63 = vadd.f32 %v894_v61, %v662_v59  ;;  %v1205_v59 = vld [vmem:[%s3207_s14 + $0x38] sm:$0xff] }
 0x7f3   :  { %v2507_v61 = vld [vmem:[%s3207_s14 + $0x78] sm:$0xff]  ;;  %1224 = vmatpush.msra.mxu3 %v1205_v59  ;;  %v1282_v59 = vld [vmem:[%s3266_s22 + $0x10] sm:$0xff] }
 0x7f4   :  { %1429 = vmatpush.msra.mxu0 %v2507_v61  ;;  %v1281_v61 = vld [vmem:[%s3266_s22 + $0x8] sm:$0xff] }
 0x7f9   :  { %v1039_v0 = vpop.f32.mrf.mxu0 }
 0x7fa   :  { %v1045_v2 = vmul.f32 0.25, %v1039_v0  ;;  %v3217_v0 = vld [vmem:[%s2315_s10 + $0x8] sm:$0xff] }
 0x7fc   :  { %v1047_v3 = vadd.f32 %v1045_v2, %v2985_v60  ;;  %v2506_v2 = vld [vmem:[%s3207_s14 + $0x70] sm:$0xff] }
 0x7fd   :  { %1430 = vmatpush.msra.mxu0 %v2506_v2  ;;  %v2518_v2 = vld [vmem:[%s3168_s28 + $0x78] sm:$0xff] }
 0x7fe   :  { %v1049_v4 = vsel %vm309_vm8, %v1047_v3, -inf }
 0x7ff   :  { %1050 = vmax.xlane.f32.xlu1 %v1049_v4  ;;  %v2505_v4 = vld [vmem:[%s3207_s14 + $0x68] sm:$0xff] }
 0x800   :  { %1431 = vmatpush.msra.mxu0 %v2505_v4 }
 0x801   :  { %v1042_v5 = vpop.f32.mrf.mxu0 }
 0x802   :  { %v1046_v6 = vmul.f32 0.25, %v1042_v5  ;;  %v1202_v5 = vld [vmem:[%s3207_s14 + $0x20] sm:$0xff] }
 0x804   :  { %v1048_v7 = vadd.f32 %v1046_v6, %v2989_v1  ;;  %v2485_v1 = vld [vmem:[%s3001_s16 + $0x38] sm:$0xff]  ;;  %v2504_v6 = vld [vmem:[%s3207_s14 + $0x60] sm:$0xff]  ;;  %s3497_s16 = sld [smem:[%s3566_s0 + %s2815_s13]]  }
 0x805   :  { %1123 = vmatpush.msra.mxu2 %v2485_v1  ;;  %1432 = vmatpush.msra.mxu0 %v2504_v6  ;;  %v2516_v6 = vld [vmem:[%s3168_s28 + $0x68] sm:$0xff] }
 0x806   :  { %v1052_v57 = vsel %vm309_vm8, %v1048_v7, -inf }
 0x807   :  { %1053 = vmax.xlane.f32.xlu2 %v1052_v57  ;;  %1124 = vmatpush.msra.mxu2 %v2484_v24  ;;  %v2503_v57 = vld [vmem:[%s3207_s14 + $0x58] sm:$0xff] }
 0x808   :  { %1433 = vmatpush.msra.mxu0 %v2503_v57  ;;  %v2515_v57 = vld [vmem:[%s3168_s28 + $0x60] sm:$0xff] }
 0x872   :  { %v1051_v54 = vpop.xlane.xlu1 %1050 }
 0x873   :  { %v1055_v8 = vsub.f32 %v1047_v3, %v1051_v54  ;;  %v1203_v3 = vld [vmem:[%s3207_s14 + $0x28] sm:$0xff]  ;;  %v1200_v54 = vld [vmem:[%s3207_s14 + $0x10] sm:$0xff] }
 0x875   :  { %v1057_v62 = vmul.f32 1.442695, %v1055_v8  ;;  %v2502_v8 = vld [vmem:[%s3207_s14 + $0x50] sm:$0xff] }
 0x876   :  { %1434 = vmatpush.msra.mxu0 %v2502_v8  ;;  %v2514_v8 = vld [vmem:[%s3168_s28 + $0x58] sm:$0xff] }
 0x877   :  { %2736 = vpow2.f32 %v1057_v62  ;;  %v1199_v62 = vld [vmem:[%s3207_s14 + $0x8] sm:$0xff] }
 0x87a   :  { %v1054_v55 = vpop.xlane.xlu2 %1053 }
 0x87b   :  { %v1056_v9 = vsub.f32 %v1048_v7, %v1054_v55  ;;  %v1201_v7 = vld [vmem:[%s3207_s14 + $0x18] sm:$0xff]  ;;  %v2501_v55 = vld [vmem:[%s3207_s14 + $0x48] sm:$0xff] }
 0x87c   :  { %1435 = vmatpush.msra.mxu0 %v2501_v55  ;;  %v2513_v55 = vld [vmem:[%s3168_s28 + $0x50] sm:$0xff] }
 0x87d   :  { %v2737_v11 = vpop.eup %2736  ;;  %v1059_v12 = vmul.f32 1.442695, %v1056_v9  ;;  %v1198_v9 = vld [vmem:[%s3207_s14] sm:$0xff] }
 0x87e   :  { %v1061_v60 = vsel %vm309_vm8, %v2737_v11, 0.0 }
 0x87f   :  { %2738 = vpow2.f32 %v1059_v12  ;;  %1062 = vadd.xlane.f32.xlu0 %v1061_v60 }
 0x885   :  { %v2739_v14 = vpop.eup %2738 }
 0x886   :  { %v1064_v15 = vsel %vm309_vm8, %v2739_v14, 0.0 }
 0x887   :  { %1065 = vadd.xlane.f32.xlu1 %v1064_v15 }
 0x8f2   :  { %v1063_v16 = vpop.xlane.xlu0 %1062 }
 0x8f3   :  { %2740 = vrcp.f32 %v1063_v16 }
 0x8f9   :  { %v2741_v17 = vpop.eup %2740 }
 0x8fa   :  { %v1069_v19 = vmul.f32 %v2741_v17, %v2737_v11  ;;  %v1066_v20 = vpop.xlane.xlu1 %1065  ;;  %v2500_v11 = vld [vmem:[%s3207_s14 + $0x40] sm:$0xff] }
 0x8fb   :  { %2742 = vrcp.f32 %v1066_v20  ;;  %1436 = vmatpush.msra.mxu0 %v2500_v11  ;;  %v3293_v11 = vld [vmem:[%s2317_s26 + $0x8] sm:$0xff] }
 0x8fc   :  { %2482 = vmatmul.msk.f32.vlgmr.msra.gmra.mxu1 %vm309_vm8, %v1069_v19 }
 0x901   :  { %v2743_v21 = vpop.eup %2742 }
 0x902   :  { %v1070_v23 = vmul.f32 %v2743_v21, %v2739_v14 }
 0x904   :  { %2483 = vmatmul.msk.f32.gmra.mxu1 %vm309_vm8, %v1070_v23 }
 0x979   :  { %v1094_v13 = vpop.f32.mrf.mxu1 }
 0x97a   :  { %2486 = vmatmul.msk.f32.vlgmr.msra.gmra.mxu2 %vm309_vm8, %v1094_v13 }
 0x981   :  { %v1097_v25 = vpop.f32.mrf.mxu1 }
 0x982   :  { %2487 = vmatmul.msk.f32.gmra.mxu2 %vm309_vm8, %v1097_v25 }
 0x9fd   :  { %v1126_v27 = vpop.f32.mrf.mxu2 }
 0x9fe   :  { %v1132_v28 = vadd.f32 %v1126_v27, %v897_v58  ;;  %v3210_v58 = vld [vmem:[%s2315_s10] sm:$0xff] }
 0x9ff   :  { %2490 = vmatmul.msk.f32.vlgmr.msrb.gmra.mxu0 %vm136_vm0, %v3210_v58 }
 0xa00   :  { %v1138_v29 = vadd.f32 %v2686_v26, %v1132_v28 }
 0xa02   :  { %v3151_v18 = vadd.f32 %v2788_v31, %v1138_v29  ;;  %v2688_v31 = vld [vmem:[%s3191_s1] ss:$0 sm:$0xff]  ;;  %s2812_s1 = smov 18  }
 0xa03   :  { %s3333_s4 = sld [smem:[%s3566_s0 + %s2812_s1]]  }
 0xa04   :  { %v1144_v32 = vsel %vm136_vm0, %v3151_v18, 0.0 }
 0xa05   :  { %1145 = vadd.xlane.f32.xlu2 %v1144_v32  ;;  %v1129_v33 = vpop.f32.mrf.mxu2 }
 0xa06   :  { %v1133_v34 = vadd.f32 %v1129_v33, %v898_v63  ;;  %v1204_v63 = vld [vmem:[%s3207_s14 + $0x30] sm:$0xff] }
 0xa07   :  { %1225 = vmatpush.msra.mxu3 %v1204_v63  ;;  %2491 = vmatmul.msk.f32.gmra.mxu0 %vm136_vm0, %v3217_v0  ;;  %v1280_v63 = vld [vmem:[%s3266_s22] sm:$0xff] }
 0xa08   :  { %v1139_v35 = vadd.f32 %v2686_v26, %v1133_v34  ;;  %v2687_v26 = vld [vmem:[%s3161_s24] ss:$0 sm:$0xff]  ;;  %s2334_s24 = sld [smem:[%s3566_s0 + %s2817_s21]]  }
 0xa09   :  { %1226 = vmatpush.msra.mxu3 %v1203_v3  ;;  %v2517_v3 = vld [vmem:[%s3168_s28 + $0x70] sm:$0xff] }
 0xa0a   :  { %v3156_v37 = vadd.f32 %v2789_v36, %v1139_v35 }
 0xa0b   :  { %1227 = vmatpush.msra.mxu3 %v1202_v5  ;;  %v3283_v5 = vld [vmem:[%s2317_s26] sm:$0xff] }
 0xa0c   :  { %v1147_v38 = vsel %vm136_vm0, %v3156_v37, 0.0 }
 0xa0d   :  { %1148 = vadd.xlane.f32.xlu0 %v1147_v38  ;;  %1228 = vmatpush.msra.mxu3 %v1201_v7 }
 0xa0f   :  { %1229 = vmatpush.msra.mxu3 %v1200_v54 }
 0xa11   :  { %1230 = vmatpush.msra.mxu3 %v1199_v62 }
 0xa13   :  { %1231 = vmatpush.msra.mxu3 %v1198_v9 }
 0xa78   :  { %v1146_v43 = vpop.xlane.xlu2 %1145 }
 0xa79   :  { %v1150_v44 = vmul.f32 %v1146_v43, %v2845_v10  ;;  %v2689_v43 = vld [vmem:[%s3196_s6] ss:$0 sm:$0xff] }
 0xa7b   :  { %v3176_v45 = vsub.f32 %v3151_v18, %v1150_v44 }
 0xa7c   :  { %v1274_v42 = vpop.f32.mrf.mxu0 }
 0xa7d   :  { %v1154_v46 = vmul.f32 %v3176_v45, %v3176_v45 }
 0xa7f   :  { %v1156_v47 = vsel %vm136_vm0, %v1154_v46, 0.0  ;;  %v1275_v46 = vadd.f32 %v2689_v43, %v1274_v42 }
 0xa80   :  { %1157 = vadd.xlane.f32.xlu1 %v1156_v47  ;;  %v1149_v48 = vpop.xlane.xlu0 %1148  ;;  %v2691_v47 = vld [vmem:[%s3231_s18] ss:$0 sm:$0xff] }
 0xa81   :  { %v1151_v49 = vmul.f32 %v1149_v48, %v2845_v10 }
 0xa83   :  { %v3183_v50 = vsub.f32 %v3156_v37, %v1151_v49 }
 0xa84   :  { %v1277_v44 = vpop.f32.mrf.mxu0 }
 0xa85   :  { %v1155_v51 = vmul.f32 %v3183_v50, %v3183_v50 }
 0xa87   :  { %v1159_v52 = vsel %vm136_vm0, %v1155_v51, 0.0 }
 0xa88   :  { %1160 = vadd.xlane.f32.xlu2 %v1159_v52  ;;  %v1287_v52 = vld [vmem:[%s3266_s22 + $0x38] sm:$0xff] }
 0xa89   :  { %1300 = vmatpush.msrb.mxu1 %v1287_v52  ;;  %v2547_v52 = vld [vmem:[%s3207_s14 + $0x90] sm:$0xff] }
 0xa8b   :  { %1301 = vmatpush.msrb.mxu1 %v1286_v22  ;;  %v2529_v22 = vld [vmem:[%s3266_s22 + $0x78] sm:$0xff] }
 0xa8d   :  { %1302 = vmatpush.msrb.mxu1 %v1285_v30  ;;  %v2528_v30 = vld [vmem:[%s3266_s22 + $0x70] sm:$0xff] }
 0xa8f   :  { %1303 = vmatpush.msrb.mxu1 %v1284_v53 }
 0xa91   :  { %1304 = vmatpush.msrb.mxu1 %v1283_v56  ;;  %v2690_v56 = vld [vmem:[%s3231_s18 + $0x1] ss:$0 sm:$0xff] }
 0xa93   :  { %1305 = vmatpush.msrb.mxu1 %v1282_v59  ;;  %v2546_v59 = vld [vmem:[%s3207_s14 + $0x88] sm:$0xff] }
 0xa95   :  { %1306 = vmatpush.msrb.mxu1 %v1281_v61  ;;  %v2527_v61 = vld [vmem:[%s3266_s22 + $0x68] sm:$0xff] }
 0xa97   :  { %1307 = vmatpush.msrb.mxu1 %v1280_v63  ;;  %v2545_v63 = vld [vmem:[%s3207_s14 + $0x80] sm:$0xff] }
 0xa98   :  { %2492 = vmatmul.msk.f32.vlgmr.msrb.gmra.mxu1 %vm136_vm0, %v3210_v58 }
 0xa99   :  { %1466 = vmatpush.msra.mxu1 %v2518_v2  ;;  %v2526_v2 = vld [vmem:[%s3266_s22 + $0x60] sm:$0xff] }
 0xa9b   :  { %1467 = vmatpush.msra.mxu1 %v2517_v3 }
 0xa9d   :  { %1468 = vmatpush.msra.mxu1 %v2516_v6  ;;  %v2524_v6 = vld [vmem:[%s3266_s22 + $0x50] sm:$0xff] }
 0xa9f   :  { %1469 = vmatpush.msra.mxu1 %v2515_v57 }
 0xaa0   :  { %2493 = vmatmul.msk.f32.gmra.mxu1 %vm136_vm0, %v3217_v0 }
 0xaa1   :  { %1470 = vmatpush.msra.mxu1 %v2514_v8 }
 0xaa3   :  { %1471 = vmatpush.msra.mxu1 %v2513_v55  ;;  %v1405_v55 = vld [vmem:[%s3333_s4] sm:$0xff] }
 0xaf3   :  { %v1158_v12 = vpop.xlane.xlu1 %1157 }
 0xaf4   :  { %v1162_v60 = vmul.f32 %v1158_v12, %v2845_v10  ;;  %v2512_v12 = vld [vmem:[%s3168_s28 + $0x48] sm:$0xff] }
 0xaf5   :  { %1472 = vmatpush.msra.mxu1 %v2512_v12 }
 0xaf6   :  { %v1164_v14 = vadd.f32 1e-05, %v1162_v60 }
 0xaf8   :  { %2744 = vrsqrt.f32 %v1164_v14  ;;  %vm1172_vm10 = vweird.f32 %v1164_v14 }
 0xafb   :  { %v1161_v15 = vpop.xlane.xlu2 %1160 }
 0xafc   :  { %v1163_v1 = vmul.f32 %v1161_v15, %v2845_v10 }
 0xafe   :  { %v2745_v16 = vpop.eup %2744  ;;  %v1165_v17 = vadd.f32 1e-05, %v1163_v1 }
 0xaff   :  { %v1167_v19 = vmul.f32 %v2745_v16, %v1164_v14  ;;  %vm1173_vm9 = vweird.f32 %v2745_v16  ;;  %v2511_v14 = vld [vmem:[%s3168_s28 + $0x40] sm:$0xff] }
 0xb00   :  { %2746 = vrsqrt.f32 %v1165_v17  ;;  %vm1174_vm11 = vmor %vm1172_vm10, %vm1173_vm9  ;;  %vm1182_vm13 = vweird.f32 %v1165_v17  ;;  %1473 = vmatpush.msra.mxu1 %v2511_v14 }
 0xb01   :  { %v1168_v20 = vmul.f32 %v2745_v16, %v1167_v19  ;;  %2520 = vmatmul.msk.f32.vlgmr.msra.gmra.mxu1 %vm136_vm0, %v3210_v58 }
 0xb03   :  { %v1169_v21 = vmul.f32 0.5, %v1168_v20 }
 0xb05   :  { %v1170_v23 = vsub.f32 1.5, %v1169_v21  ;;  %v2692_v21 = vld [vmem:[%s3304_s30] ss:$0 sm:$0xff] }
 0xb06   :  { %v2747_v24 = vpop.eup %2746 }
 0xb07   :  { %v1171_v13 = vmul.f32 %v2745_v16, %v1170_v23  ;;  %v1177_v25 = vmul.f32 %v2747_v24, %v1165_v17  ;;  %vm1183_vm12 = vweird.f32 %v2747_v24 }
 0xb08   :  { %vm1184_vm14 = vmor %vm1182_vm13, %vm1183_vm12 }
 0xb09   :  { %v1175_v27 = vsel %vm1174_vm11, %v2745_v16, %v1171_v13  ;;  %v1178_v28 = vmul.f32 %v2747_v24, %v1177_v25  ;;  %2521 = vmatmul.msk.f32.gmra.mxu1 %vm136_vm0, %v3217_v0 }
 0xb0a   :  { %v1186_v29 = vmul.f32 %v1175_v27, %v3176_v45  ;;  %v1278_v45 = vadd.f32 %v2689_v43, %v1277_v44 }
 0xb0b   :  { %v1179_v32 = vmul.f32 0.5, %v1178_v28 }
 0xb0c   :  { %v1191_v33 = vmul.f32 %v2687_v26, %v1186_v29  ;;  %2494 = vmatpush.xpose.msk.msrb.mxu2 %vm309_vm8, %v1278_v45  ;;  %v2552_v45 = vld [vmem:[%s3207_s14 + $0xb8] sm:$0xff] }
 0xb0d   :  { %v1180_v34 = vsub.f32 1.5, %v1179_v32 }
 0xb0e   :  { %v3244_v35 = vadd.f32 %v2688_v31, %v1191_v33 }
 0xb0f   :  { %v1181_v36 = vmul.f32 %v2747_v24, %v1180_v34  ;;  %v2693_v34 = vld [vmem:[%s3196_s6 + $0x1] ss:$0 sm:$0xff] }
 0xb10   :  { %2488 = vmatmul.msk.f32.vlgmr.msra.gmra.mxu3 %vm136_vm0, %v3244_v35  ;;  %2509 = vmatmul.msk.f32.vlgmr.msra.gmra.mxu0 %vm136_vm0, %v3244_v35 }
 0xb11   :  { %v1185_v38 = vsel %vm1184_vm14, %v2747_v24, %v1181_v36  ;;  %2495 = vmatpush.xpose.msk.msrb.mxu2 %vm309_vm8, %v1275_v46  ;;  %v2551_v46 = vld [vmem:[%s3207_s14 + $0xb0] sm:$0xff] }
 0xb12   :  { %v1187_v39 = vmul.f32 %v1185_v38, %v3183_v50 }
 0xb14   :  { %v1192_v40 = vmul.f32 %v2687_v26, %v1187_v39 }
 0xb15   :  { %v1309_v19 = vpop.f32.mrf.mxu1  ;;  %1503 = vmatpush.msra.mxu2 %v2529_v22 }
 0xb16   :  { %v3251_v41 = vadd.f32 %v2688_v31, %v1192_v40  ;;  %v1310_v27 = vadd.f32 %v2692_v21, %v1309_v19 }
 0xb17   :  { %1504 = vmatpush.msra.mxu2 %v2528_v30 }
 0xb18   :  { %2489 = vmatmul.msk.f32.gmra.mxu3 %vm136_vm0, %v3251_v41  ;;  %2510 = vmatmul.msk.f32.gmra.mxu0 %vm136_vm0, %v3251_v41 }
 0xb19   :  { %1505 = vmatpush.msra.mxu2 %v2527_v61  ;;  %v2572_v61 = vld [vmem:[%s3266_s22 + $0xa8] sm:$0xff] }
 0xb1b   :  { %1506 = vmatpush.msra.mxu2 %v2526_v2  ;;  %v2570_v2 = vld [vmem:[%s3266_s22 + $0x98] sm:$0xff] }
 0xb1d   :  { %v1312_v13 = vpop.f32.mrf.mxu1 }
 0xb1e   :  { %v1313_v28 = vadd.f32 %v2692_v21, %v1312_v13 }
 0xb20   :  { %1396 = vmatpush.msrb.mxu3 %v1313_v28 }
 0xb22   :  { %1397 = vmatpush.msrb.mxu3 %v1310_v27 }
 0xb7e   :  { %v1475_v33 = vpop.f32.mrf.mxu1 }
 0xb7f   :  { %v1476_v39 = vadd.f32 %v2693_v34, %v1475_v33 }
 0xb86   :  { %v1478_v36 = vpop.f32.mrf.mxu1 }
 0xb87   :  { %v1479_v38 = vadd.f32 %v2693_v34, %v1478_v36 }
 0xb89   :  { %2533 = vmatpush.xpose.msk.msra.mxu3 %vm309_vm8, %v1479_v38 }
 0xb8d   :  { %2534 = vmatpush.xpose.msk.msra.mxu3 %vm309_vm8, %v1476_v39  ;;  %v1438_v53 = vpop.f32.mrf.mxu0  ;;  %v2563_v39 = vld [vmem:[%s3168_s28 + $0xb8] sm:$0xff] }
 0xb8e   :  { %v1439_v3 = vadd.f32 %v2690_v56, %v1438_v53  ;;  %v2539_v53 = vld [vmem:[%s3333_s4 + $0x10] sm:$0xff] }
 0xb93   :  { %v1233_v48 = vpop.f32.mrf.mxu3 }
 0xb94   :  { %v1234_v49 = vadd.f32 %v2691_v47, %v1233_v48  ;;  %v2549_v48 = vld [vmem:[%s3207_s14 + $0xa0] sm:$0xff] }
 0xb95   :  { %v1441_v57 = vpop.f32.mrf.mxu0 }
 0xb96   :  { %2496 = vmatmul.msk.f32.vlgmr.msrb.gmra.mxu2 %vm309_vm8, %v1234_v49  ;;  %v1442_v8 = vadd.f32 %v2690_v56, %v1441_v57  ;;  %v2574_v56 = vld [vmem:[%s3266_s22 + $0xb8] sm:$0xff] }
 0xb9b   :  { %v1236_v50 = vpop.f32.mrf.mxu3 }
 0xb9c   :  { %v1237_v51 = vadd.f32 %v2691_v47, %v1236_v50  ;;  %v2550_v47 = vld [vmem:[%s3207_s14 + $0xa8] sm:$0xff] }
 0xb9e   :  { %2497 = vmatmul.msk.f32.gmra.mxu2 %vm309_vm8, %v1237_v51  ;;  %v2548_v51 = vld [vmem:[%s3207_s14 + $0x98] sm:$0xff] }
 0xc19   :  { %v1344_v4 = vpop.f32.mrf.mxu2 }
 0xc1a   :  { %v1350_v7 = vmul.f32 0.25, %v1344_v4  ;;  %v2525_v4 = vld [vmem:[%s3266_s22 + $0x58] sm:$0xff] }
 0xc1b   :  { %1507 = vmatpush.msra.mxu2 %v2525_v4  ;;  %v2568_v4 = vld [vmem:[%s3266_s22 + $0x88] sm:$0xff] }
 0xc1c   :  { %v1352_v54 = vadd.f32 %v1350_v7, %v3283_v5  ;;  %v2523_v7 = vld [vmem:[%s3266_s22 + $0x48] sm:$0xff] }
 0xc1d   :  { %1508 = vmatpush.msra.mxu2 %v2524_v6  ;;  %v2567_v6 = vld [vmem:[%s3266_s22 + $0x80] sm:$0xff] }
 0xc1e   :  { %v1354_v62 = vsel %vm309_vm8, %v1352_v54, -inf }
 0xc1f   :  { %1355 = vmax.xlane.f32.xlu0 %v1354_v62  ;;  %1509 = vmatpush.msra.mxu2 %v2523_v7  ;;  %v1406_v62 = vld [vmem:[%s3333_s4 + $0x8] sm:$0xff]  ;;  %v2595_v7 = vld [vmem:[%s3207_s14 + $0xf8] sm:$0xff] }
 0xc21   :  { %v1347_v9 = vpop.f32.mrf.mxu2 }
 0xc22   :  { %v1351_v60 = vmul.f32 0.25, %v1347_v9 }
 0xc24   :  { %v1353_v15 = vadd.f32 %v1351_v60, %v3293_v11 }
 0xc26   :  { %v1357_v1 = vsel %vm309_vm8, %v1353_v15, -inf }
 0xc27   :  { %1358 = vmax.xlane.f32.xlu1 %v1357_v1 }
 0xc92   :  { %v1356_v16 = vpop.xlane.xlu0 %1355 }
 0xc93   :  { %v1360_v17 = vsub.f32 %v1352_v54, %v1356_v16  ;;  %v2522_v54 = vld [vmem:[%s3266_s22 + $0x40] sm:$0xff] }
 0xc94   :  { %1510 = vmatpush.msra.mxu2 %v2522_v54  ;;  %v2594_v54 = vld [vmem:[%s3207_s14 + $0xf0] sm:$0xff] }
 0xc95   :  { %v1362_v20 = vmul.f32 1.442695, %v1360_v17  ;;  %2531 = vmatmul.msk.f32.vlgmr.msra.gmra.mxu2 %vm136_vm0, %v3210_v58 }
 0xc96   :  { %1660 = vmatpush.msrb.mxu2 %v1406_v62  ;;  %v2592_v62 = vld [vmem:[%s3207_s14 + $0xe0] sm:$0xff] }
 0xc97   :  { %2748 = vpow2.f32 %v1362_v20 }
 0xc98   :  { %1661 = vmatpush.msrb.mxu2 %v1405_v55  ;;  %v2591_v55 = vld [vmem:[%s3207_s14 + $0xd8] sm:$0xff] }
 0xc9a   :  { %v1359_v23 = vpop.xlane.xlu1 %1358 }
 0xc9b   :  { %v1361_v24 = vsub.f32 %v1353_v15, %v1359_v23  ;;  %v2695_v23 = vld [vmem:[%s3304_s30 + $0x1] ss:$0 sm:$0xff] }
 0xc9d   :  { %v2749_v25 = vpop.eup %2748  ;;  %v1364_v26 = vmul.f32 1.442695, %v1361_v24  ;;  %2532 = vmatmul.msk.f32.gmra.mxu2 %vm136_vm0, %v3217_v0 }
 0xc9e   :  { %v1366_v29 = vsel %vm309_vm8, %v2749_v25, 0.0 }
 0xc9f   :  { %2750 = vpow2.f32 %v1364_v26  ;;  %1367 = vadd.xlane.f32.xlu2 %v1366_v29 }
 0xca5   :  { %v2751_v31 = vpop.eup %2750 }
 0xca6   :  { %v1369_v32 = vsel %vm309_vm8, %v2751_v31, 0.0 }
 0xca7   :  { %1370 = vadd.xlane.f32.xlu0 %v1369_v32 }
 0xd12   :  { %v1368_v40 = vpop.xlane.xlu2 %1367 }
 0xd13   :  { %2752 = vrcp.f32 %v1368_v40  ;;  %v2562_v40 = vld [vmem:[%s3168_s28 + $0xb0] sm:$0xff] }
 0xd18   :  { %v1512_v17 = vpop.f32.mrf.mxu2 }
 0xd19   :  { %v2753_v42 = vpop.eup %2752  ;;  %v1513_v13 = vadd.f32 %v2695_v23, %v1512_v17 }
 0xd1a   :  { %v1374_v43 = vmul.f32 %v2753_v42, %v2749_v25  ;;  %v1371_v44 = vpop.xlane.xlu0 %1370  ;;  %v2561_v42 = vld [vmem:[%s3168_s28 + $0xa8] sm:$0xff] }
 0xd1b   :  { %2754 = vrcp.f32 %v1371_v44  ;;  %v2559_v44 = vld [vmem:[%s3168_s28 + $0x98] sm:$0xff] }
 0xd1c   :  { %2498 = vmatmul.msk.f32.vlgmr.msrb.gmra.mxu3 %vm309_vm8, %v1374_v43  ;;  %v2560_v43 = vld [vmem:[%s3168_s28 + $0xa0] sm:$0xff] }
 0xd1d   :  { %1691 = vmatpush.msrb.mxu3 %v2552_v45  ;;  %v2558_v45 = vld [vmem:[%s3168_s28 + $0x90] sm:$0xff] }
 0xd1f   :  { %1692 = vmatpush.msrb.mxu3 %v2551_v46  ;;  %v2557_v46 = vld [vmem:[%s3168_s28 + $0x88] sm:$0xff] }
 0xd20   :  { %v1515_v24 = vpop.f32.mrf.mxu2 }
 0xd21   :  { %v2755_v49 = vpop.eup %2754  ;;  %1693 = vmatpush.msrb.mxu3 %v2550_v47  ;;  %v1516_v25 = vadd.f32 %v2695_v23, %v1515_v24  ;;  %v2556_v47 = vld [vmem:[%s3168_s28 + $0x80] sm:$0xff] }
 0xd22   :  { %v1375_v50 = vmul.f32 %v2755_v49, %v2751_v31  ;;  %v2540_v49 = vld [vmem:[%s3333_s4 + $0x18] sm:$0xff] }
 0xd23   :  { %1694 = vmatpush.msrb.mxu3 %v2549_v48  ;;  %1599 = vmatpush.msrb.mxu0 %v1516_v25 }
 0xd24   :  { %2499 = vmatmul.msk.f32.gmra.mxu3 %vm309_vm8, %v1375_v50  ;;  %1631 = vmatpush.msrb.mxu1 %v2540_v49  ;;  %v2602_v49 = vld [vmem:[%s3168_s28 + $0xd8] sm:$0xff] }
 0xd25   :  { %1695 = vmatpush.msrb.mxu3 %v2548_v51  ;;  %1600 = vmatpush.msrb.mxu0 %v1513_v13 }
 0xd26   :  { %1632 = vmatpush.msrb.mxu1 %v2539_v53 }
 0xd27   :  { %1696 = vmatpush.msrb.mxu3 %v2547_v52  ;;  %1728 = vmatpush.msra.mxu0 %v2563_v39 }
 0xd28   :  { %1765 = vmatpush.msra.mxu1 %v2574_v56 }
 0xd29   :  { %1697 = vmatpush.msrb.mxu3 %v2546_v59  ;;  %1729 = vmatpush.msra.mxu0 %v2562_v40  ;;  %v2573_v59 = vld [vmem:[%s3266_s22 + $0xb0] sm:$0xff] }
 0xd2a   :  { %1766 = vmatpush.msra.mxu1 %v2573_v59 }
 0xd2b   :  { %1698 = vmatpush.msrb.mxu3 %v2545_v63  ;;  %1730 = vmatpush.msra.mxu0 %v2561_v42  ;;  %v2571_v63 = vld [vmem:[%s3266_s22 + $0xa0] sm:$0xff] }
 0xd2c   :  { %2535 = vmatmul.msk.f32.vlgmr.msra.gmra.mxu3 %vm309_vm8, %v1439_v3  ;;  %1767 = vmatpush.msra.mxu1 %v2572_v61  ;;  %v2569_v3 = vld [vmem:[%s3266_s22 + $0x90] sm:$0xff] }
 0xd2d   :  { %1731 = vmatpush.msra.mxu0 %v2560_v43 }
 0xd2e   :  { %1768 = vmatpush.msra.mxu1 %v2571_v63 }
 0xd2f   :  { %1732 = vmatpush.msra.mxu0 %v2559_v44 }
 0xd30   :  { %1769 = vmatpush.msra.mxu1 %v2570_v2 }
 0xd31   :  { %1733 = vmatpush.msra.mxu0 %v2558_v45  ;;  %v2606_v45 = vld [vmem:[%s3168_s28 + $0xf8] sm:$0xff] }
 0xd32   :  { %1770 = vmatpush.msra.mxu1 %v2569_v3 }
 0xd33   :  { %1734 = vmatpush.msra.mxu0 %v2557_v46  ;;  %v2605_v46 = vld [vmem:[%s3168_s28 + $0xf0] sm:$0xff] }
 0xd34   :  { %2536 = vmatmul.msk.f32.gmra.mxu3 %vm309_vm8, %v1442_v8  ;;  %1771 = vmatpush.msra.mxu1 %v2568_v4  ;;  %v2593_v8 = vld [vmem:[%s3207_s14 + $0xe8] sm:$0xff] }
 0xd35   :  { %1735 = vmatpush.msra.mxu0 %v2556_v47  ;;  %v2604_v47 = vld [vmem:[%s3168_s28 + $0xe8] sm:$0xff] }
 0xd36   :  { %1772 = vmatpush.msra.mxu1 %v2567_v6  ;;  %v2585_v6 = vld [vmem:[%s3333_s4 + $0x28] sm:$0xff] }
 0xd3c   :  { %2554 = vmatmul.msk.f32.vlgmr.msrb.gmra.mxu3 %vm136_vm0, %v3244_v35 }
 0xd44   :  { %2555 = vmatmul.msk.f32.gmra.mxu3 %vm136_vm0, %v3251_v41 }
 0xd9f   :  { %v1399_v9 = vpop.f32.mrf.mxu3 }
 0xda0   :  { %2543 = vmatmul.msk.f32.vlgmr.msrb.gmra.mxu2 %vm309_vm8, %v1399_v9 }
 0xda7   :  { %v1402_v12 = vpop.f32.mrf.mxu3 }
 0xda8   :  { %2544 = vmatmul.msk.f32.gmra.mxu2 %vm309_vm8, %v1402_v12  ;;  %v2590_v12 = vld [vmem:[%s3207_s14 + $0xd0] sm:$0xff] }
 0xdaf   :  { %v1547_v60 = vpop.f32.mrf.mxu3 }
 0xdb0   :  { %v1553_v14 = vmul.f32 0.25, %v1547_v60  ;;  %v2589_v60 = vld [vmem:[%s3207_s14 + $0xc8] sm:$0xff] }
 0xdb2   :  { %v1555_v15 = vadd.f32 %v1553_v14, %v3283_v5  ;;  %v2588_v14 = vld [vmem:[%s3207_s14 + $0xc0] sm:$0xff] }
 0xdb4   :  { %v1557_v1 = vsel %vm309_vm8, %v1555_v15, -inf }
 0xdb5   :  { %1558 = vmax.xlane.f32.xlu1 %v1557_v1  ;;  %v2696_v1 = vld [vmem:[%s3196_s6 + $0x2] ss:$0 sm:$0xff] }
 0xdb7   :  { %v1550_v16 = vpop.f32.mrf.mxu3 }
 0xdb8   :  { %v1554_v19 = vmul.f32 0.25, %v1550_v16 }
 0xdba   :  { %v1556_v20 = vadd.f32 %v1554_v19, %v3293_v11 }
 0xdbc   :  { %v1560_v21 = vsel %vm309_vm8, %v1556_v20, -inf }
 0xdbd   :  { %1561 = vmax.xlane.f32.xlu2 %v1560_v21 }
 0xdbf   :  { %v1700_v19 = vpop.f32.mrf.mxu3 }
 0xdc7   :  { %v1703_v24 = vpop.f32.mrf.mxu3 }
 0xe23   :  { %v3407_v25 = vpop.f32.mrf.mxu2 }
 0xe28   :  { %v1559_v26 = vpop.xlane.xlu1 %1558 }
 0xe29   :  { %v1563_v27 = vsub.f32 %v1555_v15, %v1559_v26 }
 0xe2b   :  { %v1565_v28 = vmul.f32 1.442695, %v1563_v27  ;;  %v1666_v27 = vpop.f32.mrf.mxu2 }
 0xe2d   :  { %2756 = vpow2.f32 %v1565_v28 }
 0xe30   :  { %v1562_v29 = vpop.xlane.xlu2 %1561 }
 0xe31   :  { %v1564_v31 = vsub.f32 %v1556_v20, %v1562_v29  ;;  %v2694_v20 = vld [vmem:[%s3231_s18 + $0x2] ss:$0 sm:$0xff] }
 0xe32   :  { %v1701_v23 = vadd.f32 %v2694_v20, %v1700_v19  ;;  %v1704_v13 = vadd.f32 %v2694_v20, %v1703_v24  ;;  %v2698_v20 = vld [vmem:[%s3231_s18 + $0x3] ss:$0 sm:$0xff] }
 0xe33   :  { %v2757_v32 = vpop.eup %2756  ;;  %v1567_v33 = vmul.f32 1.442695, %v1564_v31 }
 0xe34   :  { %v1569_v34 = vsel %vm309_vm8, %v2757_v32, 0.0 }
 0xe35   :  { %2758 = vpow2.f32 %v1567_v33  ;;  %1570 = vadd.xlane.f32.xlu0 %v1569_v34 }
 0xe3b   :  { %v2759_v36 = vpop.eup %2758 }
 0xe3c   :  { %v1572_v38 = vsel %vm309_vm8, %v2759_v36, 0.0 }
 0xe3d   :  { %1573 = vadd.xlane.f32.xlu1 %v1572_v38 }
 0xea8   :  { %v1571_v48 = vpop.xlane.xlu0 %1570 }
 0xea9   :  { %2760 = vrcp.f32 %v1571_v48  ;;  %v2603_v48 = vld [vmem:[%s3168_s28 + $0xe0] sm:$0xff] }
 0xeaf   :  { %v2761_v50 = vpop.eup %2760 }
 0xeb0   :  { %v1577_v51 = vmul.f32 %v2761_v50, %v2757_v32  ;;  %v1574_v52 = vpop.xlane.xlu1 %1573  ;;  %v2697_v32 = vld [vmem:[%s3304_s30 + $0x2] ss:$0 sm:$0xff]  ;;  %v2601_v50 = vld [vmem:[%s3168_s28 + $0xd0] sm:$0xff] }
 0xeb1   :  { %2762 = vrcp.f32 %v1574_v52 }
 0xeb2   :  { %2537 = vmatmul.msk.f32.vlgmr.msrb.gmra.mxu0 %vm309_vm8, %v1577_v51  ;;  %v2600_v51 = vld [vmem:[%s3168_s28 + $0xc8] sm:$0xff] }
 0xeb3   :  { %1893 = vmatpush.msrb.mxu0 %v2585_v6 }
 0xeb7   :  { %v2763_v22 = vpop.eup %2762 }
 0xeb8   :  { %v1578_v30 = vmul.f32 %v2763_v22, %v2759_v36 }
 0xeba   :  { %2538 = vmatmul.msk.f32.gmra.mxu0 %vm309_vm8, %v1578_v30  ;;  %v2599_v30 = vld [vmem:[%s3168_s28 + $0xc0] sm:$0xff]  ;;  %s2813_s28 = smov 19  }
 0xebb   :  { %s2333_s8 = sld [smem:[%s3566_s0 + %s2813_s28]]  }
 0xec2   :  { %2565 = vmatmul.msk.f32.vlgmr.msra.gmra.mxu0 %vm136_vm0, %v3210_v58 }
 0xeca   :  { %2566 = vmatmul.msk.f32.gmra.mxu0 %vm136_vm0, %v3217_v0 }
 0xf2f   :  { %v1602_v57 = vpop.f32.mrf.mxu0 }
 0xf30   :  { %2541 = vmatmul.msk.f32.vlgmr.msrb.gmra.mxu1 %vm309_vm8, %v1602_v57 }
 0xf31   :  { %1926 = vmatpush.msrb.mxu1 %v2595_v7  ;;  %v2584_v7 = vld [vmem:[%s3333_s4 + $0x20] sm:$0xff] }
 0xf32   :  { %1894 = vmatpush.msrb.mxu0 %v2584_v7 }
 0xf33   :  { %1927 = vmatpush.msrb.mxu1 %v2594_v54 }
 0xf35   :  { %1928 = vmatpush.msrb.mxu1 %v2593_v8 }
 0xf37   :  { %v1605_v9 = vpop.f32.mrf.mxu0  ;;  %1929 = vmatpush.msrb.mxu1 %v2592_v62 }
 0xf38   :  { %2542 = vmatmul.msk.f32.gmra.mxu1 %vm309_vm8, %v1605_v9  ;;  %v2699_v9 = vld [vmem:[%s3196_s6 + $0x3] ss:$0 sm:$0xff]  ;;  %s2344_s6 = sld [smem:[%s3566_s0 + %s2820_s3]]  }
 0xf39   :  { %1930 = vmatpush.msrb.mxu1 %v2591_v55 }
 0xf3b   :  { %1931 = vmatpush.msrb.mxu1 %v2590_v12 }
 0xf3d   :  { %1932 = vmatpush.msrb.mxu1 %v2589_v60 }
 0xf3f   :  { %v1737_v15 = vpop.f32.mrf.mxu0  ;;  %1933 = vmatpush.msrb.mxu1 %v2588_v14 }
 0xf40   :  { %2576 = vmatmul.msk.f32.vlgmr.msra.gmra.mxu1 %vm136_vm0, %v3210_v58  ;;  %v1738_v21 = vadd.f32 %v2696_v1, %v1737_v15 }
 0xf47   :  { %v1740_v16 = vpop.f32.mrf.mxu0 }
 0xf48   :  { %v1741_v17 = vadd.f32 %v2696_v1, %v1740_v16  ;;  %2577 = vmatmul.msk.f32.gmra.mxu1 %vm136_vm0, %v3217_v0 }
 0xf4a   :  { %2578 = vmatpush.xpose.msk.msra.mxu2 %vm309_vm8, %v1741_v17 }
 0xf4e   :  { %2579 = vmatpush.xpose.msk.msra.mxu2 %vm309_vm8, %v1738_v21 }
 0xf50   :  { %2597 = vmatmul.msk.f32.vlgmr.msrb.gmra.mxu1 %vm136_vm0, %v3244_v35 }
 0xf51   :  { %2580 = vmatmul.msk.f32.vlgmr.msra.gmra.mxu2 %vm309_vm8, %v1701_v23 }
 0xf52   :  { %1963 = vmatpush.msrb.mxu2 %v2606_v45 }
 0xf54   :  { %1964 = vmatpush.msrb.mxu2 %v2605_v46 }
 0xf56   :  { %1965 = vmatpush.msrb.mxu2 %v2604_v47 }
 0xf58   :  { %2598 = vmatmul.msk.f32.gmra.mxu1 %vm136_vm0, %v3251_v41  ;;  %1966 = vmatpush.msrb.mxu2 %v2603_v48 }
 0xf59   :  { %2581 = vmatmul.msk.f32.gmra.mxu2 %vm309_vm8, %v1704_v13  ;;  %v2617_v13 = vld [vmem:[%s3266_s22 + $0xf8] sm:$0xff] }
 0xf5a   :  { %1967 = vmatpush.msrb.mxu2 %v2602_v49 }
 0xf5c   :  { %1968 = vmatpush.msrb.mxu2 %v2601_v50 }
 0xf5e   :  { %1969 = vmatpush.msrb.mxu2 %v2600_v51 }
 0xf60   :  { %1970 = vmatpush.msrb.mxu2 %v2599_v30 }
 0xf61   :  { %2608 = vmatmul.msk.f32.vlgmr.msrb.gmra.mxu2 %vm136_vm0, %v3210_v58 }
 0xf69   :  { %2609 = vmatmul.msk.f32.gmra.mxu2 %vm136_vm0, %v3217_v0 }
 0xfad   :  { %v3409_v26 = vpop.f32.mrf.mxu1 }
 0xfb5   :  { %v1637_v28 = vpop.f32.mrf.mxu1 }
 0xfb6   :  { %v3411_v29 = vadd.f32 %v1666_v27, %v1637_v28  ;;  %v2616_v27 = vld [vmem:[%s3266_s22 + $0xf0] sm:$0xff]  ;;  %v1664_v28 = vadd.f32 %v3407_v25, %v3409_v26  ;;  %v2610_v25 = vld [vmem:[%s3266_s22 + $0xc0] sm:$0xff] }
 0xfbd   :  { %v1774_v31 = vpop.f32.mrf.mxu1 }
 0xfbe   :  { %v1775_v33 = vadd.f32 %v2697_v32, %v1774_v31 }
 0xfc5   :  { %v1777_v35 = vpop.f32.mrf.mxu1 }
 0xfc6   :  { %v1778_v34 = vadd.f32 %v2697_v32, %v1777_v35  ;;  %v2615_v32 = vld [vmem:[%s3266_s22 + $0xe8] sm:$0xff] }
 0xfc8   :  { %1861 = vmatpush.msra.mxu3 %v1778_v34  ;;  %v2613_v34 = vld [vmem:[%s3266_s22 + $0xd8] sm:$0xff] }
 0xfca   :  { %1862 = vmatpush.msra.mxu3 %v1775_v33  ;;  %v2614_v33 = vld [vmem:[%s3266_s22 + $0xe0] sm:$0xff] }
 0xfcc   :  { %2000 = vmatpush.msrb.mxu3 %v2617_v13 }
 0xfcd   :  { %v1935_v19 = vpop.f32.mrf.mxu1 }
 0xfce   :  { %v1936_v21 = vadd.f32 %v2698_v20, %v1935_v19  ;;  %2001 = vmatpush.msrb.mxu3 %v2616_v27 }
 0xfd0   :  { %2002 = vmatpush.msrb.mxu3 %v2615_v32  ;;  %v2210_v32 = vld [vmem:[%s2334_s24 + $0x38] sm:$0xff] }
 0xfd2   :  { %2003 = vmatpush.msrb.mxu3 %v2614_v33  ;;  %v2208_v33 = vld [vmem:[%s2334_s24 + $0x28] sm:$0xff] }
 0xfd4   :  { %v1809_v41 = vpop.f32.mrf.mxu2  ;;  %2004 = vmatpush.msrb.mxu3 %v2613_v34  ;;  %v2207_v34 = vld [vmem:[%s2334_s24 + $0x20] sm:$0xff] }
 0xfd5   :  { %v1815_v36 = vmul.f32 0.25, %v1809_v41  ;;  %v1938_v23 = vpop.f32.mrf.mxu1  ;;  %v2612_v41 = vld [vmem:[%s3266_s22 + $0xd0] sm:$0xff] }
 0xfd6   :  { %v1939_v24 = vadd.f32 %v2698_v20, %v1938_v23  ;;  %2005 = vmatpush.msrb.mxu3 %v2612_v41  ;;  %v2206_v41 = vld [vmem:[%s2334_s24 + $0x18] sm:$0xff] }
 0xfd7   :  { %v1817_v38 = vadd.f32 %v1815_v36, %v3283_v5 }
 0xfd9   :  { %v1819_v39 = vsel %vm309_vm8, %v1817_v38, -inf }
 0xfda   :  { %1820 = vmax.xlane.f32.xlu2 %v1819_v39 }
 0xfdc   :  { %v1812_v40 = vpop.f32.mrf.mxu2 }
 0xfdd   :  { %v1816_v42 = vmul.f32 0.25, %v1812_v40 }
 0xfdf   :  { %v1818_v43 = vadd.f32 %v1816_v42, %v3293_v11 }
 0xfe1   :  { %v1822_v44 = vsel %vm309_vm8, %v1818_v43, -inf }
 0xfe2   :  { %1823 = vmax.xlane.f32.xlu0 %v1822_v44 }
 0xfe4   :  { %v1972_v55 = vpop.f32.mrf.mxu2 }
 0xfe5   :  { %v1973_v1 = vadd.f32 %v2699_v9, %v1972_v55 }
 0xfec   :  { %v1975_v14 = vpop.f32.mrf.mxu2 }
 0xfed   :  { %v1976_v15 = vadd.f32 %v2699_v9, %v1975_v14 }
 0xfef   :  { %2621 = vmatpush.xpose.msk.msra.mxu0 %vm309_vm8, %v1976_v15 }
 0xff3   :  { %2622 = vmatpush.xpose.msk.msra.mxu0 %vm309_vm8, %v1973_v1 }
0x104d   :  { %v1821_v52 = vpop.xlane.xlu2 %1820 }
0x104e   :  { %v1825_v22 = vsub.f32 %v1817_v38, %v1821_v52  ;;  %v2611_v38 = vld [vmem:[%s3266_s22 + $0xc8] sm:$0xff] }
0x104f   :  { %2006 = vmatpush.msrb.mxu3 %v2611_v38  ;;  %v2204_v38 = vld [vmem:[%s2334_s24 + $0x8] sm:$0xff] }
0x1050   :  { %v1827_v53 = vmul.f32 1.442695, %v1825_v22  ;;  %v2700_v22 = vld [vmem:[%s3304_s30 + $0x3] ss:$0 sm:$0xff] }
0x1051   :  { %2007 = vmatpush.msrb.mxu3 %v2610_v25 }
0x1052   :  { %2764 = vpow2.f32 %v1827_v53 }
0x1055   :  { %v1824_v56 = vpop.xlane.xlu0 %1823 }
0x1056   :  { %v1826_v59 = vsub.f32 %v1818_v43, %v1824_v56 }
0x1058   :  { %v2765_v61 = vpop.eup %2764  ;;  %v1829_v63 = vmul.f32 1.442695, %v1826_v59 }
0x1059   :  { %v1831_v2 = vsel %vm309_vm8, %v2765_v61, 0.0 }
0x105a   :  { %2766 = vpow2.f32 %v1829_v63  ;;  %1832 = vadd.xlane.f32.xlu1 %v1831_v2 }
0x1060   :  { %v2767_v3 = vpop.eup %2766 }
0x1061   :  { %v1834_v4 = vsel %vm309_vm8, %v2767_v3, 0.0 }
0x1062   :  { %1835 = vadd.xlane.f32.xlu2 %v1834_v4 }
0x10cd   :  { %v1833_v57 = vpop.xlane.xlu1 %1832 }
0x10ce   :  { %2768 = vrcp.f32 %v1833_v57  ;;  %v2627_v57 = vld [vmem:[%s3333_s4 + $0x30] sm:$0xff] }
0x10d4   :  { %v2769_v54 = vpop.eup %2768 }
0x10d5   :  { %v1839_v8 = vmul.f32 %v2769_v54, %v2765_v61  ;;  %v1836_v62 = vpop.xlane.xlu2 %1835  ;;  %v2628_v61 = vld [vmem:[%s3333_s4 + $0x38] sm:$0xff] }
0x10d6   :  { %2770 = vrcp.f32 %v1836_v62  ;;  %2128 = vmatpush.msra.mxu2 %v2628_v61  ;;  %v2701_v62 = vld [vmem:[%s2333_s8] ss:$0 sm:$0xff] }
0x10d7   :  { %2582 = vmatmul.msk.f32.vlgmr.msra.gmra.mxu3 %vm309_vm8, %v1839_v8 }
0x10d8   :  { %2129 = vmatpush.msra.mxu2 %v2627_v57  ;;  %2229 = vmatpush.msra.mxu3 %v2210_v32  ;;  %v2273_v57 = vld [vmem:[%s3526_s5 + $0x58] sm:$0xff] }
0x10dc   :  { %v2771_v12 = vpop.eup %2770 }
0x10dd   :  { %v1840_v60 = vmul.f32 %v2771_v12, %v2767_v3 }
0x10df   :  { %2583 = vmatmul.msk.f32.gmra.mxu3 %vm309_vm8, %v1840_v60 }
0x10e7   :  { %2619 = vmatmul.msk.f32.vlgmr.msrb.gmra.mxu3 %vm136_vm0, %v3210_v58 }
0x10ef   :  { %2620 = vmatmul.msk.f32.gmra.mxu3 %vm136_vm0, %v3217_v0 }
0x115a   :  { %v1864_v16 = vpop.f32.mrf.mxu3 }
0x115b   :  { %2586 = vmatmul.msk.f32.vlgmr.msrb.gmra.mxu0 %vm309_vm8, %v1864_v16 }
0x1162   :  { %v1867_v17 = vpop.f32.mrf.mxu3 }
0x1163   :  { %2587 = vmatmul.msk.f32.gmra.mxu0 %vm309_vm8, %v1867_v17 }
0x116b   :  { %2623 = vmatmul.msk.f32.vlgmr.msra.gmra.mxu0 %vm309_vm8, %v1936_v21 }
0x1173   :  { %2624 = vmatmul.msk.f32.gmra.mxu0 %vm309_vm8, %v1939_v24 }
0x11d8   :  { %v1896_v31 = vpop.f32.mrf.mxu0 }
0x11d9   :  { %v3449_v35 = vadd.f32 %v1896_v31, %v1664_v28 }
0x11e0   :  { %v1899_v36 = vpop.f32.mrf.mxu0 }
0x11e1   :  { %v3456_v39 = vadd.f32 %v1899_v36, %v3411_v29  ;;  %v2205_v36 = vld [vmem:[%s2334_s24 + $0x10] sm:$0xff] }
0x11e8   :  { %v2044_v26 = vpop.f32.mrf.mxu0 }
0x11e9   :  { %v2050_v40 = vmul.f32 0.25, %v2044_v26 }
0x11eb   :  { %v2052_v42 = vadd.f32 %v2050_v40, %v3283_v5  ;;  %v2009_v5 = vpop.f32.mrf.mxu3 }
0x11ed   :  { %v2054_v43 = vsel %vm309_vm8, %v2052_v42, -inf }
0x11ee   :  { %2055 = vmax.xlane.f32.xlu0 %v2054_v43  ;;  %v2276_v43 = vld [vmem:[%s3526_s5 + $0x70] sm:$0xff] }
0x11f0   :  { %v2047_v44 = vpop.f32.mrf.mxu0 }
0x11f1   :  { %v2051_v29 = vmul.f32 0.25, %v2047_v44  ;;  %v2275_v44 = vld [vmem:[%s3526_s5 + $0x68] sm:$0xff] }
0x11f3   :  { %v2053_v45 = vadd.f32 %v2051_v29, %v3293_v11  ;;  %v2012_v30 = vpop.f32.mrf.mxu3  ;;  %v2010_v11 = vadd.f32 %v2700_v22, %v2009_v5 }
0x11f4   :  { %v2013_v53 = vadd.f32 %v2700_v22, %v2012_v30  ;;  %v2702_v22 = vld [vmem:[%s3489_s12] ss:$0 sm:$0xff] }
0x11f5   :  { %v2057_v46 = vsel %vm309_vm8, %v2053_v45, -inf }
0x11f6   :  { %2058 = vmax.xlane.f32.xlu1 %v2057_v46  ;;  %2096 = vmatpush.msra.mxu1 %v2013_v53  ;;  %v2274_v46 = vld [vmem:[%s3526_s5 + $0x60] sm:$0xff] }
0x11f8   :  { %2097 = vmatpush.msra.mxu1 %v2010_v11  ;;  %v2703_v11 = vld [vmem:[%s3497_s16] ss:$0 sm:$0xff] }
0x1261   :  { %v2056_v47 = vpop.xlane.xlu0 %2055 }
0x1262   :  { %v2060_v58 = vsub.f32 %v2052_v42, %v2056_v47  ;;  %v2277_v42 = vld [vmem:[%s3526_s5 + $0x78] sm:$0xff] }
0x1263   :  { %2278 = vmatpush.msrb.mxu0 %v2277_v42 }
0x1264   :  { %v2062_v48 = vmul.f32 1.442695, %v2060_v58 }
0x1265   :  { %2279 = vmatpush.msrb.mxu0 %v2276_v43 }
0x1266   :  { %2772 = vpow2.f32 %v2062_v48 }
0x1267   :  { %2280 = vmatpush.msrb.mxu0 %v2275_v44  ;;  %v2705_v44 = vld [vmem:[%s3543_s2] ss:$0 sm:$0xff] }
0x1269   :  { %v2059_v49 = vpop.xlane.xlu1 %2058  ;;  %2281 = vmatpush.msrb.mxu0 %v2274_v46 }
0x126a   :  { %v2061_v50 = vsub.f32 %v2053_v45, %v2059_v49 }
0x126b   :  { %2282 = vmatpush.msrb.mxu0 %v2273_v57 }
0x126c   :  { %v2773_v51 = vpop.eup %2772  ;;  %v2064_v52 = vmul.f32 1.442695, %v2061_v50 }
0x126d   :  { %v2066_v0 = vsel %vm309_vm8, %v2773_v51, 0.0 }
0x126e   :  { %2774 = vpow2.f32 %v2064_v52  ;;  %2067 = vadd.xlane.f32.xlu2 %v2066_v0 }
0x1274   :  { %v2775_v56 = vpop.eup %2774 }
0x1275   :  { %v2069_v59 = vsel %vm309_vm8, %v2775_v56, 0.0 }
0x1276   :  { %2070 = vadd.xlane.f32.xlu0 %v2069_v59 }
0x12e1   :  { %v2068_v63 = vpop.xlane.xlu2 %2067 }
0x12e2   :  { %2776 = vrcp.f32 %v2068_v63 }
0x12e8   :  { %v2777_v2 = vpop.eup %2776 }
0x12e9   :  { %v2074_v3 = vmul.f32 %v2777_v2, %v2773_v51  ;;  %v2071_v4 = vpop.xlane.xlu0 %2070 }
0x12ea   :  { %2778 = vrcp.f32 %v2071_v4 }
0x12eb   :  { %2625 = vmatmul.msk.f32.vlgmr.msra.gmra.mxu1 %vm309_vm8, %v2074_v3 }
0x12f0   :  { %v2779_v6 = vpop.eup %2778 }
0x12f1   :  { %v2075_v7 = vmul.f32 %v2779_v6, %v2775_v56 }
0x12f3   :  { %2626 = vmatmul.msk.f32.gmra.mxu1 %vm309_vm8, %v2075_v7 }
0x1368   :  { %v2099_v54 = vpop.f32.mrf.mxu1 }
0x1369   :  { %2629 = vmatmul.msk.f32.vlgmr.msra.gmra.mxu2 %vm309_vm8, %v2099_v54  ;;  %v2272_v54 = vld [vmem:[%s3526_s5 + $0x50] sm:$0xff] }
0x136a   :  { %2283 = vmatpush.msrb.mxu0 %v2272_v54 }
0x1370   :  { %v2102_v8 = vpop.f32.mrf.mxu1 }
0x1371   :  { %2630 = vmatmul.msk.f32.gmra.mxu2 %vm309_vm8, %v2102_v8  ;;  %v2271_v8 = vld [vmem:[%s3526_s5 + $0x48] sm:$0xff] }
0x1372   :  { %2284 = vmatpush.msrb.mxu0 %v2271_v8 }
0x13ec   :  { %v2131_v55 = vpop.f32.mrf.mxu2 }
0x13ed   :  { %v2137_v9 = vadd.f32 %v2131_v55, %v3449_v35  ;;  %v2209_v35 = vld [vmem:[%s2334_s24 + $0x30] sm:$0xff]  ;;  %v2269_v55 = vld [vmem:[%s3526_s5 + $0x38] sm:$0xff] }
0x13ee   :  { %2230 = vmatpush.msra.mxu3 %v2209_v35 }
0x13ef   :  { %v2143_v12 = vadd.f32 %v2701_v62, %v2137_v9  ;;  %v2268_v9 = vld [vmem:[%s3526_s5 + $0x30] sm:$0xff] }
0x13f0   :  { %2231 = vmatpush.msra.mxu3 %v2208_v33 }
0x13f1   :  { %v3481_v60 = vadd.f32 %v2143_v12, %v3151_v18  ;;  %v2267_v12 = vld [vmem:[%s3526_s5 + $0x28] sm:$0xff] }
0x13f2   :  { %2232 = vmatpush.msra.mxu3 %v2207_v34 }
0x13f3   :  { %v2149_v14 = vsel %vm136_vm0, %v3481_v60, 0.0 }
0x13f4   :  { %2150 = vadd.xlane.f32.xlu1 %v2149_v14  ;;  %v2134_v15 = vpop.f32.mrf.mxu2  ;;  %2233 = vmatpush.msra.mxu3 %v2206_v41  ;;  %v2266_v14 = vld [vmem:[%s3526_s5 + $0x20] sm:$0xff] }
0x13f5   :  { %v2138_v1 = vadd.f32 %v2134_v15, %v3456_v39  ;;  %v2203_v39 = vld [vmem:[%s2334_s24] sm:$0xff]  ;;  %v2265_v15 = vld [vmem:[%s3526_s5 + $0x18] sm:$0xff] }
0x13f6   :  { %2234 = vmatpush.msra.mxu3 %v2205_v36 }
0x13f7   :  { %v2144_v16 = vadd.f32 %v2701_v62, %v2138_v1  ;;  %v2270_v62 = vld [vmem:[%s3526_s5 + $0x40] sm:$0xff]  ;;  %v2264_v1 = vld [vmem:[%s3526_s5 + $0x10] sm:$0xff] }
0x13f8   :  { %2235 = vmatpush.msra.mxu3 %v2204_v38  ;;  %2285 = vmatpush.msrb.mxu0 %v2270_v62 }
0x13f9   :  { %v3492_v17 = vadd.f32 %v2144_v16, %v3156_v37  ;;  %v2263_v16 = vld [vmem:[%s3526_s5 + $0x8] sm:$0xff] }
0x13fa   :  { %2236 = vmatpush.msra.mxu3 %v2203_v39  ;;  %2286 = vmatpush.msrb.mxu0 %v2269_v55 }
0x13fb   :  { %v2152_v18 = vsel %vm136_vm0, %v3492_v17, 0.0 }
0x13fc   :  { %2153 = vadd.xlane.f32.xlu2 %v2152_v18  ;;  %2287 = vmatpush.msrb.mxu0 %v2268_v9  ;;  %v2262_v18 = vld [vmem:[%s3526_s5] sm:$0xff] }
0x13fe   :  { %2288 = vmatpush.msrb.mxu0 %v2267_v12 }
0x1400   :  { %2289 = vmatpush.msrb.mxu0 %v2266_v14 }
0x1402   :  { %2290 = vmatpush.msrb.mxu0 %v2265_v15 }
0x1404   :  { %2291 = vmatpush.msrb.mxu0 %v2264_v1 }
0x1406   :  { %2292 = vmatpush.msrb.mxu0 %v2263_v16 }
0x1408   :  { %2293 = vmatpush.msrb.mxu0 %v2262_v18 }
0x1467   :  { %v2151_v19 = vpop.xlane.xlu1 %2150 }
0x1468   :  { %v2155_v20 = vmul.f32 %v2151_v19, %v2845_v10  ;;  %v2704_v19 = vld [vmem:[%s3518_s20] ss:$0 sm:$0xff] }
0x146a   :  { %v3503_v21 = vsub.f32 %v3481_v60, %v2155_v20 }
0x146c   :  { %v2159_v37 = vmul.f32 %v3503_v21, %v3503_v21 }
0x146e   :  { %v2161_v23 = vsel %vm136_vm0, %v2159_v37, 0.0 }
0x146f   :  { %2162 = vadd.xlane.f32.xlu0 %v2161_v23  ;;  %v2154_v24 = vpop.xlane.xlu2 %2153 }
0x1470   :  { %v2156_v13 = vmul.f32 %v2154_v24, %v2845_v10 }
0x1472   :  { %v3510_v27 = vsub.f32 %v3492_v17, %v2156_v13 }
0x1474   :  { %v2160_v28 = vmul.f32 %v3510_v27, %v3510_v27 }
0x1476   :  { %v2164_v31 = vsel %vm136_vm0, %v2160_v28, 0.0 }
0x1477   :  { %2165 = vadd.xlane.f32.xlu1 %v2164_v31 }
0x14e2   :  { %v2163_v25 = vpop.xlane.xlu0 %2162 }
0x14e3   :  { %v2167_v26 = vmul.f32 %v2163_v25, %v2845_v10 }
0x14e5   :  { %v2169_v40 = vadd.f32 1e-05, %v2167_v26 }
0x14e7   :  { %2780 = vrsqrt.f32 %v2169_v40  ;;  %vm2177_vm1 = vweird.f32 %v2169_v40 }
0x14ea   :  { %v2166_v29 = vpop.xlane.xlu1 %2165 }
0x14eb   :  { %v2168_v45 = vmul.f32 %v2166_v29, %v2845_v10 }
0x14ed   :  { %v2781_v47 = vpop.eup %2780  ;;  %v2170_v58 = vadd.f32 1e-05, %v2168_v45 }
0x14ee   :  { %v2172_v48 = vmul.f32 %v2781_v47, %v2169_v40  ;;  %vm2178_vm15 = vweird.f32 %v2781_v47 }
0x14ef   :  { %2782 = vrsqrt.f32 %v2170_v58  ;;  %vm2179_vm2 = vmor %vm2177_vm1, %vm2178_vm15  ;;  %vm2187_vm4 = vweird.f32 %v2170_v58 }
0x14f0   :  { %v2173_v49 = vmul.f32 %v2781_v47, %v2172_v48 }
0x14f2   :  { %v2174_v5 = vmul.f32 0.5, %v2173_v49 }
0x14f4   :  { %v2175_v50 = vsub.f32 1.5, %v2174_v5 }
0x14f5   :  { %v2783_v51 = vpop.eup %2782 }
0x14f6   :  { %v2176_v52 = vmul.f32 %v2781_v47, %v2175_v50  ;;  %v2182_v0 = vmul.f32 %v2783_v51, %v2170_v58  ;;  %vm2188_vm3 = vweird.f32 %v2783_v51 }
0x14f7   :  { %vm2189_vm5 = vmor %vm2187_vm4, %vm2188_vm3 }
0x14f8   :  { %v2180_v10 = vsel %vm2179_vm2, %v2781_v47, %v2176_v52  ;;  %v2183_v30 = vmul.f32 %v2783_v51, %v2182_v0 }
0x14f9   :  { %v2191_v53 = vmul.f32 %v2180_v10, %v3503_v21 }
0x14fa   :  { %v2184_v56 = vmul.f32 0.5, %v2183_v30 }
0x14fb   :  { %v2196_v59 = vmul.f32 %v2702_v22, %v2191_v53 }
0x14fc   :  { %v2185_v61 = vsub.f32 1.5, %v2184_v56 }
0x14fd   :  { %v2201_v63 = vadd.f32 %v2703_v11, %v2196_v59 }
0x14fe   :  { %v2186_v2 = vmul.f32 %v2783_v51, %v2185_v61 }
0x14ff   :  { %2631 = vmatmul.msk.f32.vlgmr.msra.gmra.mxu3 %vm136_vm0, %v2201_v63 }
0x1500   :  { %v2190_v3 = vsel %vm2189_vm5, %v2783_v51, %v2186_v2 }
0x1501   :  { %v2192_v4 = vmul.f32 %v2190_v3, %v3510_v27 }
0x1503   :  { %v2197_v6 = vmul.f32 %v2702_v22, %v2192_v4 }
0x1505   :  { %v2202_v7 = vadd.f32 %v2703_v11, %v2197_v6 }
0x1507   :  { %2632 = vmatmul.msk.f32.gmra.mxu3 %vm136_vm0, %v2202_v7 }
0x1582   :  { %v2238_v20 = vpop.f32.mrf.mxu3 }
0x1583   :  { %v2239_v21 = vadd.f32 %v2704_v19, %v2238_v20 }
0x1585   :  { %v2246_v37 = vmul.f32 0.044715, %v2239_v21  ;;  %v2244_v38 = vmul.f32 0.5, %v2239_v21 }
0x1587   :  { %v2248_v23 = vmul.f32 %v2246_v37, %v2239_v21 }
0x1589   :  { %v2250_v24 = vmul.f32 %v2248_v23, %v2239_v21 }
0x158a   :  { %v2241_v13 = vpop.f32.mrf.mxu3 }
0x158b   :  { %v2242_v27 = vadd.f32 %v2704_v19, %v2241_v13  ;;  %v2252_v28 = vadd.f32 %v2250_v24, %v2239_v21 }
0x158d   :  { %v2254_v31 = vmul.f32 0.7978846, %v2252_v28  ;;  %v2247_v32 = vmul.f32 0.044715, %v2242_v27  ;;  %v2245_v40 = vmul.f32 0.5, %v2242_v27 }
0x158f   :  { %2784 = vtanh.f32 %v2254_v31  ;;  %v2249_v35 = vmul.f32 %v2247_v32, %v2242_v27 }
0x1591   :  { %v2251_v33 = vmul.f32 %v2249_v35, %v2242_v27 }
0x1593   :  { %v2253_v34 = vadd.f32 %v2251_v33, %v2242_v27 }
0x1595   :  { %v2785_v41 = vpop.eup %2784  ;;  %v2255_v36 = vmul.f32 0.7978846, %v2253_v34 }
0x1596   :  { %v2258_v39 = vadd.f32 1.0, %v2785_v41 }
0x1597   :  { %2786 = vtanh.f32 %v2255_v36 }
0x1598   :  { %v2260_v25 = vmul.f32 %v2258_v39, %v2244_v38 }
0x159a   :  { %2294 = vmatmul.f32.vlgmr.msrb.gmra.mxu0 %v2260_v25 }
0x159d   :  { %v2787_v26 = vpop.eup %2786 }
0x159e   :  { %v2259_v42 = vadd.f32 1.0, %v2787_v26 }
0x15a0   :  { %v2261_v43 = vmul.f32 %v2259_v42, %v2245_v40 }
0x15a2   :  { %2297 = vmatmul.f32.gmra.mxu0 %v2261_v43 }
0x1617   :  { %v2295_v29 = vpop.f32.mrf.mxu0 }
0x1618   :  { %v2301_v45 = vadd.f32 %v2295_v29, %v3481_v60 }
0x161a   :  { %v2307_v46 = vadd.f32 %v2705_v44, %v2301_v45 }
0x161c   :  { %2309 = vst.msk [vmem:[%s2344_s6] sm:$0xff] %vm136_vm0, %v2307_v46 }
0x161f   :  { %v2298_v47 = vpop.f32.mrf.mxu0 }
0x1620   :  { %v2302_v58 = vadd.f32 %v2298_v47, %v3492_v17 }
0x1622   :  { %v2308_v48 = vadd.f32 %v2705_v44, %v2302_v58 }
0x1624   :  { %2310 = vst.msk [vmem:[%s2344_s6 + $0x8] sm:$0xff] %vm136_vm0, %v2308_v48 }

// kernel: squeeze.2
= control target key start
LH: loop header
LB: loop body
LE: loop exit
PB: predicated region body
PF: predicated region fallthrough
CT: control target
= control target key end

     0   :  { %vm7_vm0 = vcmask 64512   ;;  %s39_s0 = inlined_call_operand.vmem [shape: f32[16], index: 0, kind: input, shape index: {}]   ;;  %s40_s1 = inlined_call_operand.vmem [shape: f32[2,8], index: 1, kind: output, shape index: {}]  }
   0x1   :  { %v4_v0 = vld [vmem:[%s39_s0] sm:$0x1]  ;;  %s22_s0 = smov 120  }
   0x2   :  { %5 = vst [vmem:[#allocation1] sm:$0x1] %v4_v0 }
   0x9   :  { %v9_v1 = vld [vmem:[#allocation1] sm:$0x1]  }
   0xa   :  { %v6_v2 = vld [vmem:[#allocation1] sm:$0x1]   ;;  %10 = vrot.lane.b32.xlu0 %v9_v1, %s22_s0 }
   0xb   :  { %8 = vst.msk [vmem:[#allocation0] sm:$0x1] %vm7_vm0, %v6_v2  }
  0x7c   :  { %v11_v3 = vpop.permute.xlu0 %10  }
  0x7d   :  { %14 = vst.msk [vmem:[#allocation0 + $0x1] sm:$0x1] %vm7_vm0, %v11_v3  }
  0x84   :  { %v17_v4 = vld [vmem:[#allocation0] sm:$0x3] }
  0x85   :  { %20 = vst [vmem:[%s40_s1] sm:$0x3] %v17_v4 }

</bundles_post_ra>
